<compile_context>
chip_gen: v5e
topology: v5e:2x2
jax: 0.10.0
libtpu: 0.0.40
codegen_flags: <defaults>
</compile_context>

<pallas_src>
import functools

import jax
import jax.numpy as jnp
import numpy as np
from jax import lax
from jax.experimental import pallas as pl
from jax.experimental.pallas import tpu as pltpu


# ---------------------------------------------------------------------------
# Fused residual-block kernel (one grid step == one image)
# ---------------------------------------------------------------------------
def _residual_block_kernel(*refs, H, W, Ho, Wo, sh, sw, mode):
    if mode == "fused_ds":          # down_sample=True, stride == (1, 1)
        (x_ref, w1r_ref, b1_ref, w2_ref, b2_ref, w3_ref, b3_ref, br_ref,
         o_ref, y1p_ref) = refs
    elif mode == "identity":        # down_sample=False (stride == (1, 1))
        (x_ref, w1_ref, b1_ref, w2_ref, b2_ref, w3_ref, b3_ref,
         o_ref, y1p_ref) = refs
    else:                           # "strided_ds": down_sample=True, stride > 1
        (x_ref, xr_ref, w1_ref, b1_ref, w2_ref, b2_ref, w3_ref, b3_ref,
         wr_ref, br_ref, o_ref, y1p_ref) = refs

    cdt = y1p_ref.dtype                  # compute dtype (bf16 or f32)
    CmidP = y1p_ref.shape[-1]            # padded mid channels (x128)

    # ---- conv1 (1x1) + BN + ReLU (BN folded into weights/bias) ------------
    if mode == "fused_ds":
        # conv1 and the 1x1 downsample projection share one MXU pass over x.
        yc = jnp.dot(x_ref[0], w1r_ref[...], preferred_element_type=jnp.float32)
        y1 = jnp.maximum(yc[:, :CmidP] + b1_ref[...], 0.0)
        res = yc[:, CmidP:] + br_ref[...]
    else:
        y1 = jnp.dot(x_ref[0], w1_ref[...], preferred_element_type=jnp.float32)
        y1 = jnp.maximum(y1 + b1_ref[...], 0.0)

    # ---- stage y1 into the persistent zero-halo scratch --------------------
    # The interior (rows 1..H, cols 1..W, ALL CmidP lanes) is fully rewritten
    # every step; padded lanes of w1/b1 are zero, so y1's padded lanes are 0
    # (keep that invariant!).
    y1p_ref[1:H + 1, 1:W + 1, :] = y1.astype(cdt).reshape(H, W, CmidP)
    # Only the 1-wide halo ring is read-but-never-rewritten; re-zero just that
    # ring every step (correct even when the batch grid axis is split across
    # TensorCores; far less vst traffic than zeroing the whole scratch).
    y1p_ref[0:1, 0:W + 2, :] = jnp.zeros((1, W + 2, CmidP), cdt)
    y1p_ref[H + 1:H + 2, 0:W + 2, :] = jnp.zeros((1, W + 2, CmidP), cdt)
    y1p_ref[1:H + 1, 0:1, :] = jnp.zeros((H, 1, CmidP), cdt)
    y1p_ref[1:H + 1, W + 1:W + 2, :] = jnp.zeros((H, 1, CmidP), cdt)

    # ---- conv2 (3x3, stride, pad=1) + BN + ReLU -----------------------------
    # 3 MXU passes (one per kernel row), contraction K = 3*CmidP each.
    acc = jnp.zeros((Ho * Wo, CmidP), jnp.float32)
    for dh in range(3):
        if sh == 1 and sw == 1:
            taps = [y1p_ref[dh:dh + Ho, dw:dw + Wo, :] for dw in range(3)]
        else:
            # TODO(synk): on v5e verify strided sublane reads lower cleanly;
            # otherwise phase-split y1 during staging so taps are unit-stride.
            taps = [y1p_ref[pl.ds(dh, Ho, sh), pl.ds(dw, Wo, sw), :]
                    for dw in range(3)]
        lhs = jnp.concatenate([t.reshape(Ho * Wo, CmidP) for t in taps],
                              axis=-1)
        acc += jnp.dot(lhs, w2_ref[dh], preferred_element_type=jnp.float32)
    y2 = jnp.maximum(acc + b2_ref[...], 0.0).astype(cdt)

    # ---- conv3 (1x1) + BN ---------------------------------------------------
    y3 = jnp.dot(y2, w3_ref[...], preferred_element_type=jnp.float32) + b3_ref[...]

    # ---- residual path ------------------------------------------------------
    if mode == "identity":
        # TODO(synk): skip path follows compute_dtype; feed an f32 copy of x
        # if bf16 skip-path precision ever matters.
        res = x_ref[0].astype(jnp.float32)
    elif mode == "strided_ds":
        res = jnp.dot(xr_ref[0], wr_ref[...],
                      preferred_element_type=jnp.float32) + br_ref[...]

    # ---- add + ReLU, lane-dense (CoutP multiple of 128) store ---------------
    o_ref[0] = jnp.maximum(y3 + res, 0.0).astype(o_ref.dtype)


# ---------------------------------------------------------------------------
# Wrapper: BN folding, channel/sublane padding, mode selection
# ---------------------------------------------------------------------------
def _round_up(x, m):
    return ((x + m - 1) // m) * m


def _bn_fold(gamma, beta, mean, var, eps=1e-5):
    # TODO(synk): BatchNorm in inference mode only (folded running stats);
    # PyTorch training-mode batch statistics are not reproduced.
    scale = gamma / jnp.sqrt(var + eps)
    return scale, beta - mean * scale


def _pad_axis(a, axis, target):
    pad = target - a.shape[axis]
    if pad == 0:
        return a
    widths = [(0, 0)] * a.ndim
    widths[axis] = (0, pad)
    return jnp.pad(a, widths)


def _const_spec(arr):
    # Grid-invariant operand: whole array as one block.
    # TODO(synk): mark these pipeline_mode=pl.Buffered(1) once single-buffering
    # of grid-invariant inputs is confirmed supported, to halve their VMEM use.
    nd = arr.ndim
    return pl.BlockSpec(arr.shape, lambda n, _nd=nd: (0,) * _nd)


def residual_block_forward_nhwc(x, params, stride=(1, 1), down_sample=True,
                                compute_dtype=jnp.bfloat16, out_dtype=None,
                                return_padded=False):
    """x: (N, H, W, Cin) NHWC.  Returns (N, Ho, Wo, Cout[P]) in out_dtype."""
    N, H, W, Cin = x.shape
    sh, sw = stride
    Ho = (H + 2 - 3) // sh + 1
    Wo = (W + 2 - 3) // sw + 1
    HW, HoWo = H * W, Ho * Wo
    Wp = _round_up(W + 2, 8)                 # sublane-aligned halo width

    w1, w2, w3 = params["w1"], params["w2"], params["w3"]
    Cmid = w1.shape[0]
    Cout = w3.shape[0]
    CmidP = _round_up(Cmid, 128)             # lane-dense intermediate channels
    CoutP = _round_up(Cout, 128)             # lane-dense output channels
    cdt = compute_dtype
    odt = compute_dtype if out_dtype is None else out_dtype

    if down_sample:
        mode = "fused_ds" if (sh, sw) == (1, 1) else "strided_ds"
    else:
        assert (sh, sw) == (1, 1) and Cin == Cout, (
            "identity residual requires stride=(1,1) and "
            "channel_in == channel_out * expansion")
        mode = "identity"

    # ---- fold BN (inference) scale into weights; biases stay f32 -----------
    s1, t1 = _bn_fold(*params["bn1"])
    s2, t2 = _bn_fold(*params["bn2"])
    s3, t3 = _bn_fold(*params["bn3"])

    w1f = _pad_axis(jnp.transpose(w1[:, :, 0, 0]) * s1[None, :], 1, CmidP)
    b1f = _pad_axis(t1.reshape(1, Cmid), 1, CmidP).astype(jnp.float32)

    # (O, I, 3, 3) -> (3, 3*CmidP, CmidP): row index = dw*CmidP + cin.
    w2t = jnp.transpose(w2, (2, 3, 1, 0)) * s2[None, None, None, :]
    w2f = _pad_axis(_pad_axis(w2t, 2, CmidP), 3, CmidP).reshape(
        3, 3 * CmidP, CmidP)
    b2f = _pad_axis(t2.reshape(1, Cmid), 1, CmidP).astype(jnp.float32)

    w3f = _pad_axis(_pad_axis(jnp.transpose(w3[:, :, 0, 0]) * s3[None, :],
                              0, CmidP), 1, CoutP)
    b3f = _pad_axis(t3.reshape(1, Cout), 1, CoutP).astype(jnp.float32)

    if down_sample:
        sd, td = _bn_fold(*params["bn_ds"])
        wrf = _pad_axis(jnp.transpose(params["w_ds"][:, :, 0, 0]) * sd[None, :],
                        1, CoutP)
        brf = _pad_axis(td.reshape(1, Cout), 1, CoutP).astype(jnp.float32)

    # ---- per-mode operand assembly ------------------------------------------
    if mode == "identity":
        # Pad x channels to CoutP so the residual add is lane-dense; conv1's
        # contraction dim grows accordingly (padded weight rows are zero).
        x = _pad_axis(x, 3, CoutP)
        w1f = _pad_axis(w1f, 0, CoutP)
    Cx = x.shape[-1]
    x_flat = x.astype(cdt).reshape(N, HW, Cx)

    if mode == "fused_ds":
        w1rf = jnp.concatenate([w1f, wrf], axis=1).astype(cdt)
        act_args = (x_flat,)
        act_specs = [pl.BlockSpec((1, HW, Cx), lambda n: (n, 0, 0))]
        const_args = (w1rf, b1f, w2f.astype(cdt), b2f,
                      w3f.astype(cdt), b3f, brf)
        proj_cols = CmidP + CoutP
    elif mode == "identity":
        act_args = (x_flat,)
        act_specs = [pl.BlockSpec((1, HW, Cx), lambda n: (n, 0, 0))]
        const_args = (w1f.astype(cdt), b1f, w2f.astype(cdt), b2f,
                      w3f.astype(cdt), b3f)
        proj_cols = CmidP
    else:  # strided_ds
        xr_flat = x.astype(cdt)[:, ::sh, ::sw, :].reshape(N, HoWo, Cx)
        act_args = (x_flat, xr_flat)
        act_specs = [pl.BlockSpec((1, HW, Cx), lambda n: (n, 0, 0)),
                     pl.BlockSpec((1, HoWo, Cx), lambda n: (n, 0, 0))]
        const_args = (w1f.astype(cdt), b1f, w2f.astype(cdt), b2f,
                      w3f.astype(cdt), b3f, wrf.astype(cdt), brf)
        proj_cols = CmidP

    args = act_args + const_args
    in_specs = act_specs + [_const_spec(a) for a in const_args]

    kernel = functools.partial(_residual_block_kernel, H=H, W=W, Ho=Ho, Wo=Wo,
                               sh=sh, sw=sw, mode=mode)

    # ---- VMEM budget: 2x (double-buffered) blocks + scratch + live temps ----
    act_block_bytes = sum(int(np.prod(a.shape[1:])) * a.dtype.itemsize
                          for a in act_args)
    const_bytes = sum(int(np.prod(a.shape)) * a.dtype.itemsize
                      for a in const_args)
    out_block_bytes = HoWo * CoutP * np.dtype(odt).itemsize
    scratch_bytes = (H + 2) * Wp * CmidP * np.dtype(cdt).itemsize
    temp_bytes = (4 * (HW * (CmidP + CoutP) + HoWo * (2 * CmidP + CoutP))
                  + np.dtype(cdt).itemsize * HoWo * 3 * CmidP)
    vmem_limit = (2 * (act_block_bytes + const_bytes + out_block_bytes)
                  + scratch_bytes + 2 * temp_bytes + (4 << 20))
    vmem_limit = int(min(max(vmem_limit, 32 << 20), 100 << 20))

    flops = 2 * N * (HW * Cx * proj_cols
                     + HoWo * 9 * CmidP * CmidP
                     + HoWo * CmidP * CoutP
                     + (HoWo * Cx * CoutP if mode == "strided_ds" else 0))
    bytes_accessed = N * (act_block_bytes + out_block_bytes) + const_bytes

    out = pl.pallas_call(
        kernel,
        out_shape=jax.ShapeDtypeStruct((N, HoWo, CoutP), odt),
        grid=(N,),
        in_specs=in_specs,
        out_specs=pl.BlockSpec((1, HoWo, CoutP), lambda n: (n, 0, 0)),
        scratch_shapes=[pltpu.VMEM((H + 2, Wp, CmidP), cdt)],  # y1 + zero halo
        compiler_params=pltpu.CompilerParams(
            dimension_semantics=("parallel",),
            vmem_limit_bytes=vmem_limit),
        cost_estimate=pl.CostEstimate(flops=flops, transcendentals=0,
                                      bytes_accessed=bytes_accessed),
    )(*args)

    out = out.reshape(N, Ho, Wo, CoutP)
    if return_padded:
        return out
    return out[:, :, :, :Cout]


def residual_block_forward(x_nchw, params, stride=(1, 1), down_sample=True,
                           compute_dtype=jnp.bfloat16, out_dtype=None):
    # NCHW parity adapter; prefer calling residual_block_forward_nhwc directly
    # and keeping activations NHWC end-to-end (each transpose here is a full
    # HBM read+write pass outside the kernel).
    x = jnp.transpose(x_nchw, (0, 2, 3, 1))
    y = residual_block_forward_nhwc(x, params, stride=stride,
                                    down_sample=down_sample,
                                    compute_dtype=compute_dtype,
                                    out_dtype=out_dtype)
    return jnp.transpose(y, (0, 3, 1, 2))


# ---------------------------------------------------------------------------
# Pure-JAX reference (lax conv) for correctness check
# ---------------------------------------------------------------------------
def reference_forward(x_nchw, params, stride=(1, 1), down_sample=True):
    def conv(x, w, s, pad):
        return lax.conv_general_dilated(
            x, w, window_strides=s, padding=pad,
            dimension_numbers=("NCHW", "OIHW", "NCHW"))

    def bn(x, p):
        s, b = _bn_fold(*p)
        return x * s[None, :, None, None] + b[None, :, None, None]

    y = jnp.maximum(bn(conv(x_nchw, params["w1"], (1, 1), "VALID"), params["bn1"]), 0.0)
    y = jnp.maximum(bn(conv(y, params["w2"], stride, [(1, 1), (1, 1)]), params["bn2"]), 0.0)
    y = bn(conv(y, params["w3"], (1, 1), "VALID"), params["bn3"])
    if down_sample:
        r = bn(conv(x_nchw, params["w_ds"], stride, "VALID"), params["bn_ds"])
    else:
        r = x_nchw
    return jnp.maximum(y + r, 0.0)


# ---------------------------------------------------------------------------
def make_params(key, channel_in, channel_out, expansion):
    cout = channel_out * expansion
    ks = jax.random.split(key, 20)

    def bn_params(k, c):
        k1, k2, k3, k4 = jax.random.split(k, 4)
        gamma = jax.random.uniform(k1, (c,), jnp.float32, 0.5, 1.5)
        beta = 0.1 * jax.random.normal(k2, (c,), jnp.float32)
        mean = 0.1 * jax.random.normal(k3, (c,), jnp.float32)
        var = jax.random.uniform(k4, (c,), jnp.float32, 0.5, 1.5)
        return (gamma, beta, mean, var)

    return {
        "w1": 0.2 * jax.random.normal(ks[0], (channel_out, channel_in, 1, 1), jnp.float32),
        "bn1": bn_params(ks[1], channel_out),
        "w2": 0.1 * jax.random.normal(ks[2], (channel_out, channel_out, 3, 3), jnp.float32),
        "bn2": bn_params(ks[3], channel_out),
        "w3": 0.2 * jax.random.normal(ks[4], (cout, channel_out, 1, 1), jnp.float32),
        "bn3": bn_params(ks[5], cout),
        "w_ds": 0.2 * jax.random.normal(ks[6], (cout, channel_in, 1, 1), jnp.float32),
        "bn_ds": bn_params(ks[7], cout),
    }


if __name__ == "__main__":
    key = jax.random.PRNGKey(0)
    k_x1, k_p1, k_x2, k_p2 = jax.random.split(key, 4)

    # ---- Case 1: ResidualBlock(4, 16, stride=(1,1), down_sample=True, exp=4)
    ci, co, exp = 4, 16, 4
    x1 = jax.random.normal(k_x1, (2, ci, 16, 16), jnp.float32)         # NCHW
    p1 = make_params(k_p1, ci, co, exp)
    ref1 = jax.block_until_ready(
        reference_forward(x1, p1, stride=(1, 1), down_sample=True))

    # f32 compute, NHWC end-to-end (preferred production layout).
    fwd1_f32 = jax.jit(functools.partial(
        residual_block_forward_nhwc, stride=(1, 1), down_sample=True,
        compute_dtype=jnp.float32))
    out1_f32 = jax.block_until_ready(fwd1_f32(jnp.transpose(x1, (0, 2, 3, 1)), p1))
    np.testing.assert_allclose(np.asarray(out1_f32),
                               np.asarray(jnp.transpose(ref1, (0, 2, 3, 1))),
                               rtol=1e-4, atol=1e-4)

    # bf16 compute + bf16 output, via the NCHW parity adapter.
    fwd1_bf16 = jax.jit(functools.partial(
        residual_block_forward, stride=(1, 1), down_sample=True,
        compute_dtype=jnp.bfloat16))
    out1_bf16 = jax.block_until_ready(fwd1_bf16(x1, p1))
    np.testing.assert_allclose(np.asarray(out1_bf16.astype(jnp.float32)),
                               np.asarray(ref1), rtol=6e-2, atol=6e-2)

    # ---- Case 2: identity residual (down_sample=False), Cin == Cout*expansion
    ci2, co2 = 64, 16
    x2 = jax.random.normal(k_x2, (2, ci2, 8, 8), jnp.float32)          # NCHW
    p2 = make_params(k_p2, ci2, co2, exp)
    ref2 = jax.block_until_ready(
        reference_forward(x2, p2, stride=(1, 1), down_sample=False))
    fwd2 = jax.jit(functools.partial(
        residual_block_forward, stride=(1, 1), down_sample=False,
        compute_dtype=jnp.float32))
    out2 = jax.block_until_ready(fwd2(x2, p2))
    np.testing.assert_allclose(np.asarray(out2), np.asarray(ref2),
                               rtol=1e-4, atol=1e-4)

    print("KERNEL_OK")
</pallas_src>

<mosaic_0001>
module attributes {stable_mosaic.version = 11 : i64} {
  func.func @_residual_block_kernel(%arg0: i32, %arg1: memref<1x256x4xf32, #tpu.memory_space<vmem>>, %arg2: memref<4x256xf32, #tpu.memory_space<vmem>>, %arg3: memref<1x128xf32, #tpu.memory_space<vmem>>, %arg4: memref<3x384x128xf32, #tpu.memory_space<vmem>>, %arg5: memref<1x128xf32, #tpu.memory_space<vmem>>, %arg6: memref<128x128xf32, #tpu.memory_space<vmem>>, %arg7: memref<1x128xf32, #tpu.memory_space<vmem>>, %arg8: memref<1x128xf32, #tpu.memory_space<vmem>>, %arg9: memref<1x256x128xf32, #tpu.memory_space<vmem>>, %arg10: memref<18x24x128xf32, #tpu.memory_space<vmem>>) attributes {dimension_semantics = [#tpu.dimension_semantics<parallel>], iteration_bounds = array<i64: 2>, scalar_prefetch = 0 : i64, scratch_operands = 1 : i64, tpu.core_type = #tpu.core_type<tc>, window_params = [{transform_indices = @transform_0, window_bounds = array<i64: 1, 256, 4>}, {pipeline_mode = #tpu.pipeline_mode<synchronous>, transform_indices = @transform_1, window_bounds = array<i64: 4, 256>}, {pipeline_mode = #tpu.pipeline_mode<synchronous>, transform_indices = @transform_2, window_bounds = array<i64: 1, 128>}, {pipeline_mode = #tpu.pipeline_mode<synchronous>, transform_indices = @transform_3, window_bounds = array<i64: 3, 384, 128>}, {pipeline_mode = #tpu.pipeline_mode<synchronous>, transform_indices = @transform_4, window_bounds = array<i64: 1, 128>}, {pipeline_mode = #tpu.pipeline_mode<synchronous>, transform_indices = @transform_5, window_bounds = array<i64: 128, 128>}, {pipeline_mode = #tpu.pipeline_mode<synchronous>, transform_indices = @transform_6, window_bounds = array<i64: 1, 128>}, {pipeline_mode = #tpu.pipeline_mode<synchronous>, transform_indices = @transform_7, window_bounds = array<i64: 1, 128>}, {transform_indices = @transform_8, window_bounds = array<i64: 1, 256, 128>}]} {
    %c0 = arith.constant 0 : index
    %c0_0 = arith.constant 0 : index
    %c0_1 = arith.constant 0 : index
    %0 = vector.load %arg1[%c0, %c0_0, %c0_1] : memref<1x256x4xf32, #tpu.memory_space<vmem>>, vector<1x256x4xf32>
    %1 = vector.shape_cast %0 : vector<1x256x4xf32> to vector<256x4xf32>
    %c0_2 = arith.constant 0 : index
    %c0_3 = arith.constant 0 : index
    %2 = vector.load %arg2[%c0_2, %c0_3] : memref<4x256xf32, #tpu.memory_space<vmem>>, vector<4x256xf32>
    %cst = arith.constant dense<0.000000e+00> : vector<256x256xf32>
    %3 = tpu.matmul %1, %2, %cst {dimension_numbers = #tpu.dot_dimension_numbers<[1], [0], [0], [1], [0, 0, 1, 1], [], []>} : vector<256x4xf32>, vector<4x256xf32>, vector<256x256xf32> -> vector<256x256xf32>
    %4 = vector.extract_strided_slice %3 {offsets = [0, 0], sizes = [256, 128], strides = [1, 1]} : vector<256x256xf32> to vector<256x128xf32>
    %c0_4 = arith.constant 0 : index
    %c0_5 = arith.constant 0 : index
    %5 = vector.load %arg3[%c0_4, %c0_5] : memref<1x128xf32, #tpu.memory_space<vmem>>, vector<1x128xf32>
    %6 = vector.broadcast %5 : vector<1x128xf32> to vector<256x128xf32>
    %7 = arith.addf %4, %6 : vector<256x128xf32>
    %cst_6 = arith.constant 0.000000e+00 : f32
    %8 = vector.broadcast %cst_6 : f32 to vector<256x128xf32>
    %9 = arith.maximumf %7, %8 : vector<256x128xf32>
    %10 = vector.extract_strided_slice %3 {offsets = [0, 128], sizes = [256, 128], strides = [1, 1]} : vector<256x256xf32> to vector<256x128xf32>
    %c0_7 = arith.constant 0 : index
    %c0_8 = arith.constant 0 : index
    %11 = vector.load %arg8[%c0_7, %c0_8] : memref<1x128xf32, #tpu.memory_space<vmem>>, vector<1x128xf32>
    %12 = vector.broadcast %11 : vector<1x128xf32> to vector<256x128xf32>
    %13 = arith.addf %10, %12 : vector<256x128xf32>
    %14 = vector.shape_cast %9 : vector<256x128xf32> to vector<16x16x128xf32>
    %c1 = arith.constant 1 : index
    %c1_9 = arith.constant 1 : index
    %c0_10 = arith.constant 0 : index
    %15 = vector.load %arg10[%c1, %c1_9, %c0_10] : memref<18x24x128xf32, #tpu.memory_space<vmem>>, vector<16x16x128xf32>
    tpu.vector_store %arg10[%c1, %c1_9, %c0_10], %14 {strides = array<i32>} : memref<18x24x128xf32, #tpu.memory_space<vmem>>, vector<16x16x128xf32>,
    %cst_11 = arith.constant 0.000000e+00 : f32
    %16 = vector.broadcast %cst_11 : f32 to vector<1x18x128xf32>
    %c0_12 = arith.constant 0 : index
    %c0_13 = arith.constant 0 : index
    %c0_14 = arith.constant 0 : index
    %17 = vector.load %arg10[%c0_12, %c0_13, %c0_14] : memref<18x24x128xf32, #tpu.memory_space<vmem>>, vector<1x18x128xf32>
    tpu.vector_store %arg10[%c0_12, %c0_13, %c0_14], %16 {strides = array<i32>} : memref<18x24x128xf32, #tpu.memory_space<vmem>>, vector<1x18x128xf32>,
    %cst_15 = arith.constant 0.000000e+00 : f32
    %18 = vector.broadcast %cst_15 : f32 to vector<1x18x128xf32>
    %c17 = arith.constant 17 : index
    %c0_16 = arith.constant 0 : index
    %c0_17 = arith.constant 0 : index
    %19 = vector.load %arg10[%c17, %c0_16, %c0_17] : memref<18x24x128xf32, #tpu.memory_space<vmem>>, vector<1x18x128xf32>
    tpu.vector_store %arg10[%c17, %c0_16, %c0_17], %18 {strides = array<i32>} : memref<18x24x128xf32, #tpu.memory_space<vmem>>, vector<1x18x128xf32>,
    %cst_18 = arith.constant 0.000000e+00 : f32
    %20 = vector.broadcast %cst_18 : f32 to vector<16x1x128xf32>
    %c1_19 = arith.constant 1 : index
    %c0_20 = arith.constant 0 : index
    %c0_21 = arith.constant 0 : index
    %21 = vector.load %arg10[%c1_19, %c0_20, %c0_21] : memref<18x24x128xf32, #tpu.memory_space<vmem>>, vector<16x1x128xf32>
    tpu.vector_store %arg10[%c1_19, %c0_20, %c0_21], %20 {strides = array<i32>} : memref<18x24x128xf32, #tpu.memory_space<vmem>>, vector<16x1x128xf32>,
    %cst_22 = arith.constant 0.000000e+00 : f32
    %22 = vector.broadcast %cst_22 : f32 to vector<16x1x128xf32>
    %c1_23 = arith.constant 1 : index
    %c17_24 = arith.constant 17 : index
    %c0_25 = arith.constant 0 : index
    %23 = vector.load %arg10[%c1_23, %c17_24, %c0_25] : memref<18x24x128xf32, #tpu.memory_space<vmem>>, vector<16x1x128xf32>
    tpu.vector_store %arg10[%c1_23, %c17_24, %c0_25], %22 {strides = array<i32>} : memref<18x24x128xf32, #tpu.memory_space<vmem>>, vector<16x1x128xf32>,
    %cst_26 = arith.constant 0.000000e+00 : f32
    %24 = vector.broadcast %cst_26 : f32 to vector<256x128xf32>
    %c0_27 = arith.constant 0 : index
    %c0_28 = arith.constant 0 : index
    %c0_29 = arith.constant 0 : index
    %25 = vector.load %arg10[%c0_27, %c0_28, %c0_29] : memref<18x24x128xf32, #tpu.memory_space<vmem>>, vector<16x16x128xf32>
    %c0_30 = arith.constant 0 : index
    %c1_31 = arith.constant 1 : index
    %c0_32 = arith.constant 0 : index
    %26 = vector.load %arg10[%c0_30, %c1_31, %c0_32] : memref<18x24x128xf32, #tpu.memory_space<vmem>>, vector<16x16x128xf32>
    %c0_33 = arith.constant 0 : index
    %c2 = arith.constant 2 : index
    %c0_34 = arith.constant 0 : index
    %27 = vector.load %arg10[%c0_33, %c2, %c0_34] : memref<18x24x128xf32, #tpu.memory_space<vmem>>, vector<16x16x128xf32>
    %28 = vector.shape_cast %25 : vector<16x16x128xf32> to vector<256x128xf32>
    %29 = vector.shape_cast %26 : vector<16x16x128xf32> to vector<256x128xf32>
    %30 = vector.shape_cast %27 : vector<16x16x128xf32> to vector<256x128xf32>
    %31 = tpu.concatenate %28, %29, %30 in 1 : vector<256x128xf32>, vector<256x128xf32>, vector<256x128xf32> -> vector<256x384xf32>
    %c0_35 = arith.constant 0 : index
    %c0_36 = arith.constant 0 : index
    %c0_37 = arith.constant 0 : index
    %32 = vector.load %arg4[%c0_35, %c0_36, %c0_37] : memref<3x384x128xf32, #tpu.memory_space<vmem>>, vector<1x384x128xf32>
    %33 = vector.shape_cast %32 : vector<1x384x128xf32> to vector<384x128xf32>
    %cst_38 = arith.constant dense<0.000000e+00> : vector<256x128xf32>
    %34 = tpu.matmul %31, %33, %cst_38 {dimension_numbers = #tpu.dot_dimension_numbers<[1], [0], [0], [1], [0, 0, 1, 1], [], []>} : vector<256x384xf32>, vector<384x128xf32>, vector<256x128xf32> -> vector<256x128xf32>
    %35 = arith.addf %24, %34 : vector<256x128xf32>
    %c1_39 = arith.constant 1 : index
    %c0_40 = arith.constant 0 : index
    %c0_41 = arith.constant 0 : index
    %36 = vector.load %arg10[%c1_39, %c0_40, %c0_41] : memref<18x24x128xf32, #tpu.memory_space<vmem>>, vector<16x16x128xf32>
    %c1_42 = arith.constant 1 : index
    %c1_43 = arith.constant 1 : index
    %c0_44 = arith.constant 0 : index
    %37 = vector.load %arg10[%c1_42, %c1_43, %c0_44] : memref<18x24x128xf32, #tpu.memory_space<vmem>>, vector<16x16x128xf32>
    %c1_45 = arith.constant 1 : index
    %c2_46 = arith.constant 2 : index
    %c0_47 = arith.constant 0 : index
    %38 = vector.load %arg10[%c1_45, %c2_46, %c0_47] : memref<18x24x128xf32, #tpu.memory_space<vmem>>, vector<16x16x128xf32>
    %39 = vector.shape_cast %36 : vector<16x16x128xf32> to vector<256x128xf32>
    %40 = vector.shape_cast %37 : vector<16x16x128xf32> to vector<256x128xf32>
    %41 = vector.shape_cast %38 : vector<16x16x128xf32> to vector<256x128xf32>
    %42 = tpu.concatenate %39, %40, %41 in 1 : vector<256x128xf32>, vector<256x128xf32>, vector<256x128xf32> -> vector<256x384xf32>
    %c1_48 = arith.constant 1 : index
    %c0_49 = arith.constant 0 : index
    %c0_50 = arith.constant 0 : index
    %43 = vector.load %arg4[%c1_48, %c0_49, %c0_50] : memref<3x384x128xf32, #tpu.memory_space<vmem>>, vector<1x384x128xf32>
    %44 = vector.shape_cast %43 : vector<1x384x128xf32> to vector<384x128xf32>
    %cst_51 = arith.constant dense<0.000000e+00> : vector<256x128xf32>
    %45 = tpu.matmul %42, %44, %cst_51 {dimension_numbers = #tpu.dot_dimension_numbers<[1], [0], [0], [1], [0, 0, 1, 1], [], []>} : vector<256x384xf32>, vector<384x128xf32>, vector<256x128xf32> -> vector<256x128xf32>
    %46 = arith.addf %35, %45 : vector<256x128xf32>
    %c2_52 = arith.constant 2 : index
    %c0_53 = arith.constant 0 : index
    %c0_54 = arith.constant 0 : index
    %47 = vector.load %arg10[%c2_52, %c0_53, %c0_54] : memref<18x24x128xf32, #tpu.memory_space<vmem>>, vector<16x16x128xf32>
    %c2_55 = arith.constant 2 : index
    %c1_56 = arith.constant 1 : index
    %c0_57 = arith.constant 0 : index
    %48 = vector.load %arg10[%c2_55, %c1_56, %c0_57] : memref<18x24x128xf32, #tpu.memory_space<vmem>>, vector<16x16x128xf32>
    %c2_58 = arith.constant 2 : index
    %c2_59 = arith.constant 2 : index
    %c0_60 = arith.constant 0 : index
    %49 = vector.load %arg10[%c2_58, %c2_59, %c0_60] : memref<18x24x128xf32, #tpu.memory_space<vmem>>, vector<16x16x128xf32>
    %50 = vector.shape_cast %47 : vector<16x16x128xf32> to vector<256x128xf32>
    %51 = vector.shape_cast %48 : vector<16x16x128xf32> to vector<256x128xf32>
    %52 = vector.shape_cast %49 : vector<16x16x128xf32> to vector<256x128xf32>
    %53 = tpu.concatenate %50, %51, %52 in 1 : vector<256x128xf32>, vector<256x128xf32>, vector<256x128xf32> -> vector<256x384xf32>
    %c2_61 = arith.constant 2 : index
    %c0_62 = arith.constant 0 : index
    %c0_63 = arith.constant 0 : index
    %54 = vector.load %arg4[%c2_61, %c0_62, %c0_63] : memref<3x384x128xf32, #tpu.memory_space<vmem>>, vector<1x384x128xf32>
    %55 = vector.shape_cast %54 : vector<1x384x128xf32> to vector<384x128xf32>
    %cst_64 = arith.constant dense<0.000000e+00> : vector<256x128xf32>
    %56 = tpu.matmul %53, %55, %cst_64 {dimension_numbers = #tpu.dot_dimension_numbers<[1], [0], [0], [1], [0, 0, 1, 1], [], []>} : vector<256x384xf32>, vector<384x128xf32>, vector<256x128xf32> -> vector<256x128xf32>
    %57 = arith.addf %46, %56 : vector<256x128xf32>
    %c0_65 = arith.constant 0 : index
    %c0_66 = arith.constant 0 : index
    %58 = vector.load %arg5[%c0_65, %c0_66] : memref<1x128xf32, #tpu.memory_space<vmem>>, vector<1x128xf32>
    %59 = vector.broadcast %58 : vector<1x128xf32> to vector<256x128xf32>
    %60 = arith.addf %57, %59 : vector<256x128xf32>
    %cst_67 = arith.constant 0.000000e+00 : f32
    %61 = vector.broadcast %cst_67 : f32 to vector<256x128xf32>
    %62 = arith.maximumf %60, %61 : vector<256x128xf32>
    %c0_68 = arith.constant 0 : index
    %c0_69 = arith.constant 0 : index
    %63 = vector.load %arg6[%c0_68, %c0_69] : memref<128x128xf32, #tpu.memory_space<vmem>>, vector<128x128xf32>
    %cst_70 = arith.constant dense<0.000000e+00> : vector<256x128xf32>
    %64 = tpu.matmul %62, %63, %cst_70 {dimension_numbers = #tpu.dot_dimension_numbers<[1], [0], [0], [1], [0, 0, 1, 1], [], []>} : vector<256x128xf32>, vector<128x128xf32>, vector<256x128xf32> -> vector<256x128xf32>
    %c0_71 = arith.constant 0 : index
    %c0_72 = arith.constant 0 : index
    %65 = vector.load %arg7[%c0_71, %c0_72] : memref<1x128xf32, #tpu.memory_space<vmem>>, vector<1x128xf32>
    %66 = vector.broadcast %65 : vector<1x128xf32> to vector<256x128xf32>
    %67 = arith.addf %64, %66 : vector<256x128xf32>
    %68 = arith.addf %67, %13 : vector<256x128xf32>
    %cst_73 = arith.constant 0.000000e+00 : f32
    %69 = vector.broadcast %cst_73 : f32 to vector<256x128xf32>
    %70 = arith.maximumf %68, %69 : vector<256x128xf32>
    %c0_74 = arith.constant 0 : index
    %c0_75 = arith.constant 0 : index
    %c0_76 = arith.constant 0 : index
    %71 = vector.load %arg9[%c0_74, %c0_75, %c0_76] : memref<1x256x128xf32, #tpu.memory_space<vmem>>, vector<1x256x128xf32>
    %72 = vector.shape_cast %71 : vector<1x256x128xf32> to vector<256x128xf32>
    %73 = vector.shape_cast %70 : vector<256x128xf32> to vector<1x256x128xf32>
    tpu.vector_store %arg9[%c0_74, %c0_75, %c0_76], %73 {strides = array<i32>} : memref<1x256x128xf32, #tpu.memory_space<vmem>>, vector<1x256x128xf32>,
    return
  }
  func.func @transform_0(%arg0: i32) -> (i32, i32, i32) {
    %c0_i32 = arith.constant 0 : i32
    %c0_i32_0 = arith.constant 0 : i32
    %c0_i32_1 = arith.constant 0 : i32
    return %arg0, %c0_i32, %c0_i32_0 : i32, i32, i32
  }
  func.func @transform_1(%arg0: i32) -> (i32, i32) {
    %c0_i32 = arith.constant 0 : i32
    %c0_i32_0 = arith.constant 0 : i32
    %c0_i32_1 = arith.constant 0 : i32
    return %c0_i32, %c0_i32_0 : i32, i32
  }
  func.func @transform_2(%arg0: i32) -> (i32, i32) {
    %c0_i32 = arith.constant 0 : i32
    %c0_i32_0 = arith.constant 0 : i32
    %c0_i32_1 = arith.constant 0 : i32
    return %c0_i32, %c0_i32_0 : i32, i32
  }
  func.func @transform_3(%arg0: i32) -> (i32, i32, i32) {
    %c0_i32 = arith.constant 0 : i32
    %c0_i32_0 = arith.constant 0 : i32
    %c0_i32_1 = arith.constant 0 : i32
    %c0_i32_2 = arith.constant 0 : i32
    return %c0_i32, %c0_i32_0, %c0_i32_1 : i32, i32, i32
  }
  func.func @transform_4(%arg0: i32) -> (i32, i32) {
    %c0_i32 = arith.constant 0 : i32
    %c0_i32_0 = arith.constant 0 : i32
    %c0_i32_1 = arith.constant 0 : i32
    return %c0_i32, %c0_i32_0 : i32, i32
  }
  func.func @transform_5(%arg0: i32) -> (i32, i32) {
    %c0_i32 = arith.constant 0 : i32
    %c0_i32_0 = arith.constant 0 : i32
    %c0_i32_1 = arith.constant 0 : i32
    return %c0_i32, %c0_i32_0 : i32, i32
  }
  func.func @transform_6(%arg0: i32) -> (i32, i32) {
    %c0_i32 = arith.constant 0 : i32
    %c0_i32_0 = arith.constant 0 : i32
    %c0_i32_1 = arith.constant 0 : i32
    return %c0_i32, %c0_i32_0 : i32, i32
  }
  func.func @transform_7(%arg0: i32) -> (i32, i32) {
    %c0_i32 = arith.constant 0 : i32
    %c0_i32_0 = arith.constant 0 : i32
    %c0_i32_1 = arith.constant 0 : i32
    return %c0_i32, %c0_i32_0 : i32, i32
  }
  func.func @transform_8(%arg0: i32) -> (i32, i32, i32) {
    %c0_i32 = arith.constant 0 : i32
    %c0_i32_0 = arith.constant 0 : i32
    %c0_i32_1 = arith.constant 0 : i32
    return %arg0, %c0_i32, %c0_i32_0 : i32, i32, i32
  }
}

</mosaic_0001>

<bundles_post_ra>
// kernel: residual_block_forward_nhwc.1
= control target key start
LH: loop header
LB: loop body
LE: loop exit
PB: predicated region body
PF: predicated region fallthrough
CT: control target
= control target key end

     0   :  { %13 = vsyncpa [#allocation4], 0  ;;  %s4941_s0 = inlined_call_operand.vmem [shape: f32[2,256,4], index: 0, kind: input, shape index: {}]   ;;  %s4942_s1 = inlined_call_operand.vmem [shape: f32[4,256], index: 1, kind: input, shape index: {}]   ;;  %s4943_s2 = inlined_call_operand.vmem [shape: f32[1,128], index: 2, kind: input, shape index: {}]   ;;  %s4944_s3 = inlined_call_operand.vmem [shape: f32[3,384,128], index: 3, kind: input, shape index: {}]   ;;  %s4945_s4 = inlined_call_operand.vmem [shape: f32[1,128], index: 4, kind: input, shape index: {}]   ;;  %s4946_s5 = inlined_call_operand.vmem [shape: f32[128,128], index: 5, kind: input, shape index: {}]   ;;  %s4947_s6 = inlined_call_operand.vmem [shape: f32[1,128], index: 6, kind: input, shape index: {}]   ;;  %s4948_s7 = inlined_call_operand.vmem [shape: f32[1,128], index: 7, kind: input, shape index: {}]   ;;  %s4949_s8 = inlined_call_operand.hbm [shape: f32[2,256,128], index: 8, kind: output, shape index: {}]  }
   0x1   :  { %15 = vsyncpa [#allocation4 + $0x1], 0  ;;  %s3072_s27 = smov 0   ;;  %s3074_s28 = smov 0  }
   0x2   :  { %s3076_s29 = smov 0   ;;  %s3078_s30 = smov 0  }
   0x3 LB: > { %s3093_s9 = sadd.s32 4294967295, %s3022_s30   ;;  %s2704_s10 = sadd.s32 4294967294, %s3022_s30   ;;  %s3022_s30 = sphi %s3078_s30, %s5087_s30   ;;  %s3018_s29 = sphi %s3076_s29, %s5086_s29   ;;  %s3014_s28 = sphi %s3074_s28, %s5085_s28   ;;  %s3010_s27 = sphi %s3072_s27, %s5084_s27  }
   0x4   : > { %s3097_s11 = sadd.s32 1, %s3022_s30   ;;  %s201_s12 = sadd.s32 1, %s3018_s29 }
   0x5   : > { %s198_s13 = ssub.s32 %s3022_s30, %s3097_s11  ;;  %p211_p0 = scmp.ne.s32.totalorder %s3018_s29, %s3014_s28 }
   0x6   : > { %p199_p1 = scmp.eq.s32.totalorder %s198_s13, 0  ;;  %p212_p2 = scmp.eq.s32.totalorder %s3093_s9, 1 }
   0x7   : > { %p217_p3 = scmp.ne.s32.totalorder %s3014_s28, %s3010_s27  ;;  %p218_p4 = scmp.eq.s32.totalorder %s2704_s10, 1 }
   0x8   : > { %s3108_s14 = scalar_select %p199_p1, %s3018_s29, %s201_s12  }
   0x9   : > { %p3110_p5 = por %p212_p2, %p211_p0  ;;  %p3114_p6 = por %p218_p4, %p217_p3 }
   0xa   : > { %p2707_p7 = scmp.ge.s32.totalorder %s3022_s30, 1  ;;  %p265_p8 = scmp.lt.s32.totalorder %s3022_s30, 3 }
   0xc   : > { %p266_p9 = pnand %p2707_p7, %p265_p8 }
   0xe   : > { %269 = sbr.rel (%p266_p9) target bundleno = 1202 (0x4b2), region = 52 }
  0x13   : > { %v336_v0 = vld [vmem:[%s4942_s1] sm:$0xff]  ;;  %p299_p10 = scmp.lt.s32.totalorder %s3093_s9, 1  ;;  %vm438_vm0 = vcmask 1043456   ;;  %vm341_vm1 = vcmask 31744   ;;  %v2808_v12 = vld [vmem:[%s4944_s3 + $0x278] sm:$0xff]  ;;  %v2807_v13 = vld [vmem:[%s4944_s3 + $0x270] sm:$0xff] }
  0x14   : > { %338 = vst [vmem:[#allocation1] ss:$2 sm:$0xff] %v336_v0  ;;  %1247 = vmatpush.msra.mxu3 %v2808_v12  ;;  %v2806_v15 = vld [vmem:[%s4944_s3 + $0x268] sm:$0xff]  ;;  %v2792_v16 = vld [vmem:[%s4944_s3 + $0x1f8] sm:$0xff]  ;;  %v2791_v17 = vld [vmem:[%s4944_s3 + $0x1f0] sm:$0xff]  ;;  %v3024_v45 = vmov 0.0  }
  0x15   : > { %s300_s19 = scalar_select %p299_p10, %s3093_s9, 1  ;;  %1134 = vmatpush.msra.mxu2 %v2792_v16  ;;  %v2805_v18 = vld [vmem:[%s4944_s3 + $0x260] sm:$0xff]  ;;  %v2790_v19 = vld [vmem:[%s4944_s3 + $0x1e8] sm:$0xff]  ;;  %v2804_v20 = vld [vmem:[%s4944_s3 + $0x258] sm:$0xff]  ;;  %813 = vst [vmem:[#allocation2 + $0x18] sm:$0x1] %v3024_v45 }
  0x16   : > { %1248 = vmatpush.msra.mxu3 %v2807_v13  ;;  %v2803_v21 = vld [vmem:[%s4944_s3 + $0x250] sm:$0xff]  ;;  %v2802_v23 = vld [vmem:[%s4944_s3 + $0x248] sm:$0xff]  ;;  %v2789_v24 = vld [vmem:[%s4944_s3 + $0x1e0] sm:$0xff]  ;;  %806 = vst [vmem:[#allocation2] sm:$0xff] %v3024_v45  ;;  %s296_s26 = sand.u32 1, %s3014_s28   ;;  %s2879_s18 = sshll.u32 %s3093_s9, 8 }
  0x17   : > { %s2878_s20 = sshll.u32 %s300_s19, 8  ;;  %1135 = vmatpush.msra.mxu2 %v2791_v17  ;;  %v2788_v25 = vld [vmem:[%s4944_s3 + $0x1d8] sm:$0xff]  ;;  %v2801_v26 = vld [vmem:[%s4944_s3 + $0x240] sm:$0xff]  ;;  %v2787_v27 = vld [vmem:[%s4944_s3 + $0x1d0] sm:$0xff]  ;;  %807 = vst [vmem:[#allocation2 + $0x8] sm:$0xff] %v3024_v45  ;;  %s2708_s13 = sshll.u32 %s296_s26, 8 }
  0x18   : > { %s3128_s23 = scalar_lea.vmem %s4941_s0, %s2878_s20  ;;  %1249 = vmatpush.msra.mxu3 %v2806_v15  ;;  %v2800_v28 = vld [vmem:[%s4944_s3 + $0x238] sm:$0xff]  ;;  %v2786_v29 = vld [vmem:[%s4944_s3 + $0x1c8] sm:$0xff]  ;;  %v2799_v30 = vld [vmem:[%s4944_s3 + $0x230] sm:$0xff]  ;;  %808 = vst [vmem:[#allocation2 + $0x10] sm:$0x3] %v3024_v45  ;;  %s4731_s17 = scalar_lea.vmem [#allocation3], %s2708_s13 }
  0x19   : > { %v304_v1 = vld [vmem:[%s3128_s23] sm:$0xff]  ;;  %v305_v4 = vld [vmem:[%s3128_s23 + $0x8] sm:$0xff]  ;;  %v306_v5 = vld [vmem:[%s3128_s23 + $0x10] sm:$0xff]  ;;  %1136 = vmatpush.msra.mxu2 %v2790_v19  ;;  %810 = vst [vmem:[#allocation2 + $0x198] sm:$0xff] %v3024_v45  ;;  %s2638_s20 = scalar_lea.hbm %s4949_s8, %s2879_s18  ;;  %s2639_s21 = sshll.u32 %s4731_s17, 4  ;;  %s2640_s21 = int_to_ptr.vmem [resolvable:$true] %s2639_s21 }
  0x1a   : > { %v307_v6 = vld [vmem:[%s3128_s23 + $0x18] sm:$0xff]  ;;  %v308_v7 = vld [vmem:[%s3128_s23 + $0x20] sm:$0xff]  ;;  %v309_v8 = vld [vmem:[%s3128_s23 + $0x28] sm:$0xff]  ;;  %1250 = vmatpush.msra.mxu3 %v2805_v18  ;;  %811 = vst [vmem:[#allocation2 + $0x1a0] sm:$0xff] %v3024_v45  ;;  %s2641_s22 = sshll.u32 %s2638_s20, 4  ;;  %s2627_s9 = scalar_lea.sflag [#allocation4], %s296_s26  ;;  %s2642_s22 = int_to_ptr.hbm [resolvable:$true] %s2641_s22 }
  0x1b   : > { %v339_v2 = vld.sshfl [vmem:[#allocation1] sm:$0xff pattern:$0x75316420]  ;;  %v340_v3 = vld.sshfl [vmem:[#allocation1 + $0x8] sm:$0xff pattern:$0x75316420]  ;;  %1137 = vmatpush.msra.mxu2 %v2789_v24 }
  0x1c   : > { %2711 = vmatpush.msk.msra.mxu0 %vm438_vm0, %v339_v2  ;;  %2744 = vmatpush.msk.msra.mxu1 %vm438_vm0, %v340_v3  ;;  %v310_v9 = vld [vmem:[%s3128_s23 + $0x30] sm:$0xff]  ;;  %v311_v10 = vld [vmem:[%s3128_s23 + $0x38] sm:$0xff]  ;;  %v312_v11 = vld [vmem:[%s3128_s23 + $0x40] sm:$0xff]  ;;  %812 = vst [vmem:[#allocation2 + $0x1a8] sm:$0x3] %v3024_v45  ;;  %s2974_s24 = sshra.s32 %s2642_s22, 4  ;;  %s2975_s24 = int_to_ptr.hbm [resolvable:$true] %s2974_s24 }
  0x1d   : > { %2712 = vmatmul.msk.f32.vlgmr.msra.gmra.mxu0 %vm341_vm1, %v304_v1  ;;  %2745 = vmatmul.msk.f32.vlgmr.msra.gmra.mxu1 %vm341_vm1, %v304_v1  ;;  %v313_v14 = vld [vmem:[%s3128_s23 + $0x48] sm:$0xff]  ;;  %v314_v22 = vld [vmem:[%s3128_s23 + $0x50] sm:$0xff]  ;;  %v315_v31 = vld [vmem:[%s3128_s23 + $0x58] sm:$0xff]  ;;  %814 = vst [vmem:[#allocation2 + $0x30] sm:$0x1] %v3024_v45  ;;  %s2976_s25 = scalar_lea.hbm %s2975_s24, 256  ;;  %p2981_p0 = scmp.lt.s32.totalorder %s2975_s24, %s4949_s8 }
  0x1e   : > { %1251 = vmatpush.msra.mxu3 %v2804_v20  ;;  %1138 = vmatpush.msra.mxu2 %v2788_v25  ;;  %v2798_v32 = vld [vmem:[%s4944_s3 + $0x228] sm:$0xff]  ;;  %v2785_v33 = vld [vmem:[%s4944_s3 + $0x1c0] sm:$0xff]  ;;  %v2784_v34 = vld [vmem:[%s4944_s3 + $0x1b8] sm:$0xff]  ;;  %815 = vst [vmem:[#allocation2 + $0x48] sm:$0x1] %v3024_v45  ;;  %p2977_p11 = scmp.ne.s32.totalorder %s2975_s24, %s2976_s25  ;;  %s2980_s13 = scalar_lea.hbm %s4949_s8, 512 }
  0x1f   : > { %v2797_v35 = vld [vmem:[%s4944_s3 + $0x220] sm:$0xff]  ;;  %v2796_v36 = vld [vmem:[%s4944_s3 + $0x218] sm:$0xff]  ;;  %v2783_v37 = vld [vmem:[%s4944_s3 + $0x1b0] sm:$0xff]  ;;  %816 = vst [vmem:[#allocation2 + $0x60] sm:$0x1] %v3024_v45  ;;  %p2982_p1 = scmp.lt.s32.totalorder %s2980_s13, %s2976_s25 }
  0x20   : > { %1252 = vmatpush.msra.mxu3 %v2803_v21  ;;  %1139 = vmatpush.msra.mxu2 %v2787_v27  ;;  %v2795_v38 = vld [vmem:[%s4944_s3 + $0x210] sm:$0xff]  ;;  %v316_v39 = vld [vmem:[%s3128_s23 + $0x60] sm:$0xff]  ;;  %v2782_v40 = vld [vmem:[%s4944_s3 + $0x1a8] sm:$0xff]  ;;  %817 = vst [vmem:[#allocation2 + $0x78] sm:$0x1] %v3024_v45  ;;  %p2978_p12 = pnand %p2977_p11, %p3110_p5 }
  0x21   : > { %v2794_v41 = vld [vmem:[%s4944_s3 + $0x208] sm:$0xff]  ;;  %v2781_v42 = vld [vmem:[%s4944_s3 + $0x1a0] sm:$0xff]  ;;  %v2780_v44 = vld [vmem:[%s4944_s3 + $0x198] sm:$0xff]  ;;  %818 = vst [vmem:[#allocation2 + $0x90] sm:$0x1] %v3024_v45  ;;  %p2983_p2 = por %p2982_p1, %p2981_p0 }
  0x22   : > { %1253 = vmatpush.msra.mxu3 %v2802_v23  ;;  %1140 = vmatpush.msra.mxu2 %v2786_v29  ;;  %v2793_v43 = vld [vmem:[%s4944_s3 + $0x200] sm:$0xff]  ;;  %v2779_v46 = vld [vmem:[%s4944_s3 + $0x190] sm:$0xff]  ;;  %v317_v47 = vld [vmem:[%s3128_s23 + $0x68] sm:$0xff]  ;;  %819 = vst [vmem:[#allocation2 + $0xa8] sm:$0x1] %v3024_v45  ;;  %p2979_p13 = pneg %p2978_p12 }
  0x23   : > { %v2778_v48 = vld [vmem:[%s4944_s3 + $0x188] sm:$0xff]  ;;  %v2777_v49 = vld [vmem:[%s4944_s3 + $0x180] sm:$0xff]  ;;  %v2824_v50 = vld [vmem:[%s4944_s3 + $0x2f8] sm:$0xff]  ;;  %820 = vst [vmem:[#allocation2 + $0xc0] sm:$0x1] %v3024_v45 }
  0x24   : > { %1254 = vmatpush.msra.mxu3 %v2801_v26  ;;  %1141 = vmatpush.msra.mxu2 %v2785_v33  ;;  %v956_v51 = vld [vmem:[%s4944_s3 + $0x78] sm:$0xff]  ;;  %v318_v53 = vld [vmem:[%s3128_s23 + $0x70] sm:$0xff]  ;;  %821 = vst [vmem:[#allocation2 + $0xd8] sm:$0x1] %v3024_v45  ;;  %v3309_v55 = vld [vmem:[%s4943_s2] ss:$0 sm:$0xff]  ;;  %p2984_p3 = pnand %p2983_p2, %p2979_p13 }
  0x25   : > { %2713 = vmatmul.msk.f32.gmra.mxu0 %vm341_vm1, %v305_v4  ;;  %2746 = vmatmul.msk.f32.gmra.mxu1 %vm341_vm1, %v305_v4  ;;  %v972_v52 = vld [vmem:[%s4944_s3 + $0xf8] sm:$0xff]  ;;  %822 = vst [vmem:[#allocation2 + $0xf0] sm:$0x1] %v3024_v45  ;;  %v2823_v56 = vld [vmem:[%s4944_s3 + $0x2f0] sm:$0xff]  ;;  %v320_v61 = vld [vmem:[%s3128_s23 + $0x80] sm:$0xff] }
  0x26   : > { %1255 = vmatpush.msra.mxu3 %v2800_v28  ;;  %1142 = vmatpush.msra.mxu2 %v2784_v34  ;;  %823 = vst [vmem:[#allocation2 + $0x108] sm:$0x1] %v3024_v45  ;;  %v319_v54 = vld [vmem:[%s3128_s23 + $0x78] sm:$0xff]  ;;  %v955_v57 = vld [vmem:[%s4944_s3 + $0x70] sm:$0xff]  ;;  %v321_v2 = vld [vmem:[%s3128_s23 + $0x88] sm:$0xff] }
  0x27   : > { %1360 = vmatpush.msrb.mxu0 %v2824_v50  ;;  %1473 = vmatpush.msrb.mxu1 %v956_v51  ;;  %824 = vst [vmem:[#allocation2 + $0x120] sm:$0x1] %v3024_v45  ;;  %v971_v58 = vld [vmem:[%s4944_s3 + $0xf0] sm:$0xff]  ;;  %v323_v17 = vld [vmem:[%s3128_s23 + $0x98] sm:$0xff]  ;;  %v2821_v21 = vld [vmem:[%s4944_s3 + $0x2e0] sm:$0xff] }
  0x28   : > { %1256 = vmatpush.msra.mxu3 %v2799_v30  ;;  %1143 = vmatpush.msra.mxu2 %v2783_v37  ;;  %825 = vst [vmem:[#allocation2 + $0x138] sm:$0x1] %v3024_v45  ;;  %v969_v23 = vld [vmem:[%s4944_s3 + $0xe0] sm:$0xff]  ;;  %v952_v37 = vld [vmem:[%s4944_s3 + $0x58] sm:$0xff] }
  0x29   : > { %826 = vst [vmem:[#allocation2 + $0x150] sm:$0x1] %v3024_v45  ;;  %1361 = vmatpush.msrb.mxu0 %v2823_v56  ;;  %1474 = vmatpush.msrb.mxu1 %v955_v57  ;;  %v324_v26 = vld [vmem:[%s3128_s23 + $0xa0] sm:$0xff] }
  0x2a   : > { %1257 = vmatpush.msra.mxu3 %v2798_v32  ;;  %1144 = vmatpush.msra.mxu2 %v2782_v40  ;;  %827 = vst [vmem:[#allocation2 + $0x168] sm:$0x1] %v3024_v45  ;;  %v325_v32 = vld [vmem:[%s3128_s23 + $0xa8] sm:$0xff] }
  0x2b   : > { %828 = vst [vmem:[#allocation2 + $0x180] sm:$0x1] %v3024_v45 }
  0x2c   : > { %1258 = vmatpush.msra.mxu3 %v2797_v35  ;;  %1145 = vmatpush.msra.mxu2 %v2781_v42  ;;  %829 = vst [vmem:[#allocation2 + $0x29] sm:$0x1] %v3024_v45 }
  0x2d   : > { %2714 = vmatmul.msk.f32.gmra.mxu0 %vm341_vm1, %v306_v5  ;;  %2747 = vmatmul.msk.f32.gmra.mxu1 %vm341_vm1, %v306_v5  ;;  %830 = vst [vmem:[#allocation2 + $0x41] sm:$0x1] %v3024_v45 }
  0x2e   : > { %1259 = vmatpush.msra.mxu3 %v2796_v36  ;;  %1146 = vmatpush.msra.mxu2 %v2780_v44  ;;  %831 = vst [vmem:[#allocation2 + $0x59] sm:$0x1] %v3024_v45  ;;  %v2820_v36 = vld [vmem:[%s4944_s3 + $0x2d8] sm:$0xff] }
  0x2f   : > { %832 = vst [vmem:[#allocation2 + $0x71] sm:$0x1] %v3024_v45 }
  0x30   : > { %1260 = vmatpush.msra.mxu3 %v2795_v38  ;;  %1147 = vmatpush.msra.mxu2 %v2779_v46  ;;  %833 = vst [vmem:[#allocation2 + $0x89] sm:$0x1] %v3024_v45  ;;  %v968_v38 = vld [vmem:[%s4944_s3 + $0xd8] sm:$0xff] }
  0x31   : > { %834 = vst [vmem:[#allocation2 + $0xa1] sm:$0x1] %v3024_v45 }
  0x32   : > { %1261 = vmatpush.msra.mxu3 %v2794_v41  ;;  %1148 = vmatpush.msra.mxu2 %v2778_v48  ;;  %835 = vst [vmem:[#allocation2 + $0xb9] sm:$0x1] %v3024_v45  ;;  %v326_v41 = vld [vmem:[%s3128_s23 + $0xb0] sm:$0xff]  ;;  %v327_v48 = vld [vmem:[%s3128_s23 + $0xb8] sm:$0xff] }
  0x33   : > { %836 = vst [vmem:[#allocation2 + $0xd1] sm:$0x1] %v3024_v45 }
  0x34   : > { %1262 = vmatpush.msra.mxu3 %v2793_v43  ;;  %1149 = vmatpush.msra.mxu2 %v2777_v49  ;;  %837 = vst [vmem:[#allocation2 + $0xe9] sm:$0x1] %v3024_v45 }
  0x35   : > { %2715 = vmatmul.msk.f32.gmra.mxu0 %vm341_vm1, %v307_v6  ;;  %2748 = vmatmul.msk.f32.gmra.mxu1 %vm341_vm1, %v307_v6  ;;  %838 = vst [vmem:[#allocation2 + $0x101] sm:$0x1] %v3024_v45  ;;  %v2822_v6 = vld [vmem:[%s4944_s3 + $0x2e8] sm:$0xff] }
  0x36   : > { %1586 = vmatpush.msrb.mxu2 %v972_v52  ;;  %839 = vst [vmem:[#allocation2 + $0x119] sm:$0x1] %v3024_v45  ;;  %1362 = vmatpush.msrb.mxu0 %v2822_v6  ;;  %v2819_v52 = vld [vmem:[%s4944_s3 + $0x2d0] sm:$0xff] }
  0x37   : > { %840 = vst [vmem:[#allocation2 + $0x131] sm:$0x1] %v3024_v45 }
  0x38   : > { %1587 = vmatpush.msrb.mxu2 %v971_v58  ;;  %841 = vst [vmem:[#allocation2 + $0x149] sm:$0x1] %v3024_v45  ;;  %1363 = vmatpush.msrb.mxu0 %v2821_v21  ;;  %v328_v58 = vld [vmem:[%s3128_s23 + $0xc0] sm:$0xff]  ;;  %v2816_v21 = vld [vmem:[%s4944_s3 + $0x2b8] sm:$0xff] }
  0x39   : > { %842 = vst [vmem:[#allocation2 + $0x161] sm:$0x1] %v3024_v45 }
  0x3a   : > { %843 = vst [vmem:[#allocation2 + $0x179] sm:$0x1] %v3024_v45  ;;  %1364 = vmatpush.msrb.mxu0 %v2820_v36  ;;  %v2813_v36 = vld [vmem:[%s4944_s3 + $0x2a0] sm:$0xff] }
  0x3b   : > { %844 = vst [vmem:[#allocation2 + $0x191] sm:$0x1] %v3024_v45 }
  0x3c   : > { %1365 = vmatpush.msrb.mxu0 %v2819_v52 }
  0x3d   : > { %2716 = vmatmul.msk.f32.gmra.mxu0 %vm341_vm1, %v308_v7  ;;  %2749 = vmatmul.msk.f32.gmra.mxu1 %vm341_vm1, %v308_v7  ;;  %v954_v7 = vld [vmem:[%s4944_s3 + $0x68] sm:$0xff] }
  0x3e   : > { %1475 = vmatpush.msrb.mxu1 %v954_v7  ;;  %v2818_v7 = vld [vmem:[%s4944_s3 + $0x2c8] sm:$0xff] }
  0x3f   : > { %1366 = vmatpush.msrb.mxu0 %v2818_v7 }
  0x45   : > { %2717 = vmatmul.msk.f32.gmra.mxu0 %vm341_vm1, %v309_v8  ;;  %2750 = vmatmul.msk.f32.gmra.mxu1 %vm341_vm1, %v309_v8  ;;  %v970_v8 = vld [vmem:[%s4944_s3 + $0xe8] sm:$0xff] }
  0x46   : > { %1588 = vmatpush.msrb.mxu2 %v970_v8  ;;  %v950_v8 = vld [vmem:[%s4944_s3 + $0x48] sm:$0xff] }
  0x48   : > { %1589 = vmatpush.msrb.mxu2 %v969_v23 }
  0x4a   : > { %1590 = vmatpush.msrb.mxu2 %v968_v38 }
  0x4d   : > { %2718 = vmatmul.msk.f32.gmra.mxu0 %vm341_vm1, %v310_v9  ;;  %2751 = vmatmul.msk.f32.gmra.mxu1 %vm341_vm1, %v310_v9 }
  0x55   : > { %2719 = vmatmul.msk.f32.gmra.mxu0 %vm341_vm1, %v311_v10  ;;  %2752 = vmatmul.msk.f32.gmra.mxu1 %vm341_vm1, %v311_v10 }
  0x5d   : > { %2720 = vmatmul.msk.f32.gmra.mxu0 %vm341_vm1, %v312_v11  ;;  %2753 = vmatmul.msk.f32.gmra.mxu1 %vm341_vm1, %v312_v11  ;;  %v322_v11 = vld [vmem:[%s3128_s23 + $0x90] sm:$0xff] }
  0x65   : > { %2721 = vmatmul.msk.f32.gmra.mxu0 %vm341_vm1, %v313_v14  ;;  %2754 = vmatmul.msk.f32.gmra.mxu1 %vm341_vm1, %v313_v14 }
  0x6d   : > { %2722 = vmatmul.msk.f32.gmra.mxu0 %vm341_vm1, %v314_v22  ;;  %2755 = vmatmul.msk.f32.gmra.mxu1 %vm341_vm1, %v314_v22  ;;  %v953_v22 = vld [vmem:[%s4944_s3 + $0x60] sm:$0xff] }
  0x6e   : > { %1476 = vmatpush.msrb.mxu1 %v953_v22  ;;  %v948_v22 = vld [vmem:[%s4944_s3 + $0x38] sm:$0xff] }
  0x70   : > { %1477 = vmatpush.msrb.mxu1 %v952_v37  ;;  %v945_v37 = vld [vmem:[%s4944_s3 + $0x20] sm:$0xff] }
  0x75   : > { %2723 = vmatmul.msk.f32.gmra.mxu0 %vm341_vm1, %v315_v31  ;;  %2756 = vmatmul.msk.f32.gmra.mxu1 %vm341_vm1, %v315_v31 }
  0x7d   : > { %2724 = vmatmul.msk.f32.gmra.mxu0 %vm341_vm1, %v316_v39  ;;  %2757 = vmatmul.msk.f32.gmra.mxu1 %vm341_vm1, %v316_v39 }
  0x85   : > { %2725 = vmatmul.msk.f32.gmra.mxu0 %vm341_vm1, %v317_v47  ;;  %2758 = vmatmul.msk.f32.gmra.mxu1 %vm341_vm1, %v317_v47 }
  0x8d   : > { %2726 = vmatmul.msk.f32.gmra.mxu0 %vm341_vm1, %v318_v53  ;;  %2759 = vmatmul.msk.f32.gmra.mxu1 %vm341_vm1, %v318_v53  ;;  %v951_v53 = vld [vmem:[%s4944_s3 + $0x50] sm:$0xff] }
  0x8e   : > { %1478 = vmatpush.msrb.mxu1 %v951_v53 }
  0x90   : > { %1479 = vmatpush.msrb.mxu1 %v950_v8 }
  0x95   : > { %2727 = vmatmul.msk.f32.gmra.mxu0 %vm341_vm1, %v319_v54  ;;  %2760 = vmatmul.msk.f32.gmra.mxu1 %vm341_vm1, %v319_v54  ;;  %v967_v54 = vld [vmem:[%s4944_s3 + $0xd0] sm:$0xff] }
  0x96   : > { %1591 = vmatpush.msrb.mxu2 %v967_v54  ;;  %v332_v54 = vld [vmem:[%s3128_s23 + $0xe0] sm:$0xff] }
  0x9a   : > { %v460_v59 = vpop.f32.mrf.mxu0  ;;  %v3324_v60 = vpop.f32.mrf.mxu1 }
  0x9b   : > { %4960 = vst [vmem:[#allocation6_spill] sm:$0xff] %v3324_v60  ;;  %v673_v62 = vadd.f32 %v3309_v55, %v460_v59 }
  0x9d   : > { %v705_v63 = vmax.f32 %v673_v62, 0.0  ;;  %2728 = vmatmul.msk.f32.gmra.mxu0 %vm341_vm1, %v320_v61  ;;  %2761 = vmatmul.msk.f32.gmra.mxu1 %vm341_vm1, %v320_v61 }
  0x9f   : > { %774 = vst [vmem:[#allocation2 + $0x19] sm:$0xff] %v705_v63  ;;  %1263 = vmatmul.f32.vlgmr.msra.gmra.mxu3 %v705_v63 }
  0xa2   : > { %v463_v0 = vpop.f32.mrf.mxu0  ;;  %v3337_v1 = vpop.f32.mrf.mxu1 }
  0xa3   : > { %4961 = vst [vmem:[#allocation7_spill] sm:$0xff] %v3337_v1  ;;  %v674_v3 = vadd.f32 %v3309_v55, %v463_v0 }
  0xa5   : > { %v706_v4 = vmax.f32 %v674_v3, 0.0  ;;  %2729 = vmatmul.msk.f32.gmra.mxu0 %vm341_vm1, %v321_v2  ;;  %2762 = vmatmul.msk.f32.gmra.mxu1 %vm341_vm1, %v321_v2  ;;  %v329_v2 = vld [vmem:[%s3128_s23 + $0xc8] sm:$0xff] }
  0xa6   : > { %v3347_v5 = vld [vmem:[#allocation2 + $0x18] sm:$0xff] }
  0xa7   : > { %775 = vst [vmem:[#allocation2 + $0x21] sm:$0xff] %v706_v4  ;;  %1150 = vmatmul.f32.vlgmr.msra.gmra.mxu2 %v3347_v5  ;;  %1266 = vmatmul.f32.gmra.mxu3 %v706_v4 }
  0xaa   : > { %v466_v9 = vpop.f32.mrf.mxu0  ;;  %v3359_v10 = vpop.f32.mrf.mxu1 }
  0xab   : > { %4962 = vst [vmem:[#allocation8_spill] sm:$0xff] %v3359_v10  ;;  %v675_v12 = vadd.f32 %v3309_v55, %v466_v9  ;;  %v966_v9 = vld [vmem:[%s4944_s3 + $0xc8] sm:$0xff] }
  0xac   : > { %1592 = vmatpush.msrb.mxu2 %v966_v9  ;;  %v877_v10 = vld [vmem:[#allocation2 + $0x1] sm:$0xff] }
  0xad   : > { %v707_v13 = vmax.f32 %v675_v12, 0.0  ;;  %2730 = vmatmul.msk.f32.gmra.mxu0 %vm341_vm1, %v322_v11  ;;  %2763 = vmatmul.msk.f32.gmra.mxu1 %vm341_vm1, %v322_v11 }
  0xae   : > { %v3365_v14 = vld [vmem:[#allocation2 + $0x20] sm:$0xff] }
  0xaf   : > { %776 = vst [vmem:[#allocation2 + $0x31] sm:$0xff] %v707_v13  ;;  %1153 = vmatmul.f32.gmra.mxu2 %v3365_v14  ;;  %1269 = vmatmul.f32.gmra.mxu3 %v707_v13  ;;  %v330_v13 = vld [vmem:[%s3128_s23 + $0xd0] sm:$0xff] }
  0xb2   : > { %v469_v15 = vpop.f32.mrf.mxu0  ;;  %v3368_v16 = vpop.f32.mrf.mxu1 }
  0xb3   : > { %4963 = vst [vmem:[#allocation9_spill] sm:$0xff] %v3368_v16  ;;  %v676_v18 = vadd.f32 %v3309_v55, %v469_v15 }
  0xb5   : > { %v708_v19 = vmax.f32 %v676_v18, 0.0  ;;  %2731 = vmatmul.msk.f32.gmra.mxu0 %vm341_vm1, %v323_v17  ;;  %2764 = vmatmul.msk.f32.gmra.mxu1 %vm341_vm1, %v323_v17  ;;  %v2817_v17 = vld [vmem:[%s4944_s3 + $0x2c0] sm:$0xff] }
  0xb6   : > { %v3374_v20 = vld [vmem:[#allocation2 + $0x30] sm:$0xff]  ;;  %v949_v18 = vld [vmem:[%s4944_s3 + $0x40] sm:$0xff]  ;;  %1367 = vmatpush.msrb.mxu0 %v2817_v17  ;;  %v334_v17 = vld [vmem:[%s3128_s23 + $0xf0] sm:$0xff] }
  0xb7   : > { %777 = vst [vmem:[#allocation2 + $0x39] sm:$0xff] %v708_v19  ;;  %1156 = vmatmul.f32.gmra.mxu2 %v3374_v20  ;;  %1272 = vmatmul.f32.gmra.mxu3 %v708_v19 }
  0xb8   : > { %1480 = vmatpush.msrb.mxu1 %v949_v18  ;;  %1368 = vmatpush.msrb.mxu0 %v2816_v21 }
  0xba   : > { %v472_v24 = vpop.f32.mrf.mxu0  ;;  %v3386_v25 = vpop.f32.mrf.mxu1  ;;  %1481 = vmatpush.msrb.mxu1 %v948_v22 }
  0xbb   : > { %4964 = vst [vmem:[#allocation10_spill] sm:$0xff] %v3386_v25  ;;  %v677_v27 = vadd.f32 %v3309_v55, %v472_v24  ;;  %v2815_v24 = vld [vmem:[%s4944_s3 + $0x2b0] sm:$0xff] }
  0xbc   : > { %1369 = vmatpush.msrb.mxu0 %v2815_v24 }
  0xbd   : > { %v709_v28 = vmax.f32 %v677_v27, 0.0  ;;  %2732 = vmatmul.msk.f32.gmra.mxu0 %vm341_vm1, %v324_v26  ;;  %2765 = vmatmul.msk.f32.gmra.mxu1 %vm341_vm1, %v324_v26  ;;  %v947_v26 = vld [vmem:[%s4944_s3 + $0x30] sm:$0xff]  ;;  %v2814_v27 = vld [vmem:[%s4944_s3 + $0x2a8] sm:$0xff] }
  0xbe   : > { %v3392_v29 = vld [vmem:[#allocation2 + $0x38] sm:$0xff]  ;;  %1482 = vmatpush.msrb.mxu1 %v947_v26  ;;  %1370 = vmatpush.msrb.mxu0 %v2814_v27  ;;  %v335_v26 = vld [vmem:[%s3128_s23 + $0xf8] sm:$0xff] }
  0xbf   : > { %778 = vst [vmem:[#allocation2 + $0x49] sm:$0xff] %v709_v28  ;;  %1159 = vmatmul.f32.gmra.mxu2 %v3392_v29  ;;  %1275 = vmatmul.f32.gmra.mxu3 %v709_v28  ;;  %v946_v28 = vld [vmem:[%s4944_s3 + $0x28] sm:$0xff] }
  0xc0   : > { %1483 = vmatpush.msrb.mxu1 %v946_v28  ;;  %1371 = vmatpush.msrb.mxu0 %v2813_v36 }
  0xc2   : > { %v475_v30 = vpop.f32.mrf.mxu0  ;;  %v3395_v31 = vpop.f32.mrf.mxu1  ;;  %1484 = vmatpush.msrb.mxu1 %v945_v37 }
  0xc3   : > { %4965 = vst [vmem:[#allocation11_spill] sm:$0xff] %v3395_v31  ;;  %v678_v33 = vadd.f32 %v3309_v55, %v475_v30 }
  0xc5   : > { %v710_v34 = vmax.f32 %v678_v33, 0.0  ;;  %2733 = vmatmul.msk.f32.gmra.mxu0 %vm341_vm1, %v325_v32  ;;  %2766 = vmatmul.msk.f32.gmra.mxu1 %vm341_vm1, %v325_v32  ;;  %v331_v33 = vld [vmem:[%s3128_s23 + $0xd8] sm:$0xff] }
  0xc6   : > { %v3401_v35 = vld [vmem:[#allocation2 + $0x48] sm:$0xff] }
  0xc7   : > { %779 = vst [vmem:[#allocation2 + $0x51] sm:$0xff] %v710_v34  ;;  %1162 = vmatmul.f32.gmra.mxu2 %v3401_v35  ;;  %1278 = vmatmul.f32.gmra.mxu3 %v710_v34 }
  0xca   : > { %v478_v39 = vpop.f32.mrf.mxu0  ;;  %v3413_v40 = vpop.f32.mrf.mxu1 }
  0xcb   : > { %4966 = vst [vmem:[#allocation12_spill] sm:$0xff] %v3413_v40  ;;  %v679_v42 = vadd.f32 %v3309_v55, %v478_v39  ;;  %v2812_v39 = vld [vmem:[%s4944_s3 + $0x298] sm:$0xff] }
  0xcc   : > { %1372 = vmatpush.msrb.mxu0 %v2812_v39  ;;  %v3590_v39 = vld [vmem:[#allocation2 + $0x1a] sm:$0xff] }
  0xcd   : > { %v711_v43 = vmax.f32 %v679_v42, 0.0  ;;  %2734 = vmatmul.msk.f32.gmra.mxu0 %vm341_vm1, %v326_v41  ;;  %2767 = vmatmul.msk.f32.gmra.mxu1 %vm341_vm1, %v326_v41  ;;  %v944_v41 = vld [vmem:[%s4944_s3 + $0x18] sm:$0xff] }
  0xce   : > { %v3419_v44 = vld [vmem:[#allocation2 + $0x50] sm:$0xff]  ;;  %1485 = vmatpush.msrb.mxu1 %v944_v41 }
  0xcf   : > { %780 = vst [vmem:[#allocation2 + $0x61] sm:$0xff] %v711_v43  ;;  %1165 = vmatmul.f32.gmra.mxu2 %v3419_v44  ;;  %1281 = vmatmul.f32.gmra.mxu3 %v711_v43  ;;  %v965_v43 = vld [vmem:[%s4944_s3 + $0xc0] sm:$0xff] }
  0xd0   : > { %1593 = vmatpush.msrb.mxu2 %v965_v43 }
  0xd2   : > { %v481_v46 = vpop.f32.mrf.mxu0  ;;  %v3422_v47 = vpop.f32.mrf.mxu1 }
  0xd3   : > { %4967 = vst [vmem:[#allocation13_spill] sm:$0xff] %v3422_v47  ;;  %v680_v49 = vadd.f32 %v3309_v55, %v481_v46  ;;  %v2811_v46 = vld [vmem:[%s4944_s3 + $0x290] sm:$0xff] }
  0xd4   : > { %1373 = vmatpush.msrb.mxu0 %v2811_v46 }
  0xd5   : > { %v712_v50 = vmax.f32 %v680_v49, 0.0  ;;  %2735 = vmatmul.msk.f32.gmra.mxu0 %vm341_vm1, %v327_v48  ;;  %2768 = vmatmul.msk.f32.gmra.mxu1 %vm341_vm1, %v327_v48  ;;  %v943_v48 = vld [vmem:[%s4944_s3 + $0x10] sm:$0xff]  ;;  %v2810_v49 = vld [vmem:[%s4944_s3 + $0x288] sm:$0xff] }
  0xd6   : > { %v3428_v51 = vld [vmem:[#allocation2 + $0x60] sm:$0xff]  ;;  %1486 = vmatpush.msrb.mxu1 %v943_v48  ;;  %1374 = vmatpush.msrb.mxu0 %v2810_v49 }
  0xd7   : > { %781 = vst [vmem:[#allocation2 + $0x69] sm:$0xff] %v712_v50  ;;  %1168 = vmatmul.f32.gmra.mxu2 %v3428_v51  ;;  %1284 = vmatmul.f32.gmra.mxu3 %v712_v50  ;;  %v942_v50 = vld [vmem:[%s4944_s3 + $0x8] sm:$0xff] }
  0xd8   : > { %1487 = vmatpush.msrb.mxu1 %v942_v50 }
  0xda   : > { %v484_v56 = vpop.f32.mrf.mxu0  ;;  %v3440_v57 = vpop.f32.mrf.mxu1 }
  0xdb   : > { %4968 = vst [vmem:[#allocation14_spill] sm:$0xff] %v3440_v57  ;;  %v681_v59 = vadd.f32 %v3309_v55, %v484_v56 }
  0xdd   : > { %v713_v61 = vmax.f32 %v681_v59, 0.0  ;;  %2736 = vmatmul.msk.f32.gmra.mxu0 %vm341_vm1, %v328_v58  ;;  %2769 = vmatmul.msk.f32.gmra.mxu1 %vm341_vm1, %v328_v58  ;;  %v2809_v58 = vld [vmem:[%s4944_s3 + $0x280] sm:$0xff] }
  0xde   : > { %v3446_v62 = vld [vmem:[#allocation2 + $0x68] sm:$0xff]  ;;  %v941_v59 = vld [vmem:[%s4944_s3] sm:$0xff]  ;;  %1375 = vmatpush.msrb.mxu0 %v2809_v58 }
  0xdf   : > { %782 = vst [vmem:[#allocation2 + $0x79] sm:$0xff] %v713_v61  ;;  %1171 = vmatmul.f32.gmra.mxu2 %v3446_v62  ;;  %1287 = vmatmul.f32.gmra.mxu3 %v713_v61  ;;  %v987_v58 = vld [vmem:[%s4944_s3 + $0x170] sm:$0xff] }
  0xe0   : > { %1488 = vmatpush.msrb.mxu1 %v941_v59  ;;  %v962_v59 = vld [vmem:[%s4944_s3 + $0xa8] sm:$0xff] }
  0xe2   : > { %v487_v63 = vpop.f32.mrf.mxu0  ;;  %v3449_v0 = vpop.f32.mrf.mxu1 }
  0xe3   : > { %4969 = vst [vmem:[#allocation15_spill] sm:$0xff] %v3449_v0  ;;  %v682_v3 = vadd.f32 %v3309_v55, %v487_v63 }
  0xe5   : > { %v714_v4 = vmax.f32 %v682_v3, 0.0  ;;  %2737 = vmatmul.msk.f32.gmra.mxu0 %vm341_vm1, %v329_v2  ;;  %2770 = vmatmul.msk.f32.gmra.mxu1 %vm341_vm1, %v329_v2 }
  0xe6   : > { %v3455_v6 = vld [vmem:[#allocation2 + $0x78] sm:$0xff] }
  0xe7   : > { %783 = vst [vmem:[#allocation2 + $0x81] sm:$0xff] %v714_v4  ;;  %1174 = vmatmul.f32.gmra.mxu2 %v3455_v6  ;;  %1290 = vmatmul.f32.gmra.mxu3 %v714_v4  ;;  %v333_v4 = vld [vmem:[%s3128_s23 + $0xe8] sm:$0xff] }
  0xea   : > { %v490_v11 = vpop.f32.mrf.mxu0  ;;  %v3467_v12 = vpop.f32.mrf.mxu1 }
  0xeb   : > { %4970 = vst [vmem:[#allocation16_spill] sm:$0xff] %v3467_v12  ;;  %v683_v15 = vadd.f32 %v3309_v55, %v490_v11  ;;  %v964_v11 = vld [vmem:[%s4944_s3 + $0xb8] sm:$0xff] }
  0xec   : > { %1594 = vmatpush.msrb.mxu2 %v964_v11  ;;  %v3618_v11 = vld [vmem:[#allocation2 + $0x32] sm:$0xff] }
  0xed   : > { %v715_v19 = vmax.f32 %v683_v15, 0.0  ;;  %2738 = vmatmul.msk.f32.gmra.mxu0 %vm341_vm1, %v330_v13  ;;  %2771 = vmatmul.msk.f32.gmra.mxu1 %vm341_vm1, %v330_v13 }
  0xee   : > { %v3485_v23 = vld [vmem:[#allocation2 + $0x80] sm:$0xff] }
  0xef   : > { %784 = vst [vmem:[#allocation2 + $0x91] sm:$0xff] %v715_v19  ;;  %1177 = vmatmul.f32.gmra.mxu2 %v3485_v23  ;;  %1293 = vmatmul.f32.gmra.mxu3 %v715_v19 }
  0xf2   : > { %v493_v30 = vpop.f32.mrf.mxu0  ;;  %v3500_v32 = vpop.f32.mrf.mxu1 }
  0xf3   : > { %4971 = vst [vmem:[#allocation17_spill] sm:$0xff] %v3500_v32  ;;  %v684_v34 = vadd.f32 %v3309_v55, %v493_v30 }
  0xf5   : > { %v716_v38 = vmax.f32 %v684_v34, 0.0  ;;  %2739 = vmatmul.msk.f32.gmra.mxu0 %vm341_vm1, %v331_v33  ;;  %2772 = vmatmul.msk.f32.gmra.mxu1 %vm341_vm1, %v331_v33  ;;  %v988_v33 = vld [vmem:[%s4944_s3 + $0x178] sm:$0xff]  ;;  %v963_v34 = vld [vmem:[%s4944_s3 + $0xb0] sm:$0xff] }
  0xf6   : > { %v3518_v42 = vld [vmem:[#allocation2 + $0x90] sm:$0xff]  ;;  %1699 = vmatpush.msrb.mxu3 %v988_v33  ;;  %1595 = vmatpush.msrb.mxu2 %v963_v34  ;;  %v3630_v33 = vld [vmem:[#allocation2 + $0x3a] sm:$0xff] }
  0xf7   : > { %785 = vst [vmem:[#allocation2 + $0x99] sm:$0xff] %v716_v38  ;;  %1180 = vmatmul.f32.gmra.mxu2 %v3518_v42  ;;  %1296 = vmatmul.f32.gmra.mxu3 %v716_v38 }
  0xf8   : > { %1700 = vmatpush.msrb.mxu3 %v987_v58  ;;  %1596 = vmatpush.msrb.mxu2 %v962_v59  ;;  %v3648_v58 = vld [vmem:[#allocation2 + $0x4a] sm:$0xff] }
  0xfa   : > { %v496_v52 = vpop.f32.mrf.mxu0  ;;  %v3536_v53 = vpop.f32.mrf.mxu1 }
  0xfb   : > { %4972 = vst [vmem:[#allocation18_spill] sm:$0xff] %v3536_v53  ;;  %v685_v56 = vadd.f32 %v3309_v55, %v496_v52  ;;  %v3600_v52 = vld [vmem:[#allocation2 + $0x22] sm:$0xff] }
  0xfd   : > { %v717_v61 = vmax.f32 %v685_v56, 0.0  ;;  %2740 = vmatmul.msk.f32.gmra.mxu0 %vm341_vm1, %v332_v54  ;;  %2773 = vmatmul.msk.f32.gmra.mxu1 %vm341_vm1, %v332_v54 }
  0xfe   : > { %v3548_v63 = vld [vmem:[#allocation2 + $0x98] sm:$0xff] }
  0xff   : > { %786 = vst [vmem:[#allocation2 + $0xa9] sm:$0xff] %v717_v61  ;;  %1183 = vmatmul.f32.gmra.mxu2 %v3548_v63  ;;  %1299 = vmatmul.f32.gmra.mxu3 %v717_v61 }
 0x102   : > { %v499_v2 = vpop.f32.mrf.mxu0  ;;  %v3551_v3 = vpop.f32.mrf.mxu1 }
 0x103   : > { %4973 = vst [vmem:[#allocation19_spill] sm:$0xff] %v3551_v3  ;;  %v686_v7 = vadd.f32 %v3309_v55, %v499_v2 }
 0x105   : > { %v718_v8 = vmax.f32 %v686_v7, 0.0  ;;  %2741 = vmatmul.msk.f32.gmra.mxu0 %vm341_vm1, %v333_v4  ;;  %2774 = vmatmul.msk.f32.gmra.mxu1 %vm341_vm1, %v333_v4 }
 0x106   : > { %v3557_v9 = vld [vmem:[#allocation2 + $0xa8] sm:$0xff] }
 0x107   : > { %787 = vst [vmem:[#allocation2 + $0xb1] sm:$0xff] %v718_v8  ;;  %1186 = vmatmul.f32.gmra.mxu2 %v3557_v9  ;;  %1302 = vmatmul.f32.gmra.mxu3 %v718_v8 }
 0x10a   : > { %v502_v13 = vpop.f32.mrf.mxu0  ;;  %v3563_v15 = vpop.f32.mrf.mxu1 }
 0x10b   : > { %4974 = vst [vmem:[#allocation20_spill] sm:$0xff] %v3563_v15  ;;  %v687_v18 = vadd.f32 %v3309_v55, %v502_v13 }
 0x10d   : > { %v719_v19 = vmax.f32 %v687_v18, 0.0  ;;  %2742 = vmatmul.msk.f32.gmra.mxu0 %vm341_vm1, %v334_v17  ;;  %2775 = vmatmul.msk.f32.gmra.mxu1 %vm341_vm1, %v334_v17 }
 0x10e   : > { %v3569_v21 = vld [vmem:[#allocation2 + $0xb0] sm:$0xff] }
 0x10f   : > { %788 = vst [vmem:[#allocation2 + $0xc1] sm:$0xff] %v719_v19  ;;  %1189 = vmatmul.f32.gmra.mxu2 %v3569_v21  ;;  %1305 = vmatmul.f32.gmra.mxu3 %v719_v19  ;;  %v3807_v53 = vld [vmem:[#allocation2 + $0xb2] sm:$0xff] }
 0x112   : > { %v505_v22 = vpop.f32.mrf.mxu0  ;;  %v3572_v24 = vpop.f32.mrf.mxu1 }
 0x113   : > { %4975 = vst [vmem:[#allocation21_spill] sm:$0xff] %v3572_v24  ;;  %v688_v27 = vadd.f32 %v3309_v55, %v505_v22 }
 0x115   : > { %v720_v28 = vmax.f32 %v688_v27, 0.0  ;;  %2743 = vmatmul.msk.f32.gmra.mxu0 %vm341_vm1, %v335_v26  ;;  %2776 = vmatmul.msk.f32.gmra.mxu1 %vm341_vm1, %v335_v26 }
 0x116   : > { %v3578_v30 = vld [vmem:[#allocation2 + $0xc0] sm:$0xff] }
 0x117   : > { %789 = vst [vmem:[#allocation2 + $0xc9] sm:$0xff] %v720_v28  ;;  %1192 = vmatmul.f32.gmra.mxu2 %v3578_v30  ;;  %1308 = vmatmul.f32.gmra.mxu3 %v720_v28 }
 0x11a   : > { %v508_v36 = vpop.f32.mrf.mxu0  ;;  %v3587_v37 = vpop.f32.mrf.mxu1 }
 0x11b   : > { %4976 = vst [vmem:[#allocation22_spill] sm:$0xff] %v3587_v37  ;;  %v689_v38 = vadd.f32 %v3309_v55, %v508_v36  ;;  %v986_v36 = vld [vmem:[%s4944_s3 + $0x168] sm:$0xff] }
 0x11c   : > { %1701 = vmatpush.msrb.mxu3 %v986_v36  ;;  %v960_v36 = vld [vmem:[%s4944_s3 + $0x98] sm:$0xff] }
 0x11d   : > { %v721_v41 = vmax.f32 %v689_v38, 0.0  ;;  %1376 = vmatmul.f32.vlgmr.msrb.gmra.mxu0 %v3590_v39  ;;  %1489 = vmatmul.f32.vlgmr.msrb.gmra.mxu1 %v3024_v45  ;;  %v961_v38 = vld [vmem:[%s4944_s3 + $0xa0] sm:$0xff] }
 0x11e   : > { %v3594_v43 = vld [vmem:[#allocation2 + $0xc8] sm:$0xff]  ;;  %1597 = vmatpush.msrb.mxu2 %v961_v38 }
 0x11f   : > { %790 = vst [vmem:[#allocation2 + $0xd9] sm:$0xff] %v721_v41  ;;  %1195 = vmatmul.f32.gmra.mxu2 %v3594_v43  ;;  %1311 = vmatmul.f32.gmra.mxu3 %v721_v41  ;;  %v3845_v57 = vld [vmem:[#allocation2 + $0xca] sm:$0xff] }
 0x120   : > { %1598 = vmatpush.msrb.mxu2 %v960_v36 }
 0x122   : > { %v511_v46 = vpop.f32.mrf.mxu0  ;;  %v3597_v48 = vpop.f32.mrf.mxu1 }
 0x123   : > { %4977 = vst [vmem:[#allocation23_spill] sm:$0xff] %v3597_v48  ;;  %v690_v49 = vadd.f32 %v3309_v55, %v511_v46  ;;  %v1264_v50 = vpop.f32.mrf.mxu3  ;;  %v982_v48 = vld [vmem:[%s4944_s3 + $0x148] sm:$0xff] }
 0x125   : > { %v722_v54 = vmax.f32 %v690_v49, 0.0  ;;  %1379 = vmatmul.f32.gmra.mxu0 %v3600_v52  ;;  %1492 = vmatmul.f32.gmra.mxu1 %v3024_v45 }
 0x126   : > { %v3604_v56 = vld [vmem:[#allocation2 + $0xd8] sm:$0xff] }
 0x127   : > { %791 = vst [vmem:[#allocation2 + $0xe1] sm:$0xff] %v722_v54  ;;  %1198 = vmatmul.f32.gmra.mxu2 %v3604_v56  ;;  %1314 = vmatmul.f32.gmra.mxu3 %v722_v54 }
 0x12a   : > { %v514_v61 = vpop.f32.mrf.mxu0  ;;  %v3613_v2 = vpop.f32.mrf.mxu1 }
 0x12b   : > { %4978 = vst [vmem:[#allocation24_spill] sm:$0xff] %v3613_v2  ;;  %v691_v45 = vadd.f32 %v3309_v55, %v514_v61  ;;  %v1151_v4 = vpop.f32.mrf.mxu2  ;;  %v1267_v7 = vpop.f32.mrf.mxu3 }
 0x12c   : > { %v3616_v8 = vadd.f32 %v1264_v50, %v1151_v4 }
 0x12d   : > { %v723_v13 = vmax.f32 %v691_v45, 0.0  ;;  %1382 = vmatmul.f32.gmra.mxu0 %v3618_v11  ;;  %1495 = vmatmul.f32.gmra.mxu1 %v3347_v5 }
 0x12e   : > { %v3622_v17 = vld [vmem:[#allocation2 + $0xe0] sm:$0xff] }
 0x12f   : > { %792 = vst [vmem:[#allocation2 + $0xf1] sm:$0xff] %v723_v13  ;;  %1201 = vmatmul.f32.gmra.mxu2 %v3622_v17  ;;  %1317 = vmatmul.f32.gmra.mxu3 %v723_v13 }
 0x132   : > { %v517_v18 = vpop.f32.mrf.mxu0  ;;  %v3625_v19 = vpop.f32.mrf.mxu1 }
 0x133   : > { %4979 = vst [vmem:[#allocation25_spill] sm:$0xff] %v3625_v19  ;;  %v692_v22 = vadd.f32 %v3309_v55, %v517_v18  ;;  %v1154_v26 = vpop.f32.mrf.mxu2  ;;  %v1270_v27 = vpop.f32.mrf.mxu3 }
 0x134   : > { %v3628_v28 = vadd.f32 %v1267_v7, %v1154_v26  ;;  %v3660_v26 = vld [vmem:[#allocation2 + $0x52] sm:$0xff] }
 0x135   : > { %v724_v34 = vmax.f32 %v692_v22, 0.0  ;;  %1385 = vmatmul.f32.gmra.mxu0 %v3630_v33  ;;  %1498 = vmatmul.f32.gmra.mxu1 %v3365_v14 }
 0x136   : > { %v3634_v5 = vld [vmem:[#allocation2 + $0xf0] sm:$0xff] }
 0x137   : > { %793 = vst [vmem:[#allocation2 + $0xf9] sm:$0xff] %v724_v34  ;;  %1204 = vmatmul.f32.gmra.mxu2 %v3634_v5  ;;  %1320 = vmatmul.f32.gmra.mxu3 %v724_v34  ;;  %v985_v34 = vld [vmem:[%s4944_s3 + $0x160] sm:$0xff] }
 0x138   : > { %1702 = vmatpush.msrb.mxu3 %v985_v34 }
 0x13a   : > { %v520_v41 = vpop.f32.mrf.mxu0  ;;  %v3643_v46 = vpop.f32.mrf.mxu1 }
 0x13b   : > { %4980 = vst [vmem:[#allocation26_spill] sm:$0xff] %v3643_v46  ;;  %v693_v14 = vadd.f32 %v3309_v55, %v520_v41  ;;  %v1157_v49 = vpop.f32.mrf.mxu2  ;;  %v1273_v50 = vpop.f32.mrf.mxu3 }
 0x13c   : > { %v3646_v54 = vadd.f32 %v1270_v27, %v1157_v49 }
 0x13d   : > { %v725_v59 = vmax.f32 %v693_v14, 0.0  ;;  %1388 = vmatmul.f32.gmra.mxu0 %v3648_v58  ;;  %1501 = vmatmul.f32.gmra.mxu1 %v3374_v20 }
 0x13e   : > { %v3652_v61 = vld [vmem:[#allocation2 + $0xf8] sm:$0xff] }
 0x13f   : > { %794 = vst [vmem:[#allocation2 + $0x109] sm:$0xff] %v725_v59  ;;  %1207 = vmatmul.f32.gmra.mxu2 %v3652_v61  ;;  %1323 = vmatmul.f32.gmra.mxu3 %v725_v59  ;;  %v3678_v59 = vld [vmem:[#allocation2 + $0x62] sm:$0xff] }
 0x142   : > { %v523_v45 = vpop.f32.mrf.mxu0  ;;  %v3655_v4 = vpop.f32.mrf.mxu1 }
 0x143   : > { %4981 = vst [vmem:[#allocation27_spill] sm:$0xff] %v3655_v4  ;;  %v694_v7 = vadd.f32 %v3309_v55, %v523_v45  ;;  %v1160_v13 = vpop.f32.mrf.mxu2  ;;  %v1276_v18 = vpop.f32.mrf.mxu3 }
 0x144   : > { %v3658_v22 = vadd.f32 %v1273_v50, %v1160_v13 }
 0x145   : > { %v726_v27 = vmax.f32 %v694_v7, 0.0  ;;  %1391 = vmatmul.f32.gmra.mxu0 %v3660_v26  ;;  %1504 = vmatmul.f32.gmra.mxu1 %v3392_v29 }
 0x146   : > { %v3664_v20 = vld [vmem:[#allocation2 + $0x108] sm:$0xff] }
 0x147   : > { %795 = vst [vmem:[#allocation2 + $0x111] sm:$0xff] %v726_v27  ;;  %1210 = vmatmul.f32.gmra.mxu2 %v3664_v20  ;;  %1326 = vmatmul.f32.gmra.mxu3 %v726_v27 }
 0x14a   : > { %v526_v38 = vpop.f32.mrf.mxu0  ;;  %v3673_v41 = vpop.f32.mrf.mxu1 }
 0x14b   : > { %4982 = vst [vmem:[#allocation28_spill] sm:$0xff] %v3673_v41  ;;  %v695_v29 = vadd.f32 %v3309_v55, %v526_v38  ;;  %v1163_v14 = vpop.f32.mrf.mxu2  ;;  %v1279_v49 = vpop.f32.mrf.mxu3 }
 0x14c   : > { %v3676_v50 = vadd.f32 %v1276_v18, %v1163_v14 }
 0x14d   : > { %v727_v45 = vmax.f32 %v695_v29, 0.0  ;;  %1394 = vmatmul.f32.gmra.mxu0 %v3678_v59  ;;  %1507 = vmatmul.f32.gmra.mxu1 %v3401_v35  ;;  %v3690_v29 = vld [vmem:[#allocation2 + $0x6a] sm:$0xff] }
 0x14e   : > { %v3682_v7 = vld [vmem:[#allocation2 + $0x110] sm:$0xff] }
 0x14f   : > { %796 = vst [vmem:[#allocation2 + $0x121] sm:$0xff] %v727_v45  ;;  %1213 = vmatmul.f32.gmra.mxu2 %v3682_v7  ;;  %1329 = vmatmul.f32.gmra.mxu3 %v727_v45  ;;  %v984_v45 = vld [vmem:[%s4944_s3 + $0x158] sm:$0xff] }
 0x150   : > { %1703 = vmatpush.msrb.mxu3 %v984_v45 }
 0x152   : > { %v529_v13 = vpop.f32.mrf.mxu0  ;;  %v3685_v27 = vpop.f32.mrf.mxu1 }
 0x153   : > { %4983 = vst [vmem:[#allocation29_spill] sm:$0xff] %v3685_v27  ;;  %v696_v34 = vadd.f32 %v3309_v55, %v529_v13  ;;  %v1166_v18 = vpop.f32.mrf.mxu2  ;;  %v1282_v36 = vpop.f32.mrf.mxu3 }
 0x154   : > { %v3688_v38 = vadd.f32 %v1279_v49, %v1166_v18  ;;  %v959_v49 = vld [vmem:[%s4944_s3 + $0x90] sm:$0xff] }
 0x155   : > { %v728_v14 = vmax.f32 %v696_v34, 0.0  ;;  %1397 = vmatmul.f32.gmra.mxu0 %v3690_v29  ;;  %1510 = vmatmul.f32.gmra.mxu1 %v3419_v44 }
 0x156   : > { %v3694_v35 = vld [vmem:[#allocation2 + $0x120] sm:$0xff]  ;;  %1599 = vmatpush.msrb.mxu2 %v959_v49 }
 0x157   : > { %797 = vst [vmem:[#allocation2 + $0x129] sm:$0xff] %v728_v14  ;;  %1216 = vmatmul.f32.gmra.mxu2 %v3694_v35  ;;  %1332 = vmatmul.f32.gmra.mxu3 %v728_v14  ;;  %v3708_v14 = vld [vmem:[#allocation2 + $0x7a] sm:$0xff] }
 0x15a   : > { %v532_v13 = vpop.f32.mrf.mxu0  ;;  %v3703_v34 = vpop.f32.mrf.mxu1 }
 0x15b   : > { %4984 = vst [vmem:[#allocation30_spill] sm:$0xff] %v3703_v34  ;;  %v697_v44 = vadd.f32 %v3309_v55, %v532_v13  ;;  %v1169_v18 = vpop.f32.mrf.mxu2  ;;  %v1285_v27 = vpop.f32.mrf.mxu3 }
 0x15c   : > { %v3706_v41 = vadd.f32 %v1282_v36, %v1169_v18 }
 0x15d   : > { %v729_v4 = vmax.f32 %v697_v44, 0.0  ;;  %1400 = vmatmul.f32.gmra.mxu0 %v3708_v14  ;;  %1513 = vmatmul.f32.gmra.mxu1 %v3428_v51  ;;  %v3720_v44 = vld [vmem:[#allocation2 + $0x82] sm:$0xff] }
 0x15e   : > { %v3712_v46 = vld [vmem:[#allocation2 + $0x128] sm:$0xff] }
 0x15f   : > { %798 = vst [vmem:[#allocation2 + $0x139] sm:$0xff] %v729_v4  ;;  %1219 = vmatmul.f32.gmra.mxu2 %v3712_v46  ;;  %1335 = vmatmul.f32.gmra.mxu3 %v729_v4  ;;  %v983_v4 = vld [vmem:[%s4944_s3 + $0x150] sm:$0xff] }
 0x160   : > { %1704 = vmatpush.msrb.mxu3 %v983_v4 }
 0x162   : > { %v535_v45 = vpop.f32.mrf.mxu0  ;;  %v3715_v49 = vpop.f32.mrf.mxu1  ;;  %1705 = vmatpush.msrb.mxu3 %v982_v48 }
 0x163   : > { %4985 = vst [vmem:[#allocation31_spill] sm:$0xff] %v3715_v49  ;;  %v698_v13 = vadd.f32 %v3309_v55, %v535_v45  ;;  %v1172_v36 = vpop.f32.mrf.mxu2  ;;  %v1288_v18 = vpop.f32.mrf.mxu3 }
 0x164   : > { %v3718_v34 = vadd.f32 %v1285_v27, %v1172_v36  ;;  %v958_v27 = vld [vmem:[%s4944_s3 + $0x88] sm:$0xff] }
 0x165   : > { %v730_v19 = vmax.f32 %v698_v13, 0.0  ;;  %1403 = vmatmul.f32.gmra.mxu0 %v3720_v44  ;;  %1516 = vmatmul.f32.gmra.mxu1 %v3446_v62 }
 0x166   : > { %v3724_v51 = vld [vmem:[#allocation2 + $0x138] sm:$0xff]  ;;  %1600 = vmatpush.msrb.mxu2 %v958_v27 }
 0x167   : > { %799 = vst [vmem:[#allocation2 + $0x141] sm:$0xff] %v730_v19  ;;  %1222 = vmatmul.f32.gmra.mxu2 %v3724_v51  ;;  %1338 = vmatmul.f32.gmra.mxu3 %v730_v19  ;;  %v3738_v19 = vld [vmem:[#allocation2 + $0x92] sm:$0xff] }
 0x168   : > { %v981_v27 = vld [vmem:[%s4944_s3 + $0x140] sm:$0xff] }
 0x169   : > { %1706 = vmatpush.msrb.mxu3 %v981_v27  ;;  %v978_v27 = vld [vmem:[%s4944_s3 + $0x128] sm:$0xff] }
 0x16a   : > { %v538_v45 = vpop.f32.mrf.mxu0  ;;  %v3733_v13 = vpop.f32.mrf.mxu1 }
 0x16b   : > { %4986 = vst [vmem:[#allocation32_spill] sm:$0xff] %v3733_v13  ;;  %v699_v62 = vadd.f32 %v3309_v55, %v538_v45  ;;  %v1175_v36 = vpop.f32.mrf.mxu2  ;;  %v1291_v49 = vpop.f32.mrf.mxu3 }
 0x16c   : > { %v3736_v2 = vadd.f32 %v1288_v18, %v1175_v36  ;;  %v980_v18 = vld [vmem:[%s4944_s3 + $0x138] sm:$0xff] }
 0x16d   : > { %v731_v37 = vmax.f32 %v699_v62, 0.0  ;;  %1406 = vmatmul.f32.gmra.mxu0 %v3738_v19  ;;  %1519 = vmatmul.f32.gmra.mxu1 %v3455_v6  ;;  %v979_v6 = vld [vmem:[%s4944_s3 + $0x130] sm:$0xff] }
 0x16e   : > { %v3745_v4 = vld [vmem:[#allocation2 + $0x140] sm:$0xff]  ;;  %1707 = vmatpush.msrb.mxu3 %v980_v18 }
 0x16f   : > { %800 = vst [vmem:[#allocation2 + $0x151] sm:$0xff] %v731_v37  ;;  %1225 = vmatmul.f32.gmra.mxu2 %v3745_v4  ;;  %1341 = vmatmul.f32.gmra.mxu3 %v731_v37  ;;  %v3762_v37 = vld [vmem:[#allocation2 + $0x9a] sm:$0xff] }
 0x170   : > { %1708 = vmatpush.msrb.mxu3 %v979_v6 }
 0x172   : > { %v541_v45 = vpop.f32.mrf.mxu0  ;;  %v3754_v62 = vpop.f32.mrf.mxu1  ;;  %1709 = vmatpush.msrb.mxu3 %v978_v27 }
 0x173   : > { %4987 = vst [vmem:[#allocation33_spill] sm:$0xff] %v3754_v62  ;;  %v700_v48 = vadd.f32 %v3309_v55, %v541_v45  ;;  %v1178_v36 = vpop.f32.mrf.mxu2  ;;  %v1294_v13 = vpop.f32.mrf.mxu3  ;;  %v957_v45 = vld [vmem:[%s4944_s3 + $0x80] sm:$0xff] }
 0x174   : > { %v3760_v24 = vadd.f32 %v1291_v49, %v1178_v36  ;;  %v977_v49 = vld [vmem:[%s4944_s3 + $0x120] sm:$0xff]  ;;  %1601 = vmatpush.msrb.mxu2 %v957_v45  ;;  %v975_v36 = vld [vmem:[%s4944_s3 + $0x110] sm:$0xff] }
 0x175   : > { %v732_v60 = vmax.f32 %v700_v48, 0.0  ;;  %1409 = vmatmul.f32.gmra.mxu0 %v3762_v37  ;;  %1522 = vmatmul.f32.gmra.mxu1 %v3485_v23  ;;  %v976_v23 = vld [vmem:[%s4944_s3 + $0x118] sm:$0xff] }
 0x176   : > { %v3769_v18 = vld [vmem:[#allocation2 + $0x150] sm:$0xff]  ;;  %1710 = vmatpush.msrb.mxu3 %v977_v49  ;;  %v974_v49 = vld [vmem:[%s4944_s3 + $0x108] sm:$0xff] }
 0x177   : > { %801 = vst [vmem:[#allocation2 + $0x159] sm:$0xff] %v732_v60  ;;  %1228 = vmatmul.f32.gmra.mxu2 %v3769_v18  ;;  %1344 = vmatmul.f32.gmra.mxu3 %v732_v60  ;;  %v3789_v45 = vld [vmem:[#allocation2 + $0xaa] sm:$0xff] }
 0x178   : > { %1711 = vmatpush.msrb.mxu3 %v976_v23 }
 0x17a   : > { %v544_v6 = vpop.f32.mrf.mxu0  ;;  %v3781_v48 = vpop.f32.mrf.mxu1  ;;  %1712 = vmatpush.msrb.mxu3 %v975_v36 }
 0x17b   : > { %4988 = vst [vmem:[#allocation34_spill] sm:$0xff] %v3781_v48  ;;  %v701_v60 = vadd.f32 %v3309_v55, %v544_v6  ;;  %v1181_v27 = vpop.f32.mrf.mxu2  ;;  %v1297_v62 = vpop.f32.mrf.mxu3 }
 0x17c   : > { %v3787_v15 = vadd.f32 %v1294_v13, %v1181_v27  ;;  %1713 = vmatpush.msrb.mxu3 %v974_v49  ;;  %v973_v13 = vld [vmem:[%s4944_s3 + $0x100] sm:$0xff] }
 0x17d   : > { %v733_v3 = vmax.f32 %v701_v60, 0.0  ;;  %1412 = vmatmul.f32.gmra.mxu0 %v3789_v45  ;;  %1525 = vmatmul.f32.gmra.mxu1 %v3518_v42 }
 0x17e   : > { %v3796_v23 = vld [vmem:[#allocation2 + $0x158] sm:$0xff]  ;;  %1714 = vmatpush.msrb.mxu3 %v973_v13  ;;  %v2856_v13 = vld [vmem:[%s4944_s3 + $0x3f8] sm:$0xff] }
 0x17f   : > { %802 = vst [vmem:[#allocation2 + $0x169] sm:$0xff] %v733_v3  ;;  %1231 = vmatmul.f32.gmra.mxu2 %v3796_v23  ;;  %1347 = vmatmul.f32.gmra.mxu3 %v733_v3  ;;  %v2840_v3 = vld [vmem:[%s4944_s3 + $0x378] sm:$0xff] }
 0x180   : > { %1958 = vmatpush.msra.mxu0 %v2840_v3  ;;  %2071 = vmatpush.msra.mxu1 %v2856_v13  ;;  %v3831_v13 = vld [vmem:[#allocation2 + $0xc2] sm:$0xff] }
 0x182   : > { %v547_v6 = vpop.f32.mrf.mxu0  ;;  %v3802_v36 = vpop.f32.mrf.mxu1 }
 0x183   : > { %4989 = vst [vmem:[#allocation35_spill] sm:$0xff] %v3802_v36  ;;  %v702_v60 = vadd.f32 %v3309_v55, %v547_v6  ;;  %v1184_v27 = vpop.f32.mrf.mxu2  ;;  %v1300_v48 = vpop.f32.mrf.mxu3 }
 0x184   : > { %v3805_v42 = vadd.f32 %v1297_v62, %v1184_v27 }
 0x185   : > { %v734_v49 = vmax.f32 %v702_v60, 0.0  ;;  %1415 = vmatmul.f32.gmra.mxu0 %v3807_v53  ;;  %1528 = vmatmul.f32.gmra.mxu1 %v3548_v63  ;;  %v3823_v63 = vld [vmem:[%s4944_s3 + $0x478] sm:$0xff] }
 0x186   : > { %v3817_v6 = vld [vmem:[#allocation2 + $0x168] sm:$0xff]  ;;  %2880 = vmatpush.msra.mxu2 %v3823_v63 }
 0x187   : > { %803 = vst [vmem:[#allocation2 + $0x171] sm:$0xff] %v734_v49  ;;  %1234 = vmatmul.f32.gmra.mxu2 %v3817_v6  ;;  %1350 = vmatmul.f32.gmra.mxu3 %v734_v49 }
 0x18a   : > { %v550_v62 = vpop.f32.mrf.mxu0  ;;  %v3826_v60 = vpop.f32.mrf.mxu1 }
 0x18b   : > { %4990 = vst [vmem:[#allocation36_spill] sm:$0xff] %v3826_v60  ;;  %v703_v27 = vadd.f32 %v3309_v55, %v550_v62  ;;  %v1187_v36 = vpop.f32.mrf.mxu2  ;;  %v1303_v32 = vpop.f32.mrf.mxu3  ;;  %v2958_v55 = vld [vmem:[%s4943_s2] ss:$0 sm:$0xff] }
 0x18c   : > { %v3829_v3 = vadd.f32 %v1300_v48, %v1187_v36 }
 0x18d   : > { %v735_v12 = vmax.f32 %v703_v27, 0.0  ;;  %1418 = vmatmul.f32.gmra.mxu0 %v3831_v13  ;;  %1531 = vmatmul.f32.gmra.mxu1 %v3557_v9 }
 0x18e   : > { %v3835_v49 = vld [vmem:[#allocation2 + $0x170] sm:$0xff] }
 0x18f   : > { %804 = vst [vmem:[#allocation2 + $0x181] sm:$0xff] %v735_v12  ;;  %1237 = vmatmul.f32.gmra.mxu2 %v3835_v49  ;;  %1353 = vmatmul.f32.gmra.mxu3 %v735_v12  ;;  %v2839_v12 = vld [vmem:[%s4944_s3 + $0x370] sm:$0xff] }
 0x190   : > { %1959 = vmatpush.msra.mxu0 %v2839_v12  ;;  %v3864_v12 = vld [vmem:[#allocation2 + $0xda] sm:$0xff] }
 0x192   : > { %v553_v60 = vpop.f32.mrf.mxu0  ;;  %v3838_v0 = vpop.f32.mrf.mxu1 }
 0x193   : > { %4991 = vst [vmem:[#allocation37_spill] sm:$0xff] %v3838_v0  ;;  %v704_v48 = vadd.f32 %v2958_v55, %v553_v60  ;;  %v1190_v36 = vpop.f32.mrf.mxu2  ;;  %v1306_v62 = vpop.f32.mrf.mxu3  ;;  %v2855_v0 = vld [vmem:[%s4944_s3 + $0x3f0] sm:$0xff] }
 0x194   : > { %v3843_v27 = vadd.f32 %v1303_v32, %v1190_v36  ;;  %2072 = vmatpush.msra.mxu1 %v2855_v0  ;;  %v3858_v32 = vld [vmem:[%s4944_s3 + $0x470] sm:$0xff] }
 0x195   : > { %v736_v9 = vmax.f32 %v704_v48, 0.0  ;;  %1421 = vmatmul.f32.gmra.mxu0 %v3845_v57  ;;  %1534 = vmatmul.f32.gmra.mxu1 %v3569_v21  ;;  %v909_v0 = vld [vmem:[#allocation2 + $0x2] sm:$0xff] }
 0x196   : > { %v1019_v60 = vld [vmem:[#allocation2 + $0x180] sm:$0xff]  ;;  %2881 = vmatpush.msra.mxu2 %v3858_v32 }
 0x197   : > { %805 = vst [vmem:[#allocation2 + $0x189] sm:$0xff] %v736_v9  ;;  %1240 = vmatmul.f32.gmra.mxu2 %v1019_v60  ;;  %1356 = vmatmul.f32.gmra.mxu3 %v736_v9 }
 0x19a   : > { %v1377_v21 = vpop.f32.mrf.mxu0  ;;  %v1490_v55 = vpop.f32.mrf.mxu1 }
 0x19b   : > { %v1193_v48 = vpop.f32.mrf.mxu2  ;;  %v1378_v36 = vadd.f32 %v1377_v21, %v3616_v8  ;;  %v1309_v47 = vpop.f32.mrf.mxu3 }
 0x19c   : > { %v3862_v40 = vadd.f32 %v1306_v62, %v1193_v48  ;;  %v3873_v48 = vld [vmem:[#allocation2 + $0xe2] sm:$0xff] }
 0x19d   : > { %v3866_v60 = vadd.f32 %v1490_v55, %v1378_v36  ;;  %1424 = vmatmul.f32.gmra.mxu0 %v3864_v12  ;;  %1537 = vmatmul.f32.gmra.mxu1 %v3578_v30  ;;  %4992 = vst [vmem:[#allocation38_spill] sm:$0xff] %v3873_v48  ;;  %v910_v55 = vld [vmem:[#allocation2 + $0xa] sm:$0xff]  ;;  %v2838_v30 = vld [vmem:[%s4944_s3 + $0x368] sm:$0xff] }
 0x19e   : > { %v1020_v9 = vld [vmem:[#allocation2 + $0x188] sm:$0xff]  ;;  %1960 = vmatpush.msra.mxu0 %v2838_v30 }
 0x19f   : > { %1243 = vmatmul.f32.gmra.mxu2 %v1020_v9  ;;  %1715 = vmatmul.f32.vlgmr.msrb.gmra.mxu3 %v909_v0  ;;  %v878_v30 = vld [vmem:[#allocation2 + $0x9] sm:$0xff] }
 0x1a2   : > { %v1380_v31 = vpop.f32.mrf.mxu0  ;;  %v1493_v25 = vpop.f32.mrf.mxu1 }
 0x1a3   : > { %v1196_v16 = vpop.f32.mrf.mxu2  ;;  %v1381_v8 = vadd.f32 %v1380_v31, %v3628_v28  ;;  %v1312_v21 = vpop.f32.mrf.mxu3  ;;  %v2854_v31 = vld [vmem:[%s4944_s3 + $0x3e8] sm:$0xff] }
 0x1a4   : > { %v3871_v62 = vadd.f32 %v1309_v47, %v1196_v16  ;;  %2073 = vmatpush.msra.mxu1 %v2854_v31  ;;  %v3888_v16 = vld [vmem:[%s4944_s3 + $0x468] sm:$0xff] }
 0x1a5   : > { %v3875_v36 = vadd.f32 %v1493_v25, %v1381_v8  ;;  %1427 = vmatmul.f32.gmra.mxu0 %v3873_v48  ;;  %1540 = vmatmul.f32.gmra.mxu1 %v3594_v43  ;;  %v3894_v8 = vld [vmem:[#allocation2 + $0xf2] sm:$0xff] }
 0x1a6   : > { %2882 = vmatpush.msra.mxu2 %v3888_v16 }
 0x1a7   : > { %1602 = vmatmul.f32.vlgmr.msrb.gmra.mxu2 %v877_v10  ;;  %1718 = vmatmul.f32.gmra.mxu3 %v910_v55 }
 0x1aa   : > { %v1383_v25 = vpop.f32.mrf.mxu0  ;;  %v1496_v47 = vpop.f32.mrf.mxu1 }
 0x1ab   : > { %v1199_v43 = vpop.f32.mrf.mxu2  ;;  %v1384_v28 = vadd.f32 %v1383_v25, %v3646_v54  ;;  %v1315_v0 = vpop.f32.mrf.mxu3 }
 0x1ac   : > { %v3892_v9 = vadd.f32 %v1312_v21, %v1199_v43  ;;  %v3904_v43 = vld [vmem:[#allocation2 + $0xfa] sm:$0xff] }
 0x1ad   : > { %v3896_v10 = vadd.f32 %v1496_v47, %v1384_v28  ;;  %1430 = vmatmul.f32.gmra.mxu0 %v3894_v8  ;;  %1543 = vmatmul.f32.gmra.mxu1 %v3604_v56  ;;  %v2853_v56 = vld [vmem:[%s4944_s3 + $0x3e0] sm:$0xff] }
 0x1ae   : > { %2074 = vmatpush.msra.mxu1 %v2853_v56 }
 0x1af   : > { %1605 = vmatmul.f32.gmra.mxu2 %v878_v30  ;;  %1721 = vmatmul.f32.gmra.mxu3 %v3590_v39  ;;  %v2837_v39 = vld [vmem:[%s4944_s3 + $0x360] sm:$0xff] }
 0x1b0   : > { %1961 = vmatpush.msra.mxu0 %v2837_v39 }
 0x1b2   : > { %v1386_v55 = vpop.f32.mrf.mxu0  ;;  %v1499_v31 = vpop.f32.mrf.mxu1 }
 0x1b3   : > { %v1202_v1 = vpop.f32.mrf.mxu2  ;;  %v1387_v54 = vadd.f32 %v1386_v55, %v3658_v22  ;;  %v1318_v25 = vpop.f32.mrf.mxu3  ;;  %v879_v22 = vld [vmem:[#allocation2 + $0x19] sm:$0xff] }
 0x1b4   : > { %v3902_v21 = vadd.f32 %v1315_v0, %v1202_v1  ;;  %v3920_v1 = vld [vmem:[%s4944_s3 + $0x460] sm:$0xff] }
 0x1b5   : > { %v3906_v48 = vadd.f32 %v1499_v31, %v1387_v54  ;;  %1433 = vmatmul.f32.gmra.mxu0 %v3904_v43  ;;  %1546 = vmatmul.f32.gmra.mxu1 %v3622_v17  ;;  %v3926_v31 = vld [vmem:[#allocation2 + $0x10a] sm:$0xff] }
 0x1b6   : > { %2883 = vmatpush.msra.mxu2 %v3920_v1 }
 0x1b7   : > { %1608 = vmatmul.f32.gmra.mxu2 %v879_v22  ;;  %1724 = vmatmul.f32.gmra.mxu3 %v3600_v52  ;;  %v880_v52 = vld [vmem:[#allocation2 + $0x21] sm:$0xff] }
 0x1ba   : > { %v1389_v17 = vpop.f32.mrf.mxu0  ;;  %v1502_v47 = vpop.f32.mrf.mxu1 }
 0x1bb   : > { %v1205_v28 = vpop.f32.mrf.mxu2  ;;  %v1390_v0 = vadd.f32 %v1389_v17, %v3676_v50  ;;  %v1321_v30 = vpop.f32.mrf.mxu3 }
 0x1bc   : > { %v3924_v55 = vadd.f32 %v1318_v25, %v1205_v28  ;;  %v3936_v28 = vld [vmem:[#allocation2 + $0x112] sm:$0xff] }
 0x1bd   : > { %v3928_v54 = vadd.f32 %v1502_v47, %v1390_v0  ;;  %1436 = vmatmul.f32.gmra.mxu0 %v3926_v31  ;;  %1549 = vmatmul.f32.gmra.mxu1 %v3634_v5  ;;  %4993 = vst [vmem:[#allocation39_spill] sm:$0xff] %v3936_v28  ;;  %v2852_v5 = vld [vmem:[%s4944_s3 + $0x3d8] sm:$0xff] }
 0x1be   : > { %2075 = vmatpush.msra.mxu1 %v2852_v5 }
 0x1bf   : > { %1611 = vmatmul.f32.gmra.mxu2 %v880_v52  ;;  %1727 = vmatmul.f32.gmra.mxu3 %v3618_v11  ;;  %v2836_v11 = vld [vmem:[%s4944_s3 + $0x358] sm:$0xff] }
 0x1c0   : > { %1962 = vmatpush.msra.mxu0 %v2836_v11 }
 0x1c2   : > { %v1392_v39 = vpop.f32.mrf.mxu0  ;;  %v1505_v56 = vpop.f32.mrf.mxu1 }
 0x1c3   : > { %v1208_v22 = vpop.f32.mrf.mxu2  ;;  %v1393_v50 = vadd.f32 %v1392_v39, %v3688_v38  ;;  %v1324_v17 = vpop.f32.mrf.mxu3  ;;  %v3948_v38 = vld [vmem:[#allocation2 + $0x31] sm:$0xff] }
 0x1c4   : > { %v3934_v25 = vadd.f32 %v1321_v30, %v1208_v22 }
 0x1c5   : > { %v3938_v47 = vadd.f32 %v1505_v56, %v1393_v50  ;;  %1439 = vmatmul.f32.gmra.mxu0 %v3936_v28  ;;  %1552 = vmatmul.f32.gmra.mxu1 %v3652_v61  ;;  %v3955_v61 = vld [vmem:[%s4944_s3 + $0x458] sm:$0xff]  ;;  %v3961_v50 = vld [vmem:[#allocation2 + $0x122] sm:$0xff] }
 0x1c6   : > { %2884 = vmatpush.msra.mxu2 %v3955_v61  ;;  %4994 = vst [vmem:[#allocation40_spill] sm:$0xff] %v3961_v50 }
 0x1c7   : > { %1614 = vmatmul.f32.gmra.mxu2 %v3948_v38  ;;  %1730 = vmatmul.f32.gmra.mxu3 %v3630_v33  ;;  %v3967_v33 = vld [vmem:[#allocation2 + $0x39] sm:$0xff] }
 0x1ca   : > { %v1395_v0 = vpop.f32.mrf.mxu0  ;;  %v1508_v30 = vpop.f32.mrf.mxu1 }
 0x1cb   : > { %v1211_v52 = vpop.f32.mrf.mxu2  ;;  %v1396_v39 = vadd.f32 %v1395_v0, %v3706_v41  ;;  %v1327_v56 = vpop.f32.mrf.mxu3 }
 0x1cc   : > { %v3959_v22 = vadd.f32 %v1324_v17, %v1211_v52 }
 0x1cd   : > { %v3963_v11 = vadd.f32 %v1508_v30, %v1396_v39  ;;  %1442 = vmatmul.f32.gmra.mxu0 %v3961_v50  ;;  %1555 = vmatmul.f32.gmra.mxu1 %v3664_v20  ;;  %v3974_v30 = vld [vmem:[#allocation2 + $0x12a] sm:$0xff] }
 0x1ce   : > { %4995 = vst [vmem:[#allocation41_spill] sm:$0xff] %v3974_v30  ;;  %v2851_v20 = vld [vmem:[%s4944_s3 + $0x3d0] sm:$0xff] }
 0x1cf   : > { %1617 = vmatmul.f32.gmra.mxu2 %v3967_v33  ;;  %1733 = vmatmul.f32.gmra.mxu3 %v3648_v58  ;;  %v2835_v58 = vld [vmem:[%s4944_s3 + $0x350] sm:$0xff] }
 0x1d0   : > { %1963 = vmatpush.msra.mxu0 %v2835_v58  ;;  %2076 = vmatpush.msra.mxu1 %v2851_v20  ;;  %v3999_v58 = vld [vmem:[#allocation2 + $0x13a] sm:$0xff] }
 0x1d1   : > { %4997 = vst [vmem:[#allocation43_spill] sm:$0xff] %v3999_v58 }
 0x1d2   : > { %v1398_v5 = vpop.f32.mrf.mxu0  ;;  %v1511_v28 = vpop.f32.mrf.mxu1 }
 0x1d3   : > { %v1214_v41 = vpop.f32.mrf.mxu2  ;;  %v1399_v17 = vadd.f32 %v1398_v5, %v3718_v34  ;;  %v1330_v0 = vpop.f32.mrf.mxu3  ;;  %v3986_v34 = vld [vmem:[#allocation2 + $0x49] sm:$0xff] }
 0x1d4   : > { %v3972_v52 = vadd.f32 %v1327_v56, %v1214_v41 }
 0x1d5   : > { %v3976_v39 = vadd.f32 %v1511_v28, %v1399_v17  ;;  %1445 = vmatmul.f32.gmra.mxu0 %v3974_v30  ;;  %1558 = vmatmul.f32.gmra.mxu1 %v3682_v7  ;;  %v3993_v7 = vld [vmem:[%s4944_s3 + $0x450] sm:$0xff] }
 0x1d6   : > { %2885 = vmatpush.msra.mxu2 %v3993_v7 }
 0x1d7   : > { %4996 = vst [vmem:[#allocation42_spill] sm:$0xff] %v3976_v39  ;;  %1620 = vmatmul.f32.gmra.mxu2 %v3986_v34  ;;  %1736 = vmatmul.f32.gmra.mxu3 %v3660_v26  ;;  %v4005_v26 = vld [vmem:[#allocation2 + $0x51] sm:$0xff] }
 0x1da   : > { %v1401_v28 = vpop.f32.mrf.mxu0  ;;  %v1514_v56 = vpop.f32.mrf.mxu1 }
 0x1db   : > { %v1217_v5 = vpop.f32.mrf.mxu2  ;;  %v1402_v41 = vadd.f32 %v1401_v28, %v3736_v2  ;;  %v1333_v17 = vpop.f32.mrf.mxu3 }
 0x1dc   : > { %v3997_v30 = vadd.f32 %v1330_v0, %v1217_v5 }
 0x1dd   : > { %v4001_v20 = vadd.f32 %v1514_v56, %v1402_v41  ;;  %1448 = vmatmul.f32.gmra.mxu0 %v3999_v58  ;;  %1561 = vmatmul.f32.gmra.mxu1 %v3694_v35  ;;  %v4012_v56 = vld [vmem:[#allocation2 + $0x142] sm:$0xff] }
 0x1de   : > { %4998 = vst [vmem:[#allocation44_spill] sm:$0xff] %v4012_v56  ;;  %v2850_v35 = vld [vmem:[%s4944_s3 + $0x3c8] sm:$0xff] }
 0x1df   : > { %1623 = vmatmul.f32.gmra.mxu2 %v4005_v26  ;;  %1739 = vmatmul.f32.gmra.mxu3 %v3678_v59  ;;  %v2834_v59 = vld [vmem:[%s4944_s3 + $0x348] sm:$0xff] }
 0x1e0   : > { %1964 = vmatpush.msra.mxu0 %v2834_v59  ;;  %2077 = vmatpush.msra.mxu1 %v2850_v35  ;;  %v4037_v59 = vld [vmem:[#allocation2 + $0x152] sm:$0xff] }
 0x1e1   : > { %5000 = vst [vmem:[#allocation46_spill] sm:$0xff] %v4037_v59  ;;  %v2849_v35 = vld [vmem:[%s4944_s3 + $0x3c0] sm:$0xff] }
 0x1e2   : > { %v1404_v39 = vpop.f32.mrf.mxu0  ;;  %v1517_v50 = vpop.f32.mrf.mxu1  ;;  %2078 = vmatpush.msra.mxu1 %v2849_v35 }
 0x1e3   : > { %v1220_v2 = vpop.f32.mrf.mxu2  ;;  %v1405_v0 = vadd.f32 %v1404_v39, %v3760_v24  ;;  %v1336_v28 = vpop.f32.mrf.mxu3  ;;  %v4024_v24 = vld [vmem:[#allocation2 + $0x61] sm:$0xff] }
 0x1e4   : > { %v4010_v5 = vadd.f32 %v1333_v17, %v1220_v2 }
 0x1e5   : > { %v4014_v41 = vadd.f32 %v1517_v50, %v1405_v0  ;;  %1451 = vmatmul.f32.gmra.mxu0 %v4012_v56  ;;  %1564 = vmatmul.f32.gmra.mxu1 %v3712_v46  ;;  %v4031_v46 = vld [vmem:[%s4944_s3 + $0x448] sm:$0xff] }
 0x1e6   : > { %2886 = vmatpush.msra.mxu2 %v4031_v46 }
 0x1e7   : > { %4999 = vst [vmem:[#allocation45_spill] sm:$0xff] %v4014_v41  ;;  %1626 = vmatmul.f32.gmra.mxu2 %v4024_v24  ;;  %1742 = vmatmul.f32.gmra.mxu3 %v3690_v29  ;;  %v2833_v29 = vld [vmem:[%s4944_s3 + $0x340] sm:$0xff] }
 0x1e8   : > { %1965 = vmatpush.msra.mxu0 %v2833_v29  ;;  %v2830_v29 = vld [vmem:[%s4944_s3 + $0x328] sm:$0xff] }
 0x1ea   : > { %v1407_v50 = vpop.f32.mrf.mxu0  ;;  %v1520_v39 = vpop.f32.mrf.mxu1 }
 0x1eb   : > { %v1223_v17 = vpop.f32.mrf.mxu2  ;;  %v1408_v2 = vadd.f32 %v1407_v50, %v3787_v15  ;;  %v1339_v0 = vpop.f32.mrf.mxu3  ;;  %v2832_v15 = vld [vmem:[%s4944_s3 + $0x338] sm:$0xff] }
 0x1ec   : > { %v4035_v56 = vadd.f32 %v1336_v28, %v1223_v17  ;;  %v2848_v28 = vld [vmem:[%s4944_s3 + $0x3b8] sm:$0xff]  ;;  %1966 = vmatpush.msra.mxu0 %v2832_v15  ;;  %v4074_v15 = vld [vmem:[#allocation2 + $0x15a] sm:$0xff] }
 0x1ed   : > { %v4045_v41 = vadd.f32 %v1520_v39, %v1408_v2  ;;  %1454 = vmatmul.f32.gmra.mxu0 %v4037_v59  ;;  %1567 = vmatmul.f32.gmra.mxu1 %v3724_v51  ;;  %v4055_v50 = vld [vmem:[#allocation2 + $0x69] sm:$0xff]  ;;  %5002 = vst [vmem:[#allocation48_spill] sm:$0xff] %v4074_v15 }
 0x1ee   : > { %v2831_v51 = vld [vmem:[%s4944_s3 + $0x330] sm:$0xff]  ;;  %2079 = vmatpush.msra.mxu1 %v2848_v28  ;;  %v2829_v28 = vld [vmem:[%s4944_s3 + $0x320] sm:$0xff] }
 0x1ef   : > { %5001 = vst [vmem:[#allocation47_spill] sm:$0xff] %v4045_v41  ;;  %1629 = vmatmul.f32.gmra.mxu2 %v4055_v50  ;;  %1745 = vmatmul.f32.gmra.mxu3 %v3708_v14  ;;  %v2847_v39 = vld [vmem:[%s4944_s3 + $0x3b0] sm:$0xff]  ;;  %v2846_v14 = vld [vmem:[%s4944_s3 + $0x3a8] sm:$0xff] }
 0x1f0   : > { %1967 = vmatpush.msra.mxu0 %v2831_v51  ;;  %2080 = vmatpush.msra.mxu1 %v2847_v39  ;;  %v2845_v51 = vld [vmem:[%s4944_s3 + $0x3a0] sm:$0xff] }
 0x1f2   : > { %v1410_v17 = vpop.f32.mrf.mxu0  ;;  %v1523_v2 = vpop.f32.mrf.mxu1  ;;  %1968 = vmatpush.msra.mxu0 %v2830_v29  ;;  %2081 = vmatpush.msra.mxu1 %v2846_v14 }
 0x1f3   : > { %v1226_v35 = vpop.f32.mrf.mxu2  ;;  %v1411_v59 = vadd.f32 %v1410_v17, %v3805_v42  ;;  %v1342_v41 = vpop.f32.mrf.mxu3  ;;  %v2828_v42 = vld [vmem:[%s4944_s3 + $0x318] sm:$0xff]  ;;  %v4092_v17 = vld [vmem:[#allocation2 + $0x79] sm:$0xff] }
 0x1f4   : > { %v4072_v58 = vadd.f32 %v1339_v0, %v1226_v35  ;;  %v2844_v0 = vld [vmem:[%s4944_s3 + $0x398] sm:$0xff]  ;;  %1969 = vmatpush.msra.mxu0 %v2829_v28  ;;  %2082 = vmatpush.msra.mxu1 %v2845_v51  ;;  %v2842_v35 = vld [vmem:[%s4944_s3 + $0x388] sm:$0xff] }
 0x1f5   : > { %v4082_v39 = vadd.f32 %v1523_v2, %v1411_v59  ;;  %1457 = vmatmul.f32.gmra.mxu0 %v4074_v15  ;;  %1570 = vmatmul.f32.gmra.mxu1 %v3745_v4  ;;  %v2865_v4 = vld [vmem:[%s4944_s3 + $0x440] sm:$0xff]  ;;  %v2827_v59 = vld [vmem:[%s4944_s3 + $0x310] sm:$0xff] }
 0x1f6   : > { %v2843_v2 = vld [vmem:[%s4944_s3 + $0x390] sm:$0xff]  ;;  %1970 = vmatpush.msra.mxu0 %v2828_v42  ;;  %2083 = vmatpush.msra.mxu1 %v2844_v0  ;;  %v2825_v0 = vld [vmem:[%s4944_s3 + $0x300] sm:$0xff] }
 0x1f7   : > { %5003 = vst [vmem:[#allocation49_spill] sm:$0xff] %v4082_v39  ;;  %1632 = vmatmul.f32.gmra.mxu2 %v4092_v17  ;;  %1748 = vmatmul.f32.gmra.mxu3 %v3720_v44  ;;  %v2826_v44 = vld [vmem:[%s4944_s3 + $0x308] sm:$0xff]  ;;  %v4114_v42 = vld [vmem:[#allocation2 + $0x16a] sm:$0xff] }
 0x1f8   : > { %2887 = vmatpush.msra.mxu2 %v2865_v4  ;;  %1971 = vmatpush.msra.mxu0 %v2827_v59  ;;  %v2841_v59 = vld [vmem:[%s4944_s3 + $0x380] sm:$0xff] }
 0x1f9   : > { %2084 = vmatpush.msra.mxu1 %v2843_v2 }
 0x1fa   : > { %v1413_v29 = vpop.f32.mrf.mxu0  ;;  %v1526_v14 = vpop.f32.mrf.mxu1  ;;  %1972 = vmatpush.msra.mxu0 %v2826_v44 }
 0x1fb   : > { %v1229_v28 = vpop.f32.mrf.mxu2  ;;  %v1414_v51 = vadd.f32 %v1413_v29, %v3829_v3  ;;  %v1345_v15 = vpop.f32.mrf.mxu3  ;;  %2085 = vmatpush.msra.mxu1 %v2842_v35  ;;  %v4126_v3 = vld [vmem:[#allocation2 + $0x81] sm:$0xff] }
 0x1fc   : > { %v4112_v39 = vadd.f32 %v1342_v41, %v1229_v28  ;;  %1973 = vmatpush.msra.mxu0 %v2825_v0  ;;  %v1083_v0 = vld [vmem:[#allocation2 + $0x182] sm:$0xff] }
 0x1fd   : > { %v4122_v2 = vadd.f32 %v1526_v14, %v1414_v51  ;;  %1460 = vmatmul.f32.gmra.mxu0 %v4114_v42  ;;  %1573 = vmatmul.f32.gmra.mxu1 %v3769_v18  ;;  %v4135_v18 = vld [vmem:[#allocation2 + $0x172] sm:$0xff] }
 0x1fe   : > { %2086 = vmatpush.msra.mxu1 %v2841_v59  ;;  %2184 = vmatpush.msrb.mxu0 %v3823_v63  ;;  %v2864_v63 = vld [vmem:[%s4944_s3 + $0x438] sm:$0xff]  ;;  %v4159_v59 = vld [vmem:[#allocation2 + $0x99] sm:$0xff] }
 0x1ff   : > { %1635 = vmatmul.f32.gmra.mxu2 %v4126_v3  ;;  %1751 = vmatmul.f32.gmra.mxu3 %v3738_v19  ;;  %v4142_v19 = vld [vmem:[#allocation2 + $0x91] sm:$0xff] }
 0x200   : > { %2185 = vmatpush.msrb.mxu0 %v3858_v32  ;;  %2888 = vmatpush.msra.mxu2 %v2864_v63 }
 0x202   : > { %v1416_v41 = vpop.f32.mrf.mxu0  ;;  %v1529_v29 = vpop.f32.mrf.mxu1  ;;  %2186 = vmatpush.msrb.mxu0 %v3888_v16 }
 0x203   : > { %v1232_v14 = vpop.f32.mrf.mxu2  ;;  %v1417_v44 = vadd.f32 %v1416_v41, %v3843_v27  ;;  %v1348_v35 = vpop.f32.mrf.mxu3 }
 0x204   : > { %v4133_v28 = vadd.f32 %v1345_v15, %v1232_v14  ;;  %2187 = vmatpush.msrb.mxu0 %v3920_v1  ;;  %v1084_v14 = vld [vmem:[#allocation2 + $0x18a] sm:$0xff] }
 0x205   : > { %v4138_v51 = vadd.f32 %v1529_v29, %v1417_v44  ;;  %1463 = vmatmul.f32.gmra.mxu0 %v4135_v18  ;;  %1576 = vmatmul.f32.gmra.mxu1 %v3796_v23 }
 0x206   : > { %2188 = vmatpush.msrb.mxu0 %v3955_v61 }
 0x207   : > { %1638 = vmatmul.f32.gmra.mxu2 %v4142_v19  ;;  %1754 = vmatmul.f32.gmra.mxu3 %v3762_v37 }
 0x208   : > { %2189 = vmatpush.msrb.mxu0 %v3993_v7 }
 0x20a   : > { %v1419_v27 = vpop.f32.mrf.mxu0  ;;  %v1532_v32 = vpop.f32.mrf.mxu1  ;;  %2190 = vmatpush.msrb.mxu0 %v4031_v46 }
 0x20b   : > { %v1235_v23 = vpop.f32.mrf.mxu2  ;;  %v1420_v16 = vadd.f32 %v1419_v27, %v3862_v40  ;;  %v1351_v15 = vpop.f32.mrf.mxu3 }
 0x20c   : > { %v4153_v1 = vadd.f32 %v1348_v35, %v1235_v23  ;;  %2191 = vmatpush.msrb.mxu0 %v2865_v4  ;;  %v1813_v23 = vld [vmem:[#allocation2 + $0x30] sm:$0xff] }
 0x20d   : > { %v4156_v37 = vadd.f32 %v1532_v32, %v1420_v16  ;;  %1466 = vmatmul.f32.gmra.mxu0 %v1083_v0  ;;  %1579 = vmatmul.f32.gmra.mxu1 %v3817_v6  ;;  %v4169_v6 = vld [vmem:[#allocation2 + $0xa9] sm:$0xff] }
 0x20e   : > { %2192 = vmatpush.msrb.mxu0 %v2864_v63 }
 0x20f   : > { %1641 = vmatmul.f32.gmra.mxu2 %v4159_v59  ;;  %1757 = vmatmul.f32.gmra.mxu3 %v3789_v45  ;;  %v2412_v45 = vld [vmem:[%s4946_s5 + $0x78] sm:$0xff] }
 0x210   : > { %2896 = vmatpush.msra.mxu3 %v2412_v45  ;;  %2417 = vmatpush.msrb.mxu1 %v2412_v45 }
 0x212   : > { %v1422_v40 = vpop.f32.mrf.mxu0  ;;  %v1535_v61 = vpop.f32.mrf.mxu1 }
 0x213   : > { %v1238_v7 = vpop.f32.mrf.mxu2  ;;  %v1423_v41 = vadd.f32 %v1422_v40, %v3871_v62  ;;  %v1354_v29 = vpop.f32.mrf.mxu3  ;;  %v2863_v62 = vld [vmem:[%s4944_s3 + $0x430] sm:$0xff] }
 0x214   : > { %v4164_v46 = vadd.f32 %v1351_v15, %v1238_v7  ;;  %2889 = vmatpush.msra.mxu2 %v2863_v62  ;;  %2193 = vmatpush.msrb.mxu0 %v2863_v62 }
 0x215   : > { %v4166_v44 = vadd.f32 %v1535_v61, %v1423_v41  ;;  %1469 = vmatmul.f32.gmra.mxu0 %v1084_v14  ;;  %1582 = vmatmul.f32.gmra.mxu1 %v3835_v49  ;;  %v1814_v41 = vld [vmem:[#allocation2 + $0x38] sm:$0xff] }
 0x217   : > { %1644 = vmatmul.f32.gmra.mxu2 %v4169_v6  ;;  %1760 = vmatmul.f32.gmra.mxu3 %v3807_v53  ;;  %v4185_v53 = vld [vmem:[#allocation2 + $0xb1] sm:$0xff] }
 0x21a   : > { %v1425_v4 = vpop.f32.mrf.mxu0  ;;  %v1538_v49 = vpop.f32.mrf.mxu1 }
 0x21b   : > { %v1241_v35 = vpop.f32.mrf.mxu2  ;;  %v1426_v63 = vadd.f32 %v1425_v4, %v3892_v9  ;;  %v1357_v27 = vpop.f32.mrf.mxu3 }
 0x21c   : > { %v4180_v32 = vadd.f32 %v1354_v29, %v1241_v35  ;;  %v1815_v35 = vld [vmem:[#allocation2 + $0x48] sm:$0xff] }
 0x21d   : > { %v4182_v16 = vadd.f32 %v1538_v49, %v1426_v63  ;;  %1974 = vmatmul.f32.vlgmr.msra.gmra.mxu0 %v1813_v23  ;;  %2087 = vmatmul.f32.vlgmr.msra.gmra.mxu1 %v3948_v38  ;;  %v4195_v38 = vld [vmem:[#allocation2 + $0xc1] sm:$0xff] }
 0x21f   : > { %1647 = vmatmul.f32.gmra.mxu2 %v4185_v53  ;;  %1763 = vmatmul.f32.gmra.mxu3 %v3831_v13  ;;  %v2411_v13 = vld [vmem:[%s4946_s5 + $0x70] sm:$0xff] }
 0x220   : > { %2897 = vmatpush.msra.mxu3 %v2411_v13  ;;  %2418 = vmatpush.msrb.mxu1 %v2411_v13 }
 0x222   : > { %v1428_v15 = vpop.f32.mrf.mxu0  ;;  %v1541_v0 = vpop.f32.mrf.mxu1 }
 0x223   : > { %v1244_v40 = vpop.f32.mrf.mxu2  ;;  %v1429_v9 = vadd.f32 %v1428_v15, %v3902_v21  ;;  %v1716_v61 = vpop.f32.mrf.mxu3  ;;  %v2862_v21 = vld [vmem:[%s4944_s3 + $0x428] sm:$0xff] }
 0x224   : > { %v4190_v7 = vadd.f32 %v1357_v27, %v1244_v40  ;;  %2890 = vmatpush.msra.mxu2 %v2862_v21  ;;  %2194 = vmatpush.msrb.mxu0 %v2862_v21  ;;  %v4212_v27 = vld [vmem:[#allocation2 + $0xc9] sm:$0xff] }
 0x225   : > { %v4192_v29 = vadd.f32 %v1541_v0, %v1429_v9  ;;  %1977 = vmatmul.f32.gmra.mxu0 %v1814_v41  ;;  %2090 = vmatmul.f32.gmra.mxu1 %v3967_v33  ;;  %v1816_v9 = vld [vmem:[#allocation2 + $0x50] sm:$0xff] }
 0x227   : > { %1650 = vmatmul.f32.gmra.mxu2 %v4195_v38  ;;  %1766 = vmatmul.f32.gmra.mxu3 %v3845_v57 }
 0x22a   : > { %v1431_v14 = vpop.f32.mrf.mxu0  ;;  %v1544_v33 = vpop.f32.mrf.mxu1 }
 0x22b   : > { %v1432_v45 = vadd.f32 %v1431_v14, %v3924_v55  ;;  %v1603_v62 = vpop.f32.mrf.mxu2  ;;  %v1719_v4 = vpop.f32.mrf.mxu3 }
 0x22c   : > { %v1604_v49 = vadd.f32 %v1603_v62, %v3866_v60 }
 0x22d   : > { %v4207_v63 = vadd.f32 %v1544_v33, %v1432_v45  ;;  %1980 = vmatmul.f32.gmra.mxu0 %v1815_v35  ;;  %2093 = vmatmul.f32.gmra.mxu1 %v3986_v34  ;;  %v1817_v45 = vld [vmem:[#allocation2 + $0x60] sm:$0xff] }
 0x22e   : > { %v4210_v57 = vadd.f32 %v1716_v61, %v1604_v49  ;;  %v4223_v61 = vld [vmem:[#allocation2 + $0xd9] sm:$0xff]  ;;  %v4240_v35 = vld [vmem:[#allocation2 + $0xe1] sm:$0xff] }
 0x22f   : > { %1653 = vmatmul.f32.gmra.mxu2 %v4212_v27  ;;  %1769 = vmatmul.f32.gmra.mxu3 %v3864_v12  ;;  %v2410_v12 = vld [vmem:[%s4946_s5 + $0x68] sm:$0xff] }
 0x230   : > { %2898 = vmatpush.msra.mxu3 %v2410_v12  ;;  %2419 = vmatpush.msrb.mxu1 %v2410_v12 }
 0x232   : > { %v1434_v23 = vpop.f32.mrf.mxu0  ;;  %v1547_v55 = vpop.f32.mrf.mxu1 }
 0x233   : > { %v1435_v15 = vadd.f32 %v1434_v23, %v3934_v25  ;;  %v1606_v0 = vpop.f32.mrf.mxu2  ;;  %v1722_v60 = vpop.f32.mrf.mxu3  ;;  %v5004_v25 = vld [vmem:[#allocation38_spill] sm:$0xff] }
 0x234   : > { %v1607_v40 = vadd.f32 %v1606_v0, %v3875_v36  ;;  %v2861_v36 = vld [vmem:[%s4944_s3 + $0x420] sm:$0xff]  ;;  %v1818_v0 = vld [vmem:[#allocation2 + $0x68] sm:$0xff] }
 0x235   : > { %v4218_v41 = vadd.f32 %v1547_v55, %v1435_v15  ;;  %1983 = vmatmul.f32.gmra.mxu0 %v1816_v9  ;;  %2096 = vmatmul.f32.gmra.mxu1 %v4005_v26 }
 0x236   : > { %v4221_v34 = vadd.f32 %v1719_v4, %v1607_v40  ;;  %2891 = vmatpush.msra.mxu2 %v2861_v36  ;;  %2195 = vmatpush.msrb.mxu0 %v2861_v36 }
 0x237   : > { %1656 = vmatmul.f32.gmra.mxu2 %v4223_v61  ;;  %1772 = vmatmul.f32.gmra.mxu3 %v5004_v25 }
 0x23a   : > { %v1437_v26 = vpop.f32.mrf.mxu0  ;;  %v1550_v13 = vpop.f32.mrf.mxu1 }
 0x23b   : > { %v1438_v21 = vadd.f32 %v1437_v26, %v3959_v22  ;;  %v1609_v14 = vpop.f32.mrf.mxu2  ;;  %v1725_v4 = vpop.f32.mrf.mxu3  ;;  %v1819_v26 = vld [vmem:[#allocation2 + $0x78] sm:$0xff] }
 0x23c   : > { %v1610_v33 = vadd.f32 %v1609_v14, %v3896_v10 }
 0x23d   : > { %v4235_v62 = vadd.f32 %v1550_v13, %v1438_v21  ;;  %1986 = vmatmul.f32.gmra.mxu0 %v1817_v45  ;;  %2099 = vmatmul.f32.gmra.mxu1 %v4024_v24  ;;  %v4268_v21 = vld [vmem:[#allocation2 + $0xf9] sm:$0xff] }
 0x23e   : > { %v4238_v49 = vadd.f32 %v1722_v60, %v1610_v33  ;;  %v4251_v60 = vld [vmem:[#allocation2 + $0xf1] sm:$0xff] }
 0x23f   : > { %1659 = vmatmul.f32.gmra.mxu2 %v4240_v35  ;;  %1775 = vmatmul.f32.gmra.mxu3 %v3894_v8  ;;  %v2409_v8 = vld [vmem:[%s4946_s5 + $0x60] sm:$0xff] }
 0x240   : > { %2899 = vmatpush.msra.mxu3 %v2409_v8  ;;  %2420 = vmatpush.msrb.mxu1 %v2409_v8 }
 0x242   : > { %v1440_v23 = vpop.f32.mrf.mxu0  ;;  %v1553_v22 = vpop.f32.mrf.mxu1 }
 0x243   : > { %v1441_v55 = vadd.f32 %v1440_v23, %v3972_v52  ;;  %v1612_v10 = vpop.f32.mrf.mxu2  ;;  %v1728_v52 = vpop.f32.mrf.mxu3  ;;  %v1820_v23 = vld [vmem:[#allocation2 + $0x80] sm:$0xff] }
 0x244   : > { %v1613_v15 = vadd.f32 %v1612_v10, %v3906_v48  ;;  %v2860_v48 = vld [vmem:[%s4944_s3 + $0x418] sm:$0xff] }
 0x245   : > { %v4246_v40 = vadd.f32 %v1553_v22, %v1441_v55  ;;  %1989 = vmatmul.f32.gmra.mxu0 %v1818_v0  ;;  %2102 = vmatmul.f32.gmra.mxu1 %v4055_v50  ;;  %v4279_v55 = vld [vmem:[#allocation2 + $0x109] sm:$0xff] }
 0x246   : > { %v4249_v24 = vadd.f32 %v1725_v4, %v1613_v15  ;;  %2892 = vmatpush.msra.mxu2 %v2860_v48  ;;  %2196 = vmatpush.msrb.mxu0 %v2860_v48  ;;  %v1821_v48 = vld [vmem:[#allocation2 + $0x90] sm:$0xff] }
 0x247   : > { %1662 = vmatmul.f32.gmra.mxu2 %v4251_v60  ;;  %1778 = vmatmul.f32.gmra.mxu3 %v3904_v43 }
 0x24a   : > { %v1443_v50 = vpop.f32.mrf.mxu0  ;;  %v1556_v9 = vpop.f32.mrf.mxu1 }
 0x24b   : > { %v1444_v12 = vadd.f32 %v1443_v50, %v3997_v30  ;;  %v1615_v25 = vpop.f32.mrf.mxu2  ;;  %v1731_v14 = vpop.f32.mrf.mxu3 }
 0x24c   : > { %v1616_v36 = vadd.f32 %v1615_v25, %v3928_v54  ;;  %v5006_v25 = vld [vmem:[#allocation40_spill] sm:$0xff] }
 0x24d   : > { %v4263_v13 = vadd.f32 %v1556_v9, %v1444_v12  ;;  %1992 = vmatmul.f32.gmra.mxu0 %v1819_v26  ;;  %2105 = vmatmul.f32.gmra.mxu1 %v4092_v17  ;;  %v4296_v12 = vld [vmem:[#allocation2 + $0x111] sm:$0xff] }
 0x24e   : > { %v4266_v43 = vadd.f32 %v1728_v52, %v1616_v36 }
 0x24f   : > { %1665 = vmatmul.f32.gmra.mxu2 %v4268_v21  ;;  %1781 = vmatmul.f32.gmra.mxu3 %v3926_v31  ;;  %v2408_v31 = vld [vmem:[%s4946_s5 + $0x58] sm:$0xff] }
 0x250   : > { %2900 = vmatpush.msra.mxu3 %v2408_v31  ;;  %2421 = vmatpush.msrb.mxu1 %v2408_v31  ;;  %v2858_v31 = vld [vmem:[%s4944_s3 + $0x408] sm:$0xff] }
 0x252   : > { %v1446_v33 = vpop.f32.mrf.mxu0  ;;  %v1559_v30 = vpop.f32.mrf.mxu1 }
 0x253   : > { %v1447_v45 = vadd.f32 %v1446_v33, %v4010_v5  ;;  %v1618_v54 = vpop.f32.mrf.mxu2  ;;  %v5005_v5 = vld [vmem:[#allocation39_spill] sm:$0xff]  ;;  %v1734_v8 = vpop.f32.mrf.mxu3 }
 0x254   : > { %v1619_v4 = vadd.f32 %v1618_v54, %v3938_v47  ;;  %v2859_v47 = vld [vmem:[%s4944_s3 + $0x410] sm:$0xff] }
 0x255   : > { %v4274_v22 = vadd.f32 %v1559_v30, %v1447_v45  ;;  %1995 = vmatmul.f32.gmra.mxu0 %v1820_v23  ;;  %2108 = vmatmul.f32.gmra.mxu1 %v4126_v3  ;;  %v1822_v30 = vld [vmem:[#allocation2 + $0x98] sm:$0xff]  ;;  %v2407_v23 = vld [vmem:[%s4946_s5 + $0x50] sm:$0xff] }
 0x256   : > { %v4277_v17 = vadd.f32 %v1731_v14, %v1619_v4  ;;  %2893 = vmatpush.msra.mxu2 %v2859_v47  ;;  %2197 = vmatpush.msrb.mxu0 %v2859_v47  ;;  %v4307_v4 = vld [vmem:[#allocation2 + $0x121] sm:$0xff] }
 0x257   : > { %1668 = vmatmul.f32.gmra.mxu2 %v4279_v55  ;;  %1784 = vmatmul.f32.gmra.mxu3 %v5005_v5 }
 0x258   : > { %2901 = vmatpush.msra.mxu3 %v2407_v23  ;;  %2894 = vmatpush.msra.mxu2 %v2858_v31 }
 0x259   : > { %2198 = vmatpush.msrb.mxu0 %v2858_v31  ;;  %2422 = vmatpush.msrb.mxu1 %v2407_v23 }
 0x25a   : > { %v1449_v3 = vpop.f32.mrf.mxu0  ;;  %v1562_v10 = vpop.f32.mrf.mxu1 }
 0x25b   : > { %v1450_v15 = vadd.f32 %v1449_v3, %v4035_v56  ;;  %v1621_v0 = vpop.f32.mrf.mxu2  ;;  %v1737_v54 = vpop.f32.mrf.mxu3 }
 0x25c   : > { %v1622_v52 = vadd.f32 %v1621_v0, %v3963_v11  ;;  %v5007_v11 = vld [vmem:[#allocation42_spill] sm:$0xff] }
 0x25d   : > { %v4291_v50 = vadd.f32 %v1562_v10, %v1450_v15  ;;  %1998 = vmatmul.f32.gmra.mxu0 %v1821_v48  ;;  %2111 = vmatmul.f32.gmra.mxu1 %v4142_v19  ;;  %v1823_v15 = vld [vmem:[#allocation2 + $0xa8] sm:$0xff] }
 0x25e   : > { %v4294_v9 = vadd.f32 %v1734_v8, %v1622_v52  ;;  %v4324_v8 = vld [vmem:[#allocation2 + $0x129] sm:$0xff]  ;;  %v5009_v52 = vld [vmem:[#allocation43_spill] sm:$0xff] }
 0x25f   : > { %1671 = vmatmul.f32.gmra.mxu2 %v4296_v12  ;;  %1787 = vmatmul.f32.gmra.mxu3 %v5006_v25 }
 0x262   : > { %v1452_v36 = vpop.f32.mrf.mxu0  ;;  %v1565_v56 = vpop.f32.mrf.mxu1 }
 0x263   : > { %v1453_v26 = vadd.f32 %v1452_v36, %v4072_v58  ;;  %v1624_v14 = vpop.f32.mrf.mxu2  ;;  %v5008_v58 = vld [vmem:[#allocation41_spill] sm:$0xff] }
 0x264   : > { %v1625_v33 = vadd.f32 %v1624_v14, %v5007_v11  ;;  %v2406_v11 = vld [vmem:[%s4946_s5 + $0x48] sm:$0xff] }
 0x265   : > { %v4302_v45 = vadd.f32 %v1565_v56, %v1453_v26  ;;  %2001 = vmatmul.f32.gmra.mxu0 %v1822_v30  ;;  %2114 = vmatmul.f32.gmra.mxu1 %v4159_v59  ;;  %v5010_v56 = vld [vmem:[#allocation45_spill] sm:$0xff]  ;;  %v1824_v26 = vld [vmem:[#allocation2 + $0xb0] sm:$0xff] }
 0x266   : > { %v4305_v19 = vadd.f32 %v1737_v54, %v1625_v33  ;;  %v5011_v33 = vld [vmem:[#allocation44_spill] sm:$0xff]  ;;  %2902 = vmatpush.msra.mxu3 %v2406_v11  ;;  %2423 = vmatpush.msrb.mxu1 %v2406_v11 }
 0x267   : > { %1674 = vmatmul.f32.gmra.mxu2 %v4307_v4  ;;  %1790 = vmatmul.f32.gmra.mxu3 %v5008_v58  ;;  %v5012_v58 = vld [vmem:[#allocation47_spill] sm:$0xff]  ;;  %v5015_v11 = vld [vmem:[#allocation48_spill] sm:$0xff] }
 0x26a   : > { %v1455_v59 = vpop.f32.mrf.mxu0  ;;  %v1568_v5 = vpop.f32.mrf.mxu1 }
 0x26b   : > { %v1456_v47 = vadd.f32 %v1455_v59, %v4112_v39  ;;  %v1627_v3 = vpop.f32.mrf.mxu2  ;;  %v1825_v59 = vld [vmem:[#allocation2 + $0xc0] sm:$0xff] }
 0x26c   : > { %v4319_v10 = vadd.f32 %v1627_v3, %v4001_v20  ;;  %v5013_v3 = vld [vmem:[#allocation46_spill] sm:$0xff] }
 0x26d   : > { %v4321_v0 = vadd.f32 %v1568_v5, %v1456_v47  ;;  %2004 = vmatmul.f32.gmra.mxu0 %v1823_v15  ;;  %2117 = vmatmul.f32.gmra.mxu1 %v4169_v6  ;;  %v4335_v6 = vld [vmem:[#allocation2 + $0x139] sm:$0xff]  ;;  %v4352_v47 = vld [vmem:[#allocation2 + $0x141] sm:$0xff] }
 0x26f   : > { %1677 = vmatmul.f32.gmra.mxu2 %v4324_v8  ;;  %1793 = vmatmul.f32.gmra.mxu3 %v5009_v52 }
 0x272   : > { %v1458_v48 = vpop.f32.mrf.mxu0  ;;  %v1571_v25 = vpop.f32.mrf.mxu1 }
 0x273   : > { %v1459_v39 = vadd.f32 %v1458_v48, %v4133_v28  ;;  %v1630_v36 = vpop.f32.mrf.mxu2  ;;  %v2857_v28 = vld [vmem:[%s4944_s3 + $0x400] sm:$0xff] }
 0x274   : > { %v4330_v20 = vadd.f32 %v1630_v36, %v5010_v56  ;;  %2895 = vmatpush.msra.mxu2 %v2857_v28  ;;  %2199 = vmatpush.msrb.mxu0 %v2857_v28  ;;  %v1826_v36 = vld [vmem:[#allocation2 + $0xc8] sm:$0xff] }
 0x275   : > { %v4332_v14 = vadd.f32 %v1571_v25, %v1459_v39  ;;  %2007 = vmatmul.f32.gmra.mxu0 %v1824_v26  ;;  %2120 = vmatmul.f32.gmra.mxu1 %v4185_v53  ;;  %v5014_v25 = vld [vmem:[#allocation49_spill] sm:$0xff]  ;;  %v2405_v26 = vld [vmem:[%s4946_s5 + $0x40] sm:$0xff] }
 0x276   : > { %2903 = vmatpush.msra.mxu3 %v2405_v26  ;;  %2424 = vmatpush.msrb.mxu1 %v2405_v26  ;;  %v1830_v26 = vld [vmem:[#allocation2 + $0xf8] sm:$0xff] }
 0x277   : > { %1680 = vmatmul.f32.gmra.mxu2 %v4335_v6  ;;  %1796 = vmatmul.f32.gmra.mxu3 %v5011_v33 }
 0x27a   : > { %v1461_v30 = vpop.f32.mrf.mxu0  ;;  %v1574_v53 = vpop.f32.mrf.mxu1 }
 0x27b   : > { %v1462_v54 = vadd.f32 %v1461_v30, %v4153_v1  ;;  %v1633_v23 = vpop.f32.mrf.mxu2 }
 0x27c   : > { %v4347_v31 = vadd.f32 %v1633_v23, %v5012_v58  ;;  %v4377_v23 = vld [vmem:[#allocation2 + $0x159] sm:$0xff] }
 0x27d   : > { %v4349_v5 = vadd.f32 %v1574_v53, %v1462_v54  ;;  %2010 = vmatmul.f32.gmra.mxu0 %v1825_v59  ;;  %2123 = vmatmul.f32.gmra.mxu1 %v4195_v38  ;;  %v4363_v38 = vld [vmem:[#allocation2 + $0x151] sm:$0xff] }
 0x27f   : > { %1683 = vmatmul.f32.gmra.mxu2 %v4352_v47  ;;  %1799 = vmatmul.f32.gmra.mxu3 %v5013_v3 }
 0x282   : > { %v1464_v15 = vpop.f32.mrf.mxu0  ;;  %v1577_v52 = vpop.f32.mrf.mxu1 }
 0x283   : > { %v1465_v1 = vadd.f32 %v1464_v15, %v4164_v46  ;;  %v1636_v48 = vpop.f32.mrf.mxu2  ;;  %v1828_v15 = vld [vmem:[#allocation2 + $0xe0] sm:$0xff] }
 0x284   : > { %v4358_v39 = vadd.f32 %v1636_v48, %v5014_v25  ;;  %v1829_v48 = vld [vmem:[#allocation2 + $0xf0] sm:$0xff] }
 0x285   : > { %v4360_v56 = vadd.f32 %v1577_v52, %v1465_v1  ;;  %2013 = vmatmul.f32.gmra.mxu0 %v1826_v36  ;;  %2126 = vmatmul.f32.gmra.mxu1 %v4212_v27  ;;  %v1827_v27 = vld [vmem:[#allocation2 + $0xd8] sm:$0xff] }
 0x287   : > { %1686 = vmatmul.f32.gmra.mxu2 %v4363_v38  ;;  %1802 = vmatmul.f32.gmra.mxu3 %v5015_v11  ;;  %v2403_v11 = vld [vmem:[%s4946_s5 + $0x30] sm:$0xff] }
 0x28a   : > { %v1467_v46 = vpop.f32.mrf.mxu0  ;;  %v1580_v33 = vpop.f32.mrf.mxu1 }
 0x28b   : > { %v1468_v28 = vadd.f32 %v1467_v46, %v4180_v32  ;;  %v1639_v30 = vpop.f32.mrf.mxu2 }
 0x28c   : > { %v4372_v53 = vadd.f32 %v1639_v30, %v4122_v2 }
 0x28d   : > { %v4374_v54 = vadd.f32 %v1580_v33, %v1468_v28  ;;  %2016 = vmatmul.f32.gmra.mxu0 %v1827_v27  ;;  %2129 = vmatmul.f32.gmra.mxu1 %v4223_v61  ;;  %v4388_v61 = vld [vmem:[#allocation2 + $0x169] sm:$0xff] }
 0x28e   : > { %v1879_v28 = vld [vmem:[#allocation2 + $0x4a] sm:$0xff] }
 0x28f   : > { %1689 = vmatmul.f32.gmra.mxu2 %v4377_v23  ;;  %1805 = vmatmul.f32.gmra.mxu3 %v4114_v42  ;;  %v2404_v42 = vld [vmem:[%s4946_s5 + $0x38] sm:$0xff] }
 0x290   : > { %2904 = vmatpush.msra.mxu3 %v2404_v42  ;;  %2425 = vmatpush.msrb.mxu1 %v2404_v42 }
 0x292   : > { %v1470_v58 = vpop.f32.mrf.mxu0  ;;  %v1583_v3 = vpop.f32.mrf.mxu1  ;;  %2905 = vmatpush.msra.mxu3 %v2403_v11  ;;  %2426 = vmatpush.msrb.mxu1 %v2403_v11  ;;  %v1835_v11 = vld [vmem:[#allocation2 + $0x138] sm:$0xff] }
 0x293   : > { %v1471_v59 = vadd.f32 %v1470_v58, %v4190_v7  ;;  %v1642_v32 = vpop.f32.mrf.mxu2  ;;  %v1832_v58 = vld [vmem:[#allocation2 + $0x110] sm:$0xff] }
 0x294   : > { %v4383_v2 = vadd.f32 %v1642_v32, %v4138_v51 }
 0x295   : > { %v4385_v52 = vadd.f32 %v1583_v3, %v1471_v59  ;;  %2019 = vmatmul.f32.gmra.mxu0 %v1828_v15  ;;  %2132 = vmatmul.f32.gmra.mxu1 %v4240_v35  ;;  %v4401_v35 = vld [vmem:[#allocation2 + $0x171] sm:$0xff]  ;;  %v1881_v15 = vld [vmem:[#allocation2 + $0x62] sm:$0xff] }
 0x296   : > { %v1880_v59 = vld [vmem:[#allocation2 + $0x52] sm:$0xff] }
 0x297   : > { %1692 = vmatmul.f32.gmra.mxu2 %v4388_v61  ;;  %1808 = vmatmul.f32.gmra.mxu3 %v4135_v18 }
 0x29a   : > { %v4395_v51 = vpop.f32.mrf.mxu0 }
 0x29b   : > { %v1645_v7 = vpop.f32.mrf.mxu2 }
 0x29c   : > { %v4398_v1 = vadd.f32 %v1645_v7, %v4156_v37  ;;  %v1878_v37 = vld [vmem:[#allocation2 + $0x3a] sm:$0xff] }
 0x29d   : > { %2022 = vmatmul.f32.gmra.mxu0 %v1829_v48  ;;  %2135 = vmatmul.f32.gmra.mxu1 %v4251_v60  ;;  %v1834_v48 = vld [vmem:[#allocation2 + $0x128] sm:$0xff] }
 0x29f   : > { %1695 = vmatmul.f32.gmra.mxu2 %v4401_v35 }
 0x2a2   : > { %v4404_v25 = vpop.f32.mrf.mxu0 }
 0x2a3   : > { %v1648_v36 = vpop.f32.mrf.mxu2 }
 0x2a4   : > { %v4407_v18 = vadd.f32 %v1648_v36, %v4166_v44  ;;  %v1831_v44 = vld [vmem:[#allocation2 + $0x108] sm:$0xff] }
 0x2a5   : > { %2025 = vmatmul.f32.gmra.mxu0 %v1830_v26  ;;  %2138 = vmatmul.f32.gmra.mxu1 %v4268_v21  ;;  %v1882_v36 = vld [vmem:[#allocation2 + $0x6a] sm:$0xff] }
 0x2a7   : > { %2203 = vmatmul.f32.vlgmr.msra.gmra.mxu2 %v1878_v37 }
 0x2aa   : > { %v4413_v60 = vpop.f32.mrf.mxu0 }
 0x2ab   : > { %v1651_v46 = vpop.f32.mrf.mxu2 }
 0x2ac   : > { %v4416_v33 = vadd.f32 %v1651_v46, %v4182_v16  ;;  %v2402_v16 = vld [vmem:[%s4946_s5 + $0x28] sm:$0xff] }
 0x2ad   : > { %2028 = vmatmul.f32.gmra.mxu0 %v1831_v44  ;;  %2141 = vmatmul.f32.gmra.mxu1 %v4279_v55 }
 0x2ae   : > { %2906 = vmatpush.msra.mxu3 %v2402_v16  ;;  %2427 = vmatpush.msrb.mxu1 %v2402_v16 }
 0x2af   : > { %2206 = vmatmul.f32.gmra.mxu2 %v1879_v28  ;;  %v4455_v28 = vpop.f32.mrf.mxu1 }
 0x2b2   : > { %v4419_v21 = vpop.f32.mrf.mxu0 }
 0x2b3   : > { %v1654_v30 = vpop.f32.mrf.mxu2 }
 0x2b4   : > { %v4422_v27 = vadd.f32 %v1654_v30, %v4192_v29  ;;  %v1833_v29 = vld [vmem:[#allocation2 + $0x120] sm:$0xff] }
 0x2b5   : > { %2031 = vmatmul.f32.gmra.mxu0 %v1832_v58  ;;  %2144 = vmatmul.f32.gmra.mxu1 %v4296_v12 }
 0x2b6   : > { %5016 = vst [vmem:[#allocation38_spill] sm:$0xff] %v4422_v27 }
 0x2b7   : > { %2209 = vmatmul.f32.gmra.mxu2 %v1880_v59  ;;  %v1836_v59 = vld [vmem:[#allocation2 + $0x140] sm:$0xff] }
 0x2ba   : > { %v4428_v55 = vpop.f32.mrf.mxu0 }
 0x2bb   : > { %v1657_v32 = vpop.f32.mrf.mxu2 }
 0x2bc   : > { %v4431_v3 = vadd.f32 %v1657_v32, %v4207_v63  ;;  %v2401_v63 = vld [vmem:[%s4946_s5 + $0x20] sm:$0xff] }
 0x2bd   : > { %2034 = vmatmul.f32.gmra.mxu0 %v1833_v29  ;;  %2147 = vmatmul.f32.gmra.mxu1 %v4307_v4  ;;  %v4443_v4 = vpop.f32.mrf.mxu3 }
 0x2be   : > { %5017 = vst [vmem:[#allocation39_spill] sm:$0xff] %v4431_v3  ;;  %2907 = vmatpush.msra.mxu3 %v2401_v63  ;;  %2428 = vmatpush.msrb.mxu1 %v2401_v63 }
 0x2bf   : > { %2212 = vmatmul.f32.gmra.mxu2 %v1881_v15  ;;  %v1837_v15 = vld [vmem:[#allocation2 + $0x150] sm:$0xff] }
 0x2c2   : > { %v4434_v12 = vpop.f32.mrf.mxu0 }
 0x2c3   : > { %v1660_v42 = vpop.f32.mrf.mxu2 }
 0x2c4   : > { %v4437_v7 = vadd.f32 %v1660_v42, %v4218_v41  ;;  %v4471_v42 = vpop.f32.mrf.mxu1 }
 0x2c5   : > { %2037 = vmatmul.f32.gmra.mxu0 %v1834_v48  ;;  %2150 = vmatmul.f32.gmra.mxu1 %v4324_v8  ;;  %v1883_v8 = vld [vmem:[#allocation2 + $0x7a] sm:$0xff]  ;;  %v4451_v46 = vpop.f32.mrf.mxu3 }
 0x2c6   : > { %5018 = vst [vmem:[#allocation40_spill] sm:$0xff] %v4437_v7 }
 0x2c7   : > { %2215 = vmatmul.f32.gmra.mxu2 %v1882_v36 }
 0x2ca   : > { %v4445_v26 = vpop.f32.mrf.mxu0 }
 0x2cb   : > { %v1663_v37 = vpop.f32.mrf.mxu2 }
 0x2cc   : > { %v4448_v41 = vadd.f32 %v1663_v37, %v4235_v62  ;;  %v1884_v62 = vld [vmem:[#allocation2 + $0x82] sm:$0xff]  ;;  %v1838_v37 = vld [vmem:[#allocation2 + $0x158] sm:$0xff] }
 0x2cd   : > { %2040 = vmatmul.f32.gmra.mxu0 %v1835_v11  ;;  %2153 = vmatmul.f32.gmra.mxu1 %v4335_v6  ;;  %v2400_v6 = vld [vmem:[%s4946_s5 + $0x18] sm:$0xff]  ;;  %v4466_v29 = vpop.f32.mrf.mxu3  ;;  %v1886_v11 = vld [vmem:[#allocation2 + $0x9a] sm:$0xff] }
 0x2ce   : > { %5019 = vst [vmem:[#allocation42_spill] sm:$0xff] %v4448_v41  ;;  %2908 = vmatpush.msra.mxu3 %v2400_v6  ;;  %2429 = vmatpush.msrb.mxu1 %v2400_v6 }
 0x2cf   : > { %2218 = vmatmul.f32.gmra.mxu2 %v1883_v8  ;;  %v2399_v8 = vld [vmem:[%s4946_s5 + $0x10] sm:$0xff] }
 0x2d0   : > { %2909 = vmatpush.msra.mxu3 %v2399_v8  ;;  %2430 = vmatpush.msrb.mxu1 %v2399_v8 }
 0x2d2   : > { %v4453_v44 = vpop.f32.mrf.mxu0 }
 0x2d3   : > { %v1666_v30 = vpop.f32.mrf.mxu2 }
 0x2d4   : > { %v4458_v58 = vadd.f32 %v1666_v30, %v4246_v40 }
 0x2d5   : > { %2043 = vmatmul.f32.gmra.mxu0 %v1836_v59  ;;  %2156 = vmatmul.f32.gmra.mxu1 %v4352_v47  ;;  %v1885_v47 = vld [vmem:[#allocation2 + $0x92] sm:$0xff] }
 0x2d6   : > { %5020 = vst [vmem:[#allocation41_spill] sm:$0xff] %v4458_v58 }
 0x2d7   : > { %2221 = vmatmul.f32.gmra.mxu2 %v1884_v62  ;;  %v1839_v62 = vld [vmem:[#allocation2 + $0x168] sm:$0xff] }
 0x2da   : > { %v4464_v16 = vpop.f32.mrf.mxu0 }
 0x2db   : > { %v1669_v32 = vpop.f32.mrf.mxu2 }
 0x2dc   : > { %v4469_v40 = vadd.f32 %v1669_v32, %v4263_v13  ;;  %v4480_v13 = vpop.f32.mrf.mxu3 }
 0x2dd   : > { %2046 = vmatmul.f32.gmra.mxu0 %v1837_v15  ;;  %2159 = vmatmul.f32.gmra.mxu1 %v4363_v38  ;;  %v4485_v38 = vpop.f32.mrf.mxu1 }
 0x2de   : > { %5021 = vst [vmem:[#allocation43_spill] sm:$0xff] %v4469_v40 }
 0x2df   : > { %2224 = vmatmul.f32.gmra.mxu2 %v1885_v47 }
 0x2e2   : > { %v4474_v48 = vpop.f32.mrf.mxu0 }
 0x2e3   : > { %v1672_v36 = vpop.f32.mrf.mxu2 }
 0x2e4   : > { %v4477_v63 = vadd.f32 %v1672_v36, %v4274_v22  ;;  %v4493_v6 = vpop.f32.mrf.mxu3 }
 0x2e5   : > { %2049 = vmatmul.f32.gmra.mxu0 %v1838_v37  ;;  %2162 = vmatmul.f32.gmra.mxu1 %v4377_v23  ;;  %v1887_v23 = vld [vmem:[#allocation2 + $0xaa] sm:$0xff]  ;;  %v4495_v32 = vpop.f32.mrf.mxu1 }
 0x2e6   : > { %5022 = vst [vmem:[#allocation45_spill] sm:$0xff] %v4477_v63  ;;  %v1840_v37 = vld [vmem:[#allocation2 + $0x170] sm:$0xff] }
 0x2e7   : > { %2227 = vmatmul.f32.gmra.mxu2 %v1886_v11 }
 0x2ea   : > { %v4487_v30 = vpop.f32.mrf.mxu0 }
 0x2eb   : > { %v1675_v22 = vpop.f32.mrf.mxu2 }
 0x2ec   : > { %v4490_v59 = vadd.f32 %v1675_v22, %v4291_v50  ;;  %v1888_v50 = vld [vmem:[#allocation2 + $0xb2] sm:$0xff]  ;;  %v4506_v11 = vpop.f32.mrf.mxu3 }
 0x2ed   : > { %2052 = vmatmul.f32.gmra.mxu0 %v1839_v62  ;;  %2165 = vmatmul.f32.gmra.mxu1 %v4388_v61  ;;  %v2398_v61 = vld [vmem:[%s4946_s5 + $0x8] sm:$0xff]  ;;  %v4510_v22 = vpop.f32.mrf.mxu1 }
 0x2ee   : > { %5023 = vst [vmem:[#allocation44_spill] sm:$0xff] %v4490_v59  ;;  %2910 = vmatpush.msra.mxu3 %v2398_v61  ;;  %2431 = vmatpush.msrb.mxu1 %v2398_v61  ;;  %v1874_v59 = vld [vmem:[#allocation2 + $0x189] sm:$0xff] }
 0x2ef   : > { %2230 = vmatmul.f32.gmra.mxu2 %v1887_v23  ;;  %v1841_v23 = vld [vmem:[#allocation2 + $0x180] sm:$0xff] }
 0x2f2   : > { %v4497_v15 = vpop.f32.mrf.mxu0 }
 0x2f3   : > { %v1678_v47 = vpop.f32.mrf.mxu2 }
 0x2f4   : > { %v4500_v36 = vadd.f32 %v1678_v47, %v4302_v45  ;;  %v1889_v47 = vld [vmem:[#allocation2 + $0xc2] sm:$0xff]  ;;  %v4520_v63 = vpop.f32.mrf.mxu3 }
 0x2f5   : > { %2055 = vmatmul.f32.gmra.mxu0 %v1840_v37  ;;  %2168 = vmatmul.f32.gmra.mxu1 %v4401_v35  ;;  %v1873_v35 = vld [vmem:[#allocation2 + $0x181] sm:$0xff]  ;;  %v4522_v40 = vpop.f32.mrf.mxu1 }
 0x2f6   : > { %5024 = vst [vmem:[#allocation47_spill] sm:$0xff] %v4500_v36  ;;  %v1842_v36 = vld [vmem:[#allocation2 + $0x188] sm:$0xff] }
 0x2f7   : > { %2233 = vmatmul.f32.gmra.mxu2 %v1888_v50 }
 0x2fa   : > { %v4508_v8 = vpop.f32.mrf.mxu0 }
 0x2fb   : > { %v1681_v45 = vpop.f32.mrf.mxu2 }
 0x2fc   : > { %v4513_v62 = vadd.f32 %v1681_v45, %v4321_v0  ;;  %v1890_v0 = vld [vmem:[#allocation2 + $0xca] sm:$0xff]  ;;  %v2397_v45 = vld [vmem:[%s4946_s5] sm:$0xff] }
 0x2fd   : > { %2058 = vmatmul.f32.gmra.mxu0 %v1841_v23  ;;  %2171 = vmatmul.f32.gmra.mxu1 %v1873_v35  ;;  %v4546_v41 = vpop.f32.mrf.mxu1 }
 0x2fe   : > { %5025 = vst [vmem:[#allocation46_spill] sm:$0xff] %v4513_v62  ;;  %2911 = vmatpush.msra.mxu3 %v2397_v45  ;;  %2432 = vmatpush.msrb.mxu1 %v2397_v45 }
 0x2ff   : > { %2236 = vmatmul.f32.gmra.mxu2 %v1889_v47  ;;  %v2959_v47 = vld [vmem:[#allocation2] sm:$0xff] }
 0x302   : > { %v4515_v37 = vpop.f32.mrf.mxu0 }
 0x303   : > { %v1684_v50 = vpop.f32.mrf.mxu2 }
 0x304   : > { %v4518_v61 = vadd.f32 %v1684_v50, %v4332_v14  ;;  %v1891_v50 = vld [vmem:[#allocation2 + $0xda] sm:$0xff] }
 0x305   : > { %2061 = vmatmul.f32.gmra.mxu0 %v1842_v36  ;;  %2174 = vmatmul.f32.gmra.mxu1 %v1874_v59 }
 0x306   : > { %5026 = vst [vmem:[#allocation49_spill] sm:$0xff] %v4518_v61  ;;  %v4532_v61 = vpop.f32.mrf.mxu3 }
 0x307   : > { %2239 = vmatmul.f32.gmra.mxu2 %v1890_v0  ;;  %v1892_v0 = vld [vmem:[#allocation2 + $0xe2] sm:$0xff] }
 0x30a   : > { %v4527_v23 = vpop.f32.mrf.mxu0 }
 0x30b   : > { %v1687_v14 = vpop.f32.mrf.mxu2 }
 0x30c   : > { %v4530_v35 = vadd.f32 %v1687_v14, %v4349_v5 }
 0x30d   : > { %2064 = vmatmul.f32.gmra.mxu0 %v2959_v47 }
 0x30e   : > { %5027 = vst [vmem:[#allocation48_spill] sm:$0xff] %v4530_v35  ;;  %v4539_v45 = vpop.f32.mrf.mxu3  ;;  %v1877_v35 = vld [vmem:[#allocation2 + $0x32] sm:$0xff] }
 0x30f   : > { %2242 = vmatmul.f32.gmra.mxu2 %v1891_v50  ;;  %v1893_v50 = vld [vmem:[#allocation2 + $0xf2] sm:$0xff] }
 0x312   : > { %v4534_v59 = vpop.f32.mrf.mxu0 }
 0x313   : > { %v1690_v36 = vpop.f32.mrf.mxu2 }
 0x314   : > { %v4537_v62 = vadd.f32 %v1690_v36, %v4360_v56 }
 0x315   : > { %2067 = vmatmul.f32.gmra.mxu0 %v2959_v47 }
 0x316   : > { %5028 = vst [vmem:[#allocation50_spill] sm:$0xff] %v4537_v62  ;;  %v4550_v56 = vpop.f32.mrf.mxu3  ;;  %v4555_v62 = vpop.f32.mrf.mxu1 }
 0x317   : > { %2245 = vmatmul.f32.gmra.mxu2 %v1892_v0  ;;  %5030 = vst [vmem:[#allocation52_spill] sm:$0xff] %v4550_v56  ;;  %v1894_v0 = vld [vmem:[#allocation2 + $0xfa] sm:$0xff] }
 0x31a   : > { %v4541_v58 = vpop.f32.mrf.mxu0 }
 0x31b   : > { %v1693_v5 = vpop.f32.mrf.mxu2 }
 0x31c   : > { %v4544_v14 = vadd.f32 %v1693_v5, %v4374_v54  ;;  %v2092_v54 = vadd.f32 %v4471_v42, %v4404_v25  ;;  %v2095_v25 = vadd.f32 %v4485_v38, %v4413_v60 }
 0x31d   : > { %2200 = vmatmul.f32.vlgmr.msrb.gmra.mxu0 %v1877_v35 }
 0x31e   : > { %5029 = vst [vmem:[#allocation51_spill] sm:$0xff] %v4544_v14  ;;  %v4566_v3 = vpop.f32.mrf.mxu3 }
 0x31f   : > { %2248 = vmatmul.f32.gmra.mxu2 %v1893_v50  ;;  %v4564_v50 = vld [vmem:[%s4945_s4] ss:$0 sm:$0xff]  ;;  %5033 = vst [vmem:[#allocation55_spill] sm:$0xff] %v4566_v3 }
 0x320   : > { %v1896_v3 = vld [vmem:[#allocation2 + $0x112] sm:$0xff] }
 0x322   : > { %v4548_v7 = vpop.f32.mrf.mxu0 }
 0x323   : > { %v1696_v47 = vpop.f32.mrf.mxu2 }
 0x324   : > { %v4553_v36 = vadd.f32 %v1696_v47, %v4385_v52  ;;  %v1895_v47 = vld [vmem:[#allocation2 + $0x10a] sm:$0xff] }
 0x326   : > { %5031 = vst [vmem:[#allocation53_spill] sm:$0xff] %v4553_v36  ;;  %v4570_v36 = vpop.f32.mrf.mxu1  ;;  %v4577_v27 = vpop.f32.mrf.mxu3 }
 0x327   : > { %2251 = vmatmul.f32.gmra.mxu2 %v1894_v0 }
 0x32a   : > { %v4559_v5 = vpop.f32.mrf.mxu0 }
 0x32b   : > { %5032 = vst [vmem:[#allocation54_spill] sm:$0xff] %v4559_v5  ;;  %v2204_v35 = vpop.f32.mrf.mxu2 }
 0x32c   : > { %v2205_v14 = vadd.f32 %v2204_v35, %v2092_v54 }
 0x32e   : > { %v2298_v52 = vadd.f32 %v2205_v14, %v4221_v34  ;;  %v2098_v14 = vadd.f32 %v4495_v32, %v4419_v21  ;;  %v4584_v38 = vpop.f32.mrf.mxu1 }
 0x32f   : > { %2254 = vmatmul.f32.gmra.mxu2 %v1895_v47 }
 0x330   : > { %v2334_v0 = vadd.f32 %v4564_v50, %v2298_v52 }
 0x332   : > { %v2366_v42 = vmax.f32 %v2334_v0, 0.0  ;;  %v4574_v54 = vpop.f32.mrf.mxu0 }
 0x333   : > { %v2207_v35 = vpop.f32.mrf.mxu2 }
 0x334   : > { %v2208_v5 = vadd.f32 %v2207_v35, %v2095_v25  ;;  %2436 = vmatmul.f32.vlgmr.msra.gmra.mxu3 %v2366_v42 }
 0x336   : > { %v2299_v56 = vadd.f32 %v2208_v5, %v4238_v49  ;;  %v1897_v49 = vld [vmem:[#allocation2 + $0x122] sm:$0xff] }
 0x337   : > { %2257 = vmatmul.f32.gmra.mxu2 %v1896_v3  ;;  %v4588_v3 = vpop.f32.mrf.mxu3 }
 0x338   : > { %v2335_v34 = vadd.f32 %v4564_v50, %v2299_v56  ;;  %v2101_v56 = vadd.f32 %v4510_v22, %v4428_v55 }
 0x33a   : > { %v4582_v52 = vpop.f32.mrf.mxu0  ;;  %v2367_v60 = vmax.f32 %v2335_v34, 0.0  ;;  %v4594_v34 = vpop.f32.mrf.mxu1 }
 0x33b   : > { %v2210_v47 = vpop.f32.mrf.mxu2 }
 0x33c   : > { %v2211_v0 = vadd.f32 %v2210_v47, %v2098_v14  ;;  %2439 = vmatmul.f32.gmra.mxu3 %v2367_v60  ;;  %v2104_v47 = vadd.f32 %v4522_v40, %v4434_v12 }
 0x33e   : > { %v2300_v25 = vadd.f32 %v2211_v0, %v4249_v24  ;;  %v1898_v24 = vld [vmem:[#allocation2 + $0x12a] sm:$0xff] }
 0x33f   : > { %2260 = vmatmul.f32.gmra.mxu2 %v1897_v49  ;;  %v4602_v22 = vpop.f32.mrf.mxu3 }
 0x340   : > { %v2336_v5 = vadd.f32 %v4564_v50, %v2300_v25 }
 0x342   : > { %v4592_v21 = vpop.f32.mrf.mxu0  ;;  %v2368_v32 = vmax.f32 %v2336_v5, 0.0 }
 0x343   : > { %v2213_v42 = vpop.f32.mrf.mxu2 }
 0x344   : > { %v2214_v35 = vadd.f32 %v2213_v42, %v2101_v56  ;;  %2442 = vmatmul.f32.gmra.mxu3 %v2368_v32  ;;  %v1899_v56 = vld [vmem:[#allocation2 + $0x13a] sm:$0xff]  ;;  %v4605_v32 = vpop.f32.mrf.mxu1  ;;  %v2107_v42 = vadd.f32 %v4546_v41, %v4445_v26 }
 0x346   : > { %v2301_v14 = vadd.f32 %v2214_v35, %v4266_v43 }
 0x347   : > { %2263 = vmatmul.f32.gmra.mxu2 %v1898_v24  ;;  %v4612_v24 = vpop.f32.mrf.mxu3 }
 0x348   : > { %v2337_v60 = vadd.f32 %v4564_v50, %v2301_v14 }
 0x34a   : > { %v4600_v0 = vpop.f32.mrf.mxu0  ;;  %v2369_v55 = vmax.f32 %v2337_v60, 0.0 }
 0x34b   : > { %v2216_v25 = vpop.f32.mrf.mxu2 }
 0x34c   : > { %v2217_v49 = vadd.f32 %v2216_v25, %v2104_v47  ;;  %2445 = vmatmul.f32.gmra.mxu3 %v2369_v55  ;;  %v4616_v55 = vpop.f32.mrf.mxu1  ;;  %v2110_v25 = vadd.f32 %v4555_v62, %v4453_v44 }
 0x34e   : > { %v2302_v5 = vadd.f32 %v2217_v49, %v4277_v17  ;;  %v1900_v17 = vld [vmem:[#allocation2 + $0x142] sm:$0xff] }
 0x34f   : > { %2266 = vmatmul.f32.gmra.mxu2 %v1899_v56 }
 0x350   : > { %v2338_v43 = vadd.f32 %v4564_v50, %v2302_v5 }
 0x352   : > { %v4610_v12 = vpop.f32.mrf.mxu0  ;;  %v2370_v40 = vmax.f32 %v2338_v43, 0.0  ;;  %v1901_v43 = vld [vmem:[#allocation2 + $0x152] sm:$0xff] }
 0x353   : > { %v2219_v35 = vpop.f32.mrf.mxu2 }
 0x354   : > { %v2220_v14 = vadd.f32 %v2219_v35, %v2107_v42  ;;  %2448 = vmatmul.f32.gmra.mxu3 %v2370_v40  ;;  %v4623_v42 = vpop.f32.mrf.mxu3  ;;  %v2113_v40 = vadd.f32 %v4570_v36, %v4464_v16  ;;  %v4630_v62 = vpop.f32.mrf.mxu1  ;;  %v2116_v16 = vadd.f32 %v4584_v38, %v4474_v48 }
 0x356   : > { %v2303_v60 = vadd.f32 %v2220_v14, %v4294_v9 }
 0x357   : > { %2269 = vmatmul.f32.gmra.mxu2 %v1900_v17 }
 0x358   : > { %v2339_v47 = vadd.f32 %v4564_v50, %v2303_v60  ;;  %v1741_v60 = vadd.f32 %v4443_v4, %v4319_v10 }
 0x35a   : > { %v4620_v26 = vpop.f32.mrf.mxu0  ;;  %v2371_v41 = vmax.f32 %v2339_v47, 0.0  ;;  %v1902_v47 = vld [vmem:[#allocation2 + $0x15a] sm:$0xff] }
 0x35b   : > { %v2222_v49 = vpop.f32.mrf.mxu2 }
 0x35c   : > { %v2223_v5 = vadd.f32 %v2222_v49, %v2110_v25  ;;  %2451 = vmatmul.f32.gmra.mxu3 %v2371_v41  ;;  %v4635_v41 = vpop.f32.mrf.mxu3  ;;  %v2130_v4 = vpop.f32.mrf.mxu1 }
 0x35e   : > { %v2304_v56 = vadd.f32 %v2223_v5, %v4305_v19 }
 0x35f   : > { %2272 = vmatmul.f32.gmra.mxu2 %v1901_v43 }
 0x360   : > { %v2340_v9 = vadd.f32 %v4564_v50, %v2304_v56  ;;  %v1744_v56 = vadd.f32 %v4451_v46, %v4330_v20  ;;  %v1747_v20 = vadd.f32 %v4466_v29, %v4347_v31  ;;  %v1750_v31 = vadd.f32 %v4480_v13, %v4358_v39 }
 0x361   : > { %v1753_v39 = vadd.f32 %v4493_v6, %v4372_v53  ;;  %v1756_v53 = vadd.f32 %v4506_v11, %v4383_v2  ;;  %v1908_v2 = vld [vmem:[#allocation2 + $0x1a2] sm:$0xff] }
 0x362   : > { %v4628_v35 = vpop.f32.mrf.mxu0  ;;  %v2372_v44 = vmax.f32 %v2340_v9, 0.0  ;;  %v1903_v9 = vld [vmem:[#allocation2 + $0x16a] sm:$0xff] }
 0x363   : > { %v2225_v14 = vpop.f32.mrf.mxu2 }
 0x364   : > { %v2226_v17 = vadd.f32 %v2225_v14, %v2113_v40  ;;  %2454 = vmatmul.f32.gmra.mxu3 %v2372_v44  ;;  %v2119_v44 = vadd.f32 %v4594_v34, %v4487_v30  ;;  %v4648_v38 = vpop.f32.mrf.mxu3  ;;  %v2122_v30 = vadd.f32 %v4605_v32, %v4497_v15  ;;  %v2125_v15 = vadd.f32 %v4616_v55, %v4508_v8 }
 0x366   : > { %v2305_v19 = vadd.f32 %v2226_v17, %v1741_v60  ;;  %v1875_v17 = vld [vmem:[#allocation2 + $0x199] sm:$0xff] }
 0x367   : > { %2275 = vmatmul.f32.gmra.mxu2 %v1902_v47  ;;  %2177 = vmatmul.f32.gmra.mxu1 %v1875_v17  ;;  %v1904_v47 = vld [vmem:[#allocation2 + $0x172] sm:$0xff] }
 0x368   : > { %v2341_v25 = vadd.f32 %v4564_v50, %v2305_v19 }
 0x36a   : > { %v4639_v36 = vpop.f32.mrf.mxu0  ;;  %v2373_v49 = vmax.f32 %v2341_v25, 0.0  ;;  %v2133_v25 = vpop.f32.mrf.mxu1 }
 0x36b   : > { %v2228_v5 = vpop.f32.mrf.mxu2 }
 0x36c   : > { %v2229_v10 = vadd.f32 %v2228_v5, %v2116_v16  ;;  %2457 = vmatmul.f32.gmra.mxu3 %v2373_v49 }
 0x36e   : > { %v2306_v43 = vadd.f32 %v2229_v10, %v1744_v56  ;;  %v1876_v56 = vld [vmem:[#allocation2 + $0x1a1] sm:$0xff]  ;;  %v4659_v10 = vpop.f32.mrf.mxu3 }
 0x36f   : > { %2278 = vmatmul.f32.gmra.mxu2 %v1903_v9  ;;  %2180 = vmatmul.f32.gmra.mxu1 %v1876_v56  ;;  %v1905_v9 = vld [vmem:[#allocation2 + $0x182] sm:$0xff]  ;;  %v2131_v56 = vadd.f32 %v2130_v4, %v4527_v23  ;;  %v2134_v23 = vadd.f32 %v2133_v25, %v4534_v59 }
 0x370   : > { %v2342_v40 = vadd.f32 %v4564_v50, %v2306_v43 }
 0x372   : > { %v4646_v14 = vpop.f32.mrf.mxu0  ;;  %v2374_v48 = vmax.f32 %v2342_v40, 0.0 }
 0x373   : > { %v2231_v60 = vpop.f32.mrf.mxu2 }
 0x374   : > { %v2232_v46 = vadd.f32 %v2231_v60, %v2119_v44  ;;  %2460 = vmatmul.f32.gmra.mxu3 %v2374_v48  ;;  %v2136_v44 = vpop.f32.mrf.mxu1 }
 0x375   : > { %v2137_v59 = vadd.f32 %v2136_v44, %v4541_v58  ;;  %v5034_v58 = vld [vmem:[#allocation38_spill] sm:$0xff]  ;;  %v5035_v44 = vld [vmem:[#allocation52_spill] sm:$0xff] }
 0x376   : > { %v2307_v19 = vadd.f32 %v2232_v46, %v1747_v20  ;;  %v1906_v46 = vld [vmem:[#allocation2 + $0x18a] sm:$0xff]  ;;  %v4668_v17 = vpop.f32.mrf.mxu3 }
 0x377   : > { %2281 = vmatmul.f32.gmra.mxu2 %v1904_v47  ;;  %v2128_v47 = vadd.f32 %v4630_v62, %v4515_v37 }
 0x378   : > { %v2343_v16 = vadd.f32 %v4564_v50, %v2307_v19 }
 0x37a   : > { %v4655_v34 = vpop.f32.mrf.mxu0  ;;  %v2375_v49 = vmax.f32 %v2343_v16, 0.0 }
 0x37b   : > { %v2234_v5 = vpop.f32.mrf.mxu2 }
 0x37c   : > { %v2235_v29 = vadd.f32 %v2234_v5, %v2122_v30  ;;  %2463 = vmatmul.f32.gmra.mxu3 %v2375_v49  ;;  %v2139_v16 = vpop.f32.mrf.mxu1  ;;  %v1907_v49 = vld [vmem:[#allocation2 + $0x19a] sm:$0xff] }
 0x37e   : > { %v2308_v43 = vadd.f32 %v2235_v29, %v1750_v31  ;;  %v4678_v29 = vpop.f32.mrf.mxu3 }
 0x37f   : > { %2284 = vmatmul.f32.gmra.mxu2 %v1905_v9  ;;  %v1759_v9 = vadd.f32 %v4520_v63, %v4398_v1  ;;  %v1762_v1 = vadd.f32 %v4532_v61, %v4407_v18 }
 0x380   : > { %v2344_v40 = vadd.f32 %v4564_v50, %v2308_v43 }
 0x382   : > { %v4664_v32 = vpop.f32.mrf.mxu0  ;;  %v2376_v48 = vmax.f32 %v2344_v40, 0.0 }
 0x383   : > { %v2237_v60 = vpop.f32.mrf.mxu2 }
 0x384   : > { %v2238_v13 = vadd.f32 %v2237_v60, %v2125_v15  ;;  %2466 = vmatmul.f32.gmra.mxu3 %v2376_v48  ;;  %v2142_v11 = vpop.f32.mrf.mxu1  ;;  %v2089_v60 = vadd.f32 %v4455_v28, %v4395_v51 }
 0x386   : > { %v2309_v20 = vadd.f32 %v2238_v13, %v1753_v39  ;;  %v4689_v13 = vpop.f32.mrf.mxu3 }
 0x387   : > { %2287 = vmatmul.f32.gmra.mxu2 %v1906_v46 }
 0x388   : > { %v2345_v19 = vadd.f32 %v4564_v50, %v2309_v20 }
 0x38a   : > { %v4673_v8 = vpop.f32.mrf.mxu0  ;;  %v2377_v55 = vmax.f32 %v2345_v19, 0.0 }
 0x38b   : > { %v2240_v30 = vpop.f32.mrf.mxu2 }
 0x38c   : > { %v2241_v6 = vadd.f32 %v2240_v30, %v2128_v47  ;;  %2469 = vmatmul.f32.gmra.mxu3 %v2377_v55  ;;  %v2145_v55 = vpop.f32.mrf.mxu1 }
 0x38e   : > { %v2310_v5 = vadd.f32 %v2241_v6, %v1756_v53  ;;  %v1765_v6 = vadd.f32 %v4539_v45, %v4416_v33  ;;  %v4699_v61 = vpop.f32.mrf.mxu3 }
 0x38f   : > { %2290 = vmatmul.f32.gmra.mxu2 %v1907_v49 }
 0x390   : > { %v2346_v31 = vadd.f32 %v4564_v50, %v2310_v5 }
 0x392   : > { %v4681_v37 = vpop.f32.mrf.mxu0  ;;  %v2378_v62 = vmax.f32 %v2346_v31, 0.0  ;;  %v2140_v31 = vadd.f32 %v2139_v16, %v4548_v7  ;;  %v5037_v7 = vld [vmem:[#allocation39_spill] sm:$0xff] }
 0x393   : > { %v2243_v43 = vpop.f32.mrf.mxu2  ;;  %v5038_v16 = vld [vmem:[#allocation55_spill] sm:$0xff] }
 0x394   : > { %v2244_v40 = vadd.f32 %v2243_v43, %v2131_v56  ;;  %2472 = vmatmul.f32.gmra.mxu3 %v2378_v62  ;;  %v2148_v5 = vpop.f32.mrf.mxu1  ;;  %v1768_v43 = vadd.f32 %v5035_v44, %v5034_v58 }
 0x396   : > { %v2311_v15 = vadd.f32 %v2244_v40, %v1759_v9  ;;  %v4705_v33 = vpop.f32.mrf.mxu3 }
 0x397   : > { %2293 = vmatmul.f32.gmra.mxu2 %v1908_v2  ;;  %v5036_v2 = vld [vmem:[#allocation54_spill] sm:$0xff] }
 0x398   : > { %v2347_v48 = vadd.f32 %v4564_v50, %v2311_v15  ;;  %v2143_v15 = vadd.f32 %v2142_v11, %v5036_v2 }
 0x39a   : > { %v2201_v4 = vpop.f32.mrf.mxu0  ;;  %v2379_v39 = vmax.f32 %v2347_v48, 0.0 }
 0x39b   : > { %v2202_v20 = vadd.f32 %v2201_v4, %v2089_v60  ;;  %v2246_v46 = vpop.f32.mrf.mxu2  ;;  %v1771_v4 = vadd.f32 %v5038_v16, %v5037_v7  ;;  %v5043_v16 = vld [vmem:[#allocation9_spill] sm:$0xff] }
 0x39c   : > { %v2247_v63 = vadd.f32 %v2246_v46, %v2134_v23  ;;  %2475 = vmatmul.f32.gmra.mxu3 %v2379_v39  ;;  %v2151_v60 = vpop.f32.mrf.mxu1  ;;  %v4720_v46 = vld [vmem:[%s4948_s7] ss:$0 sm:$0xff] }
 0x39d   : > { %v2297_v19 = vadd.f32 %v2202_v20, %v4210_v57  ;;  %v4714_v20 = vld [vmem:[%s4947_s6] ss:$0 sm:$0xff] }
 0x39e   : > { %v2312_v47 = vadd.f32 %v2247_v63, %v1762_v1  ;;  %v5039_v63 = vld [vmem:[#allocation7_spill] sm:$0xff] }
 0x39f   : > { %v2333_v30 = vadd.f32 %v4564_v50, %v2297_v19  ;;  %v742_v19 = vadd.f32 %v4720_v46, %v5039_v63  ;;  %v5044_v63 = vld [vmem:[#allocation41_spill] sm:$0xff] }
 0x3a0   : > { %v2348_v51 = vadd.f32 %v4564_v50, %v2312_v47 }
 0x3a1   : > { %v2365_v28 = vmax.f32 %v2333_v30, 0.0 }
 0x3a2   : > { %v2380_v25 = vmax.f32 %v2348_v51, 0.0  ;;  %v2146_v51 = vadd.f32 %v2145_v55, %v4574_v54 }
 0x3a3   : > { %v2249_v53 = vpop.f32.mrf.mxu2  ;;  %2433 = vmatmul.f32.vlgmr.msrb.gmra.mxu1 %v2365_v28 }
 0x3a4   : > { %v2250_v18 = vadd.f32 %v2249_v53, %v2137_v59  ;;  %2478 = vmatmul.f32.gmra.mxu3 %v2380_v25  ;;  %v5040_v53 = vld [vmem:[#allocation40_spill] sm:$0xff] }
 0x3a6   : > { %v2313_v57 = vadd.f32 %v2250_v18, %v1765_v6  ;;  %v1774_v6 = vadd.f32 %v4577_v27, %v5040_v53  ;;  %v2149_v27 = vadd.f32 %v2148_v5, %v4582_v52  ;;  %v2152_v5 = vadd.f32 %v2151_v60, %v4592_v21 }
 0x3a8   : > { %v2349_v49 = vadd.f32 %v4564_v50, %v2313_v57 }
 0x3aa   : > { %v2381_v56 = vmax.f32 %v2349_v49, 0.0  ;;  %v2154_v49 = vpop.f32.mrf.mxu1 }
 0x3ab   : > { %v2252_v62 = vpop.f32.mrf.mxu2 }
 0x3ac   : > { %v2253_v9 = vadd.f32 %v2252_v62, %v2140_v31  ;;  %2481 = vmatmul.f32.gmra.mxu3 %v2381_v56  ;;  %v5041_v62 = vld [vmem:[#allocation8_spill] sm:$0xff] }
 0x3ad   : > { %v743_v54 = vadd.f32 %v4720_v46, %v5041_v62 }
 0x3ae   : > { %v2314_v40 = vadd.f32 %v2253_v9, %v1768_v43 }
 0x3b0   : > { %v2350_v45 = vadd.f32 %v4564_v50, %v2314_v40  ;;  %v5042_v40 = vld [vmem:[#allocation42_spill] sm:$0xff] }
 0x3b2   : > { %v2382_v48 = vmax.f32 %v2350_v45, 0.0  ;;  %v1777_v45 = vadd.f32 %v4588_v3, %v5042_v40 }
 0x3b3   : > { %v2255_v23 = vpop.f32.mrf.mxu2 }
 0x3b4   : > { %v2256_v39 = vadd.f32 %v2255_v23, %v2143_v15  ;;  %2484 = vmatmul.f32.gmra.mxu3 %v2382_v48  ;;  %v2157_v23 = vpop.f32.mrf.mxu1 }
 0x3b6   : > { %v2315_v11 = vadd.f32 %v2256_v39, %v1771_v4  ;;  %v744_v4 = vadd.f32 %v4720_v46, %v5043_v16 }
 0x3b7   : > { %v2437_v1 = vpop.f32.mrf.mxu3 }
 0x3b8   : > { %v2438_v47 = vadd.f32 %v4714_v20, %v2437_v1  ;;  %v2351_v30 = vadd.f32 %v4564_v50, %v2315_v11 }
 0x3ba   : > { %v2531_v28 = vadd.f32 %v2438_v47, %v742_v19  ;;  %v2383_v59 = vmax.f32 %v2351_v30, 0.0  ;;  %v1780_v19 = vadd.f32 %v4602_v22, %v5044_v63 }
 0x3bb   : > { %v2258_v25 = vpop.f32.mrf.mxu2 }
 0x3bc   : > { %v2563_v18 = vmax.f32 %v2531_v28, 0.0  ;;  %v2259_v57 = vadd.f32 %v2258_v25, %v2146_v51  ;;  %2487 = vmatmul.f32.gmra.mxu3 %v2383_v59  ;;  %v5045_v59 = vld [vmem:[#allocation10_spill] sm:$0xff]  ;;  %v2160_v60 = vpop.f32.mrf.mxu1 }
 0x3bd   : > { %v745_v25 = vadd.f32 %v4720_v46, %v5045_v59  ;;  %v5051_v59 = vld [vmem:[#allocation13_spill] sm:$0xff] }
 0x3be   : > { %2595 = vst [vmem:[%s4731_s17 + $0x8] sm:$0xff] %v2563_v18  ;;  %v2316_v31 = vadd.f32 %v2259_v57, %v1774_v6  ;;  %v2155_v6 = vadd.f32 %v2154_v49, %v4600_v0  ;;  %v2158_v49 = vadd.f32 %v2157_v23, %v4610_v12  ;;  %v2161_v23 = vadd.f32 %v2160_v60, %v4620_v26 }
 0x3bf   : > { %v2440_v56 = vpop.f32.mrf.mxu3 }
 0x3c0   : > { %v2441_v55 = vadd.f32 %v4714_v20, %v2440_v56  ;;  %v2352_v58 = vadd.f32 %v4564_v50, %v2316_v31  ;;  %v5046_v31 = vld [vmem:[#allocation43_spill] sm:$0xff] }
 0x3c1   : > { %v1783_v56 = vadd.f32 %v4612_v24, %v5046_v31 }
 0x3c2   : > { %v2532_v44 = vadd.f32 %v2441_v55, %v743_v54  ;;  %v2384_v43 = vmax.f32 %v2352_v58, 0.0 }
 0x3c3   : > { %v2261_v9 = vpop.f32.mrf.mxu2 }
 0x3c4   : > { %v2564_v2 = vmax.f32 %v2532_v44, 0.0  ;;  %v2262_v15 = vadd.f32 %v2261_v9, %v2149_v27  ;;  %2490 = vmatmul.f32.gmra.mxu3 %v2384_v43  ;;  %v5047_v27 = vld [vmem:[#allocation11_spill] sm:$0xff] }
 0x3c5   : > { %v746_v44 = vadd.f32 %v4720_v46, %v5047_v27 }
 0x3c6   : > { %2596 = vst [vmem:[%s4731_s17 + $0x10] sm:$0xff] %v2564_v2  ;;  %v2317_v48 = vadd.f32 %v2262_v15, %v1777_v45  ;;  %v2163_v45 = vpop.f32.mrf.mxu1  ;;  %v5048_v2 = vld [vmem:[#allocation45_spill] sm:$0xff] }
 0x3c7   : > { %v2443_v7 = vpop.f32.mrf.mxu3  ;;  %v1786_v15 = vadd.f32 %v4623_v42, %v5048_v2  ;;  %v5050_v42 = vld [vmem:[#allocation44_spill] sm:$0xff] }
 0x3c8   : > { %v2444_v39 = vadd.f32 %v4714_v20, %v2443_v7  ;;  %v2353_v52 = vadd.f32 %v4564_v50, %v2317_v48  ;;  %v1789_v63 = vadd.f32 %v4635_v41, %v5050_v42  ;;  %v5057_v42 = vld [vmem:[#allocation16_spill] sm:$0xff] }
 0x3ca   : > { %v2533_v11 = vadd.f32 %v2444_v39, %v744_v4  ;;  %v2385_v1 = vmax.f32 %v2353_v52, 0.0  ;;  %v5049_v39 = vld [vmem:[#allocation12_spill] sm:$0xff] }
 0x3cb   : > { %v2264_v3 = vpop.f32.mrf.mxu2  ;;  %v747_v52 = vadd.f32 %v4720_v46, %v5049_v39 }
 0x3cc   : > { %v2565_v47 = vmax.f32 %v2533_v11, 0.0  ;;  %v2265_v30 = vadd.f32 %v2264_v3, %v2152_v5  ;;  %2493 = vmatmul.f32.gmra.mxu3 %v2385_v1 }
 0x3ce   : > { %2597 = vst [vmem:[%s4731_s17 + $0x18] sm:$0xff] %v2565_v47  ;;  %v2318_v51 = vadd.f32 %v2265_v30, %v1780_v19  ;;  %v2166_v30 = vpop.f32.mrf.mxu1 }
 0x3cf   : > { %v2446_v28 = vpop.f32.mrf.mxu3 }
 0x3d0   : > { %v2447_v53 = vadd.f32 %v4714_v20, %v2446_v28  ;;  %v2354_v21 = vadd.f32 %v4564_v50, %v2318_v51 }
 0x3d2   : > { %v2534_v18 = vadd.f32 %v2447_v53, %v745_v25  ;;  %v2386_v57 = vmax.f32 %v2354_v21, 0.0  ;;  %v748_v25 = vadd.f32 %v4720_v46, %v5051_v59  ;;  %v2164_v21 = vadd.f32 %v2163_v45, %v4628_v35  ;;  %v5058_v59 = vld [vmem:[#allocation48_spill] sm:$0xff] }
 0x3d3   : > { %v2267_v22 = vpop.f32.mrf.mxu2 }
 0x3d4   : > { %v2566_v62 = vmax.f32 %v2534_v18, 0.0  ;;  %v2268_v54 = vadd.f32 %v2267_v22, %v2155_v6  ;;  %2496 = vmatmul.f32.gmra.mxu3 %v2386_v57  ;;  %v5052_v18 = vld [vmem:[#allocation47_spill] sm:$0xff] }
 0x3d5   : > { %v1792_v57 = vadd.f32 %v4648_v38, %v5052_v18 }
 0x3d6   : > { %2598 = vst [vmem:[%s4731_s17 + $0x20] sm:$0xff] %v2566_v62  ;;  %v2319_v55 = vadd.f32 %v2268_v54, %v1783_v56  ;;  %v2169_v62 = vpop.f32.mrf.mxu1 }
 0x3d7   : > { %v2449_v58 = vpop.f32.mrf.mxu3 }
 0x3d8   : > { %v2450_v43 = vadd.f32 %v4714_v20, %v2449_v58  ;;  %v2355_v0 = vadd.f32 %v4564_v50, %v2319_v55  ;;  %v5053_v55 = vld [vmem:[#allocation14_spill] sm:$0xff] }
 0x3d9   : > { %v749_v58 = vadd.f32 %v4720_v46, %v5053_v55 }
 0x3da   : > { %v2535_v9 = vadd.f32 %v2450_v43, %v746_v44  ;;  %v2387_v40 = vmax.f32 %v2355_v0, 0.0  ;;  %v2167_v44 = vadd.f32 %v2166_v30, %v4639_v36 }
 0x3db   : > { %v2270_v24 = vpop.f32.mrf.mxu2 }
 0x3dc   : > { %v2567_v48 = vmax.f32 %v2535_v9, 0.0  ;;  %v2271_v7 = vadd.f32 %v2270_v24, %v2158_v49  ;;  %2499 = vmatmul.f32.gmra.mxu3 %v2387_v40  ;;  %v5054_v49 = vld [vmem:[#allocation46_spill] sm:$0xff] }
 0x3dd   : > { %v1795_v9 = vadd.f32 %v4659_v10, %v5054_v49 }
 0x3de   : > { %2599 = vst [vmem:[%s4731_s17 + $0x28] sm:$0xff] %v2567_v48  ;;  %v2320_v16 = vadd.f32 %v2271_v7, %v1786_v15  ;;  %v5055_v15 = vld [vmem:[#allocation15_spill] sm:$0xff] }
 0x3df   : > { %v2452_v4 = vpop.f32.mrf.mxu3  ;;  %v750_v48 = vadd.f32 %v4720_v46, %v5055_v15 }
 0x3e0   : > { %v2453_v5 = vadd.f32 %v4714_v20, %v2452_v4  ;;  %v2356_v12 = vadd.f32 %v4564_v50, %v2320_v16  ;;  %v2172_v16 = vpop.f32.mrf.mxu1  ;;  %v2170_v4 = vadd.f32 %v2169_v62, %v4646_v14  ;;  %v5060_v62 = vld [vmem:[#allocation50_spill] sm:$0xff] }
 0x3e2   : > { %v2536_v11 = vadd.f32 %v2453_v5, %v747_v52  ;;  %v2388_v1 = vmax.f32 %v2356_v12, 0.0  ;;  %v5056_v5 = vld [vmem:[#allocation49_spill] sm:$0xff] }
 0x3e3   : > { %v2273_v3 = vpop.f32.mrf.mxu2  ;;  %v1798_v12 = vadd.f32 %v4668_v17, %v5056_v5  ;;  %v5064_v5 = vld [vmem:[#allocation53_spill] sm:$0xff] }
 0x3e4   : > { %v2568_v19 = vmax.f32 %v2536_v11, 0.0  ;;  %v2274_v47 = vadd.f32 %v2273_v3, %v2161_v23  ;;  %2502 = vmatmul.f32.gmra.mxu3 %v2388_v1 }
 0x3e6   : > { %2600 = vst [vmem:[%s4731_s17 + $0x30] sm:$0xff] %v2568_v19  ;;  %v2321_v51 = vadd.f32 %v2274_v47, %v1789_v63  ;;  %v751_v63 = vadd.f32 %v4720_v46, %v5057_v42  ;;  %v2173_v47 = vadd.f32 %v2172_v16, %v4655_v34  ;;  %v5065_v42 = vld [vmem:[#allocation20_spill] sm:$0xff] }
 0x3e7   : > { %v2455_v28 = vpop.f32.mrf.mxu3 }
 0x3e8   : > { %v2456_v53 = vadd.f32 %v4714_v20, %v2455_v28  ;;  %v2357_v26 = vadd.f32 %v4564_v50, %v2321_v51  ;;  %v2175_v28 = vpop.f32.mrf.mxu1 }
 0x3ea   : > { %v2537_v60 = vadd.f32 %v2456_v53, %v748_v25  ;;  %v2389_v6 = vmax.f32 %v2357_v26, 0.0  ;;  %v1801_v25 = vadd.f32 %v4678_v29, %v5058_v59 }
 0x3eb   : > { %v2276_v41 = vpop.f32.mrf.mxu2 }
 0x3ec   : > { %v2569_v22 = vmax.f32 %v2537_v60, 0.0  ;;  %v2277_v31 = vadd.f32 %v2276_v41, %v2164_v21  ;;  %2505 = vmatmul.f32.gmra.mxu3 %v2389_v6  ;;  %v5059_v6 = vld [vmem:[#allocation17_spill] sm:$0xff] }
 0x3ed   : > { %v752_v41 = vadd.f32 %v4720_v46, %v5059_v6 }
 0x3ee   : > { %2601 = vst [vmem:[%s4731_s17 + $0x38] sm:$0xff] %v2569_v22  ;;  %v2322_v56 = vadd.f32 %v2277_v31, %v1792_v57  ;;  %v2176_v57 = vadd.f32 %v2175_v28, %v4664_v32 }
 0x3ef   : > { %v2458_v54 = vpop.f32.mrf.mxu3 }
 0x3f0   : > { %v2459_v27 = vadd.f32 %v4714_v20, %v2458_v54  ;;  %v2358_v35 = vadd.f32 %v4564_v50, %v2322_v56  ;;  %v2178_v29 = vpop.f32.mrf.mxu1  ;;  %v1804_v54 = vadd.f32 %v4689_v13, %v5060_v62  ;;  %v5062_v13 = vld [vmem:[#allocation51_spill] sm:$0xff] }
 0x3f1   : > { %v2179_v32 = vadd.f32 %v2178_v29, %v4673_v8  ;;  %v5069_v29 = vld [vmem:[#allocation23_spill] sm:$0xff] }
 0x3f2   : > { %v2538_v43 = vadd.f32 %v2459_v27, %v749_v58  ;;  %v2390_v0 = vmax.f32 %v2358_v35, 0.0  ;;  %v758_v62 = vadd.f32 %v4720_v46, %v5069_v29 }
 0x3f3   : > { %v2279_v38 = vpop.f32.mrf.mxu2 }
 0x3f4   : > { %v2570_v40 = vmax.f32 %v2538_v43, 0.0  ;;  %v2280_v45 = vadd.f32 %v2279_v38, %v2167_v44  ;;  %2508 = vmatmul.f32.gmra.mxu3 %v2390_v0  ;;  %v5061_v44 = vld [vmem:[#allocation18_spill] sm:$0xff] }
 0x3f5   : > { %v753_v43 = vadd.f32 %v4720_v46, %v5061_v44 }
 0x3f6   : > { %2602 = vst [vmem:[%s4731_s17 + $0x40] sm:$0xff] %v2570_v40  ;;  %v2323_v24 = vadd.f32 %v2280_v45, %v1795_v9  ;;  %v1807_v45 = vadd.f32 %v4699_v61, %v5062_v13 }
 0x3f7   : > { %v2461_v2 = vpop.f32.mrf.mxu3 }
 0x3f8   : > { %v2462_v7 = vadd.f32 %v4714_v20, %v2461_v2  ;;  %v2359_v36 = vadd.f32 %v4564_v50, %v2323_v24  ;;  %v2181_v15 = vpop.f32.mrf.mxu1 }
 0x3fa   : > { %v2539_v39 = vadd.f32 %v2462_v7, %v750_v48  ;;  %v2391_v52 = vmax.f32 %v2359_v36, 0.0  ;;  %v5063_v36 = vld [vmem:[#allocation19_spill] sm:$0xff] }
 0x3fb   : > { %v2282_v10 = vpop.f32.mrf.mxu2  ;;  %v754_v16 = vadd.f32 %v4720_v46, %v5063_v36 }
 0x3fc   : > { %v2571_v23 = vmax.f32 %v2539_v39, 0.0  ;;  %v2283_v11 = vadd.f32 %v2282_v10, %v2170_v4  ;;  %2511 = vmatmul.f32.gmra.mxu3 %v2391_v52  ;;  %v2182_v4 = vadd.f32 %v2181_v15, %v4681_v37 }
 0x3fe   : > { %2603 = vst [vmem:[%s4731_s17 + $0x48] sm:$0xff] %v2571_v23  ;;  %v2324_v1 = vadd.f32 %v2283_v11, %v1798_v12  ;;  %v1810_v12 = vadd.f32 %v4705_v33, %v5064_v5  ;;  %v5074_v5 = vld [vmem:[#allocation28_spill] sm:$0xff] }
 0x3ff   : > { %v2464_v3 = vpop.f32.mrf.mxu3 }
 0x400   : > { %v2465_v19 = vadd.f32 %v4714_v20, %v2464_v3  ;;  %v2360_v14 = vadd.f32 %v4564_v50, %v2324_v1 }
 0x402   : > { %v2540_v30 = vadd.f32 %v2465_v19, %v751_v63  ;;  %v2392_v51 = vmax.f32 %v2360_v14, 0.0  ;;  %v755_v63 = vadd.f32 %v4720_v46, %v5065_v42  ;;  %v5075_v42 = vld [vmem:[#allocation29_spill] sm:$0xff] }
 0x403   : > { %v2285_v17 = vpop.f32.mrf.mxu2 }
 0x404   : > { %v2572_v53 = vmax.f32 %v2540_v30, 0.0  ;;  %v2286_v26 = vadd.f32 %v2285_v17, %v2173_v47  ;;  %2514 = vmatmul.f32.gmra.mxu3 %v2392_v51  ;;  %v5066_v47 = vld [vmem:[#allocation6_spill] sm:$0xff] }
 0x405   : > { %v741_v33 = vadd.f32 %v4720_v46, %v5066_v47 }
 0x406   : > { %2604 = vst [vmem:[%s4731_s17 + $0x50] sm:$0xff] %v2572_v53  ;;  %v2325_v21 = vadd.f32 %v2286_v26, %v1801_v25  ;;  %v5067_v26 = vld [vmem:[#allocation21_spill] sm:$0xff] }
 0x407   : > { %v2467_v60 = vpop.f32.mrf.mxu3 }
 0x408   : > { %v2468_v18 = vadd.f32 %v4714_v20, %v2467_v60  ;;  %v2361_v34 = vadd.f32 %v4564_v50, %v2325_v21  ;;  %v756_v21 = vadd.f32 %v4720_v46, %v5067_v26 }
 0x40a   : > { %v2541_v22 = vadd.f32 %v2468_v18, %v752_v41  ;;  %v2393_v31 = vmax.f32 %v2361_v34, 0.0  ;;  %v5068_v18 = vld [vmem:[#allocation22_spill] sm:$0xff] }
 0x40b   : > { %v2288_v56 = vpop.f32.mrf.mxu2  ;;  %v757_v34 = vadd.f32 %v4720_v46, %v5068_v18 }
 0x40c   : > { %v2573_v55 = vmax.f32 %v2541_v22, 0.0  ;;  %v2289_v58 = vadd.f32 %v2288_v56, %v2176_v57  ;;  %2517 = vmatmul.f32.gmra.mxu3 %v2393_v31 }
 0x40e   : > { %2605 = vst [vmem:[%s4731_s17 + $0x58] sm:$0xff] %v2573_v55  ;;  %v2326_v27 = vadd.f32 %v2289_v58, %v1804_v54 }
 0x40f   : > { %v2470_v35 = vpop.f32.mrf.mxu3 }
 0x410   : > { %v2471_v0 = vadd.f32 %v4714_v20, %v2470_v35  ;;  %v2362_v38 = vadd.f32 %v4564_v50, %v2326_v27  ;;  %v5070_v35 = vld [vmem:[#allocation24_spill] sm:$0xff] }
 0x411   : > { %v759_v44 = vadd.f32 %v4720_v46, %v5070_v35 }
 0x412   : > { %v2542_v49 = vadd.f32 %v2471_v0, %v753_v43  ;;  %v2394_v9 = vmax.f32 %v2362_v38, 0.0 }
 0x413   : > { %v2291_v40 = vpop.f32.mrf.mxu2 }
 0x414   : > { %v2574_v24 = vmax.f32 %v2542_v49, 0.0  ;;  %v2292_v2 = vadd.f32 %v2291_v40, %v2179_v32  ;;  %2520 = vmatmul.f32.gmra.mxu3 %v2394_v9  ;;  %v5071_v49 = vld [vmem:[#allocation25_spill] sm:$0xff] }
 0x415   : > { %v760_v9 = vadd.f32 %v4720_v46, %v5071_v49 }
 0x416   : > { %2606 = vst [vmem:[%s4731_s17 + $0x60] sm:$0xff] %v2574_v24  ;;  %v2327_v48 = vadd.f32 %v2292_v2, %v1807_v45  ;;  %v5072_v2 = vld [vmem:[#allocation26_spill] sm:$0xff] }
 0x417   : > { %v2473_v7 = vpop.f32.mrf.mxu3  ;;  %v761_v15 = vadd.f32 %v4720_v46, %v5072_v2 }
 0x418   : > { %v2474_v8 = vadd.f32 %v4714_v20, %v2473_v7  ;;  %v2363_v39 = vadd.f32 %v4564_v50, %v2327_v48 }
 0x41a   : > { %v2543_v52 = vadd.f32 %v2474_v8, %v754_v16  ;;  %v2395_v10 = vmax.f32 %v2363_v39, 0.0  ;;  %v5073_v8 = vld [vmem:[#allocation27_spill] sm:$0xff] }
 0x41b   : > { %v2294_v61 = vpop.f32.mrf.mxu2 }
 0x41c   : > { %v2575_v23 = vmax.f32 %v2543_v52, 0.0  ;;  %v2295_v11 = vadd.f32 %v2294_v61, %v2182_v4  ;;  %2523 = vmatmul.f32.gmra.mxu3 %v2395_v10  ;;  %v762_v4 = vadd.f32 %v4720_v46, %v5073_v8 }
 0x41e   : > { %2607 = vst [vmem:[%s4731_s17 + $0x68] sm:$0xff] %v2575_v23  ;;  %v2328_v1 = vadd.f32 %v2295_v11, %v1810_v12  ;;  %v763_v12 = vadd.f32 %v4720_v46, %v5074_v5 }
 0x41f   : > { %v2476_v3 = vpop.f32.mrf.mxu3 }
 0x420   : > { %v2477_v37 = vadd.f32 %v4714_v20, %v2476_v3  ;;  %v2434_v19 = vpop.f32.mrf.mxu1  ;;  %v2364_v14 = vadd.f32 %v4564_v50, %v2328_v1 }
 0x421   : > { %v2435_v30 = vadd.f32 %v4714_v20, %v2434_v19 }
 0x422   : > { %v2544_v51 = vadd.f32 %v2477_v37, %v755_v63  ;;  %v2396_v28 = vmax.f32 %v2364_v14, 0.0  ;;  %v764_v63 = vadd.f32 %v4720_v46, %v5075_v42 }
 0x423   : > { %v2530_v17 = vadd.f32 %v2435_v30, %v741_v33  ;;  %v5076_v33 = vld [vmem:[#allocation30_spill] sm:$0xff] }
 0x424   : > { %v2576_v59 = vmax.f32 %v2544_v51, 0.0  ;;  %2526 = vmatmul.f32.gmra.mxu3 %v2396_v28  ;;  %v765_v30 = vadd.f32 %v4720_v46, %v5076_v33 }
 0x425   : > { %v2562_v25 = vmax.f32 %v2530_v17, 0.0 }
 0x426   : > { %2608 = vst [vmem:[%s4731_s17 + $0x70] sm:$0xff] %v2576_v59 }
 0x427   : > { %2594 = vst [vmem:[%s4731_s17] sm:$0xff] %v2562_v25  ;;  %v2479_v53 = vpop.f32.mrf.mxu3  ;;  %v5077_v25 = vld [vmem:[#allocation31_spill] sm:$0xff] }
 0x428   : > { %v2480_v50 = vadd.f32 %v4714_v20, %v2479_v53  ;;  %v766_v53 = vadd.f32 %v4720_v46, %v5077_v25 }
 0x42a   : > { %v2545_v60 = vadd.f32 %v2480_v50, %v756_v21 }
 0x42c   : > { %v2577_v6 = vmax.f32 %v2545_v60, 0.0 }
 0x42e   : > { %2609 = vst [vmem:[%s4731_s17 + $0x78] sm:$0xff] %v2577_v6  ;;  %v5078_v6 = vld [vmem:[#allocation32_spill] sm:$0xff] }
 0x42f   : > { %v2482_v41 = vpop.f32.mrf.mxu3 }
 0x430   : > { %v2483_v57 = vadd.f32 %v4714_v20, %v2482_v41  ;;  %v767_v41 = vadd.f32 %v4720_v46, %v5078_v6 }
 0x432   : > { %v2546_v22 = vadd.f32 %v2483_v57, %v757_v34 }
 0x434   : > { %v2578_v31 = vmax.f32 %v2546_v22, 0.0 }
 0x436   : > { %2610 = vst [vmem:[%s4731_s17 + $0x80] sm:$0xff] %v2578_v31  ;;  %v5079_v31 = vld [vmem:[#allocation33_spill] sm:$0xff] }
 0x437   : > { %v2485_v56 = vpop.f32.mrf.mxu3 }
 0x438   : > { %v2486_v54 = vadd.f32 %v4714_v20, %v2485_v56  ;;  %v768_v56 = vadd.f32 %v4720_v46, %v5079_v31 }
 0x43a   : > { %v2547_v55 = vadd.f32 %v2486_v54, %v758_v62 }
 0x43c   : > { %v2579_v58 = vmax.f32 %v2547_v55, 0.0 }
 0x43e   : > { %2611 = vst [vmem:[%s4731_s17 + $0x88] sm:$0xff] %v2579_v58  ;;  %v5080_v58 = vld [vmem:[#allocation34_spill] sm:$0xff] }
 0x43f   : > { %v2488_v27 = vpop.f32.mrf.mxu3 }
 0x440   : > { %v2489_v43 = vadd.f32 %v4714_v20, %v2488_v27  ;;  %v769_v27 = vadd.f32 %v4720_v46, %v5080_v58 }
 0x442   : > { %v2548_v0 = vadd.f32 %v2489_v43, %v759_v44 }
 0x444   : > { %v2580_v32 = vmax.f32 %v2548_v0, 0.0 }
 0x446   : > { %2612 = vst [vmem:[%s4731_s17 + $0x90] sm:$0xff] %v2580_v32  ;;  %v5081_v32 = vld [vmem:[#allocation35_spill] sm:$0xff] }
 0x447   : > { %v2491_v38 = vpop.f32.mrf.mxu3 }
 0x448   : > { %v2492_v40 = vadd.f32 %v4714_v20, %v2491_v38  ;;  %v770_v38 = vadd.f32 %v4720_v46, %v5081_v32 }
 0x44a   : > { %v2549_v13 = vadd.f32 %v2492_v40, %v760_v9 }
 0x44c   : > { %v2581_v45 = vmax.f32 %v2549_v13, 0.0 }
 0x44e   : > { %2613 = vst [vmem:[%s4731_s17 + $0x98] sm:$0xff] %v2581_v45  ;;  %v5082_v45 = vld [vmem:[#allocation36_spill] sm:$0xff] }
 0x44f   : > { %v2494_v24 = vpop.f32.mrf.mxu3 }
 0x450   : > { %v2495_v48 = vadd.f32 %v4714_v20, %v2494_v24  ;;  %v771_v24 = vadd.f32 %v4720_v46, %v5082_v45 }
 0x452   : > { %v2550_v7 = vadd.f32 %v2495_v48, %v761_v15 }
 0x454   : > { %v2582_v36 = vmax.f32 %v2550_v7, 0.0 }
 0x456   : > { %2614 = vst [vmem:[%s4731_s17 + $0xa0] sm:$0xff] %v2582_v36  ;;  %v5083_v36 = vld [vmem:[#allocation37_spill] sm:$0xff] }
 0x457   : > { %v2497_v16 = vpop.f32.mrf.mxu3 }
 0x458   : > { %v2498_v39 = vadd.f32 %v4714_v20, %v2497_v16  ;;  %v772_v16 = vadd.f32 %v4720_v46, %v5083_v36 }
 0x45a   : > { %v2551_v52 = vadd.f32 %v2498_v39, %v762_v4 }
 0x45c   : > { %v2583_v10 = vmax.f32 %v2551_v52, 0.0 }
 0x45e   : > { %2615 = vst [vmem:[%s4731_s17 + $0xa8] sm:$0xff] %v2583_v10 }
 0x45f   : > { %v2500_v61 = vpop.f32.mrf.mxu3 }
 0x460   : > { %v2501_v23 = vadd.f32 %v4714_v20, %v2500_v61 }
 0x462   : > { %v2552_v11 = vadd.f32 %v2501_v23, %v763_v12 }
 0x464   : > { %v2584_v1 = vmax.f32 %v2552_v11, 0.0 }
 0x466   : > { %2616 = vst [vmem:[%s4731_s17 + $0xb0] sm:$0xff] %v2584_v1 }
 0x467   : > { %v2503_v3 = vpop.f32.mrf.mxu3 }
 0x468   : > { %v2504_v37 = vadd.f32 %v4714_v20, %v2503_v3 }
 0x46a   : > { %v2553_v19 = vadd.f32 %v2504_v37, %v764_v63 }
 0x46c   : > { %v2585_v14 = vmax.f32 %v2553_v19, 0.0 }
 0x46e   : > { %2617 = vst [vmem:[%s4731_s17 + $0xb8] sm:$0xff] %v2585_v14 }
 0x46f   : > { %v2506_v47 = vpop.f32.mrf.mxu3 }
 0x470   : > { %v2507_v51 = vadd.f32 %v4714_v20, %v2506_v47 }
 0x472   : > { %v2554_v28 = vadd.f32 %v2507_v51, %v765_v30 }
 0x474   : > { %v2586_v17 = vmax.f32 %v2554_v28, 0.0 }
 0x476   : > { %2618 = vst [vmem:[%s4731_s17 + $0xc0] sm:$0xff] %v2586_v17 }
 0x477   : > { %v2509_v59 = vpop.f32.mrf.mxu3 }
 0x478   : > { %v2510_v26 = vadd.f32 %v4714_v20, %v2509_v59 }
 0x47a   : > { %v2555_v21 = vadd.f32 %v2510_v26, %v766_v53 }
 0x47c   : > { %v2587_v50 = vmax.f32 %v2555_v21, 0.0 }
 0x47e   : > { %2619 = vst [vmem:[%s4731_s17 + $0xc8] sm:$0xff] %v2587_v50 }
 0x47f   : > { %v2512_v60 = vpop.f32.mrf.mxu3 }
 0x480   : > { %v2513_v18 = vadd.f32 %v4714_v20, %v2512_v60 }
 0x482   : > { %v2556_v34 = vadd.f32 %v2513_v18, %v767_v41 }
 0x484   : > { %v2588_v57 = vmax.f32 %v2556_v34, 0.0 }
 0x486   : > { %2620 = vst [vmem:[%s4731_s17 + $0xd0] sm:$0xff] %v2588_v57 }
 0x487   : > { %v2515_v22 = vpop.f32.mrf.mxu3 }
 0x488   : > { %v2516_v29 = vadd.f32 %v4714_v20, %v2515_v22 }
 0x48a   : > { %v2557_v62 = vadd.f32 %v2516_v29, %v768_v56 }
 0x48c   : > { %v2589_v54 = vmax.f32 %v2557_v62, 0.0 }
 0x48e   : > { %2621 = vst [vmem:[%s4731_s17 + $0xd8] sm:$0xff] %v2589_v54 }
 0x48f   : > { %v2518_v55 = vpop.f32.mrf.mxu3 }
 0x490   : > { %v2519_v35 = vadd.f32 %v4714_v20, %v2518_v55 }
 0x492   : > { %v2558_v44 = vadd.f32 %v2519_v35, %v769_v27 }
 0x494   : > { %v2590_v43 = vmax.f32 %v2558_v44, 0.0 }
 0x496   : > { %2622 = vst [vmem:[%s4731_s17 + $0xe0] sm:$0xff] %v2590_v43 }
 0x497   : > { %v2521_v0 = vpop.f32.mrf.mxu3 }
 0x498   : > { %v2522_v49 = vadd.f32 %v4714_v20, %v2521_v0 }
 0x49a   : > { %v2559_v9 = vadd.f32 %v2522_v49, %v770_v38 }
 0x49c   : > { %v2591_v40 = vmax.f32 %v2559_v9, 0.0 }
 0x49e   : > { %2623 = vst [vmem:[%s4731_s17 + $0xe8] sm:$0xff] %v2591_v40 }
 0x49f   : > { %v2524_v13 = vpop.f32.mrf.mxu3 }
 0x4a0   : > { %v2525_v2 = vadd.f32 %v4714_v20, %v2524_v13 }
 0x4a2   : > { %v2560_v15 = vadd.f32 %v2525_v2, %v771_v24 }
 0x4a4   : > { %v2592_v48 = vmax.f32 %v2560_v15, 0.0 }
 0x4a6   : > { %2624 = vst [vmem:[%s4731_s17 + $0xf0] sm:$0xff] %v2592_v48 }
 0x4a7   : > { %v2527_v7 = vpop.f32.mrf.mxu3 }
 0x4a8   : > { %v2528_v8 = vadd.f32 %v4714_v20, %v2527_v7 }
 0x4aa   : > { %v2561_v4 = vadd.f32 %v2528_v8, %v772_v16 }
 0x4ac   : > { %v2593_v39 = vmax.f32 %v2561_v4, 0.0 }
 0x4ae   : > { %2625 = vst [vmem:[%s4731_s17 + $0xf8] sm:$0xff] %v2593_v39 }
 0x4af   : > { %2987 = shalt.err (!%p2984_p3)
}
 0x4b0   : > { %s3025_s26 = smov 128   ;;  %s3026_s17 = smov 8  }
 0x4b1   : > { %2912 = dma.vmem_to_hbm [thread:$0]  (%p3110_p5), %s2640_s21, 4096, %s2642_s22, %s2627_s9, %s3025_s26, %s3025_s26, %s3026_s17  }
 0x4b2 PF: > { %p2918_p4 = scmp.ge.s32.totalorder %s3022_s30, 2  ;;  %s2656_s19 = sand.u32 1, %s3010_s27  }
 0x4b3   : > { %s2657_s20 = scalar_lea.sflag [#allocation4], %s2656_s19 }
 0x4b4   : > { %p2915_p7 = pnand %p2918_p4, %p3114_p6 }
 0x4b6   : > { %p2916_p8 = pneg %p2915_p7 }
 0x4b8   : > { %3005 = dma.done.wait (%p2916_p8), %s2657_s20, 4096  }
 0x4b9   : > { %3007 = vsyncadd (%p2916_p8), %s2657_s20, 4294963200  ;;  %p18_p9 = scmp.ge.s32.totalorder %s3097_s11, 4   ;;  %s5084_s27 = smov %s3014_s28 }
 0x4ba   : > { %s5085_s28 = smov %s3018_s29  ;;  %s5086_s29 = smov %s3108_s14 }
 0x4bb   : > { %s5087_s30 = smov %s3097_s11  ;;  %20 = sbr.rel (!%p18_p9) target bundleno = 3 (0x3), region = 92 }
 0x4c0   :  { %2663 = vsyncpa [#allocation4], 1 }
 0x4c1   :  { %2665 = vsyncpa [#allocation4 + $0x1], 1 }

</bundles_post_ra>
